<compile_context>
chip_gen: v5e
topology: v5e:2x2
jax: 0.10.0
libtpu: 0.0.40
codegen_flags: <defaults>
</compile_context>

<pallas_src>
import jax
import jax.numpy as jnp
from jax.experimental import pallas as pl
from jax.experimental.pallas import tpu as pltpu

# ---------------- small config consistent with the module's forward ----------
B = 2                      # batch
DURATION = 16              # frames per clip (module hard-codes 16)
SUPER_ROWS = 4             # super image is a 4x4 grid of frames
IN_CHANS = 3
FRAME_HW = 8               # per-frame spatial size (module uses 224; scaled down)
SUPER_HW = SUPER_ROWS * FRAME_HW          # 32
PATCH = 8
GRID_HW = SUPER_HW // PATCH               # 4
NUM_PATCHES = GRID_HW * GRID_HW           # 16
EMBED_DIM = 128                           # C == one full vreg lane width
DEPTH = 2
NUM_HEADS = 4
HEAD_DIM = EMBED_DIM // NUM_HEADS         # 32
SCALE = HEAD_DIM ** -0.5                  # qk_scale = None -> head_dim**-0.5
MLP_RATIO = 4.0
HIDDEN = int(EMBED_DIM * MLP_RATIO)       # 512
NUM_CLASSES = 16
OUT_PAD = 128                             # head output lanes padded to 128
SEQ = NUM_PATCHES + 1                     # cls token + patches
KP = IN_CHANS * PATCH * PATCH             # 192
LN_EPS = 1e-5
NEG_INF = -1e30
assert OUT_PAD == EMBED_DIM               # const slab packs head_w at C lanes

# token-row layout in the resident VMEM activation buffer (sublane aligned):
#   rows [0, B)            : cls token of sample b
#   rows [B, 8)            : zero pad rows (isolated via attention bias)
#   rows [8 + b*NP, ...)   : patches of sample b
CLS_ROWS = 8
PATCH_ROW0 = CLS_ROWS
T_PAD = PATCH_ROW0 + B * NUM_PATCHES      # 40

# ---- depth-invariant const slab (lane dim = C) row offsets -------------------
PW0, PW1 = 0, KP                          # patch_w  (192, C)
POS0, POS1 = KP, KP + NUM_PATCHES         # pos_embed (16, C)
PB_ROW = POS1                             # 208 patch_b
CLS_ROW = PB_ROW + 1                      # 209 cls_token
NW_ROW = PB_ROW + 2                       # 210 final norm_w
NB_ROW = PB_ROW + 3                       # 211 final norm_b
HB_ROW = PB_ROW + 4                       # 212 head_b (class-padded)
HW0 = PB_ROW + 8                          # 216 head_w (C, OUT_PAD)
HW1 = HW0 + EMBED_DIM                     # 344
CONST_ROWS = HW1

# ---- per-layer 128-lane slab: [proj_w | fc2_w | small vectors] ---------------
PROJ0, PROJ1 = 0, EMBED_DIM               # proj_w (C, C)
FC2W0, FC2W1 = EMBED_DIM, EMBED_DIM + HIDDEN   # fc2_w (HIDDEN, C)
LN1W_ROW = FC2W1 + 0
LN1B_ROW = FC2W1 + 1
PROJB_ROW = FC2W1 + 2
LN2W_ROW = FC2W1 + 3
LN2B_ROW = FC2W1 + 4
FC2B_ROW = FC2W1 + 5
SLAB_ROWS = FC2W1 + 8                     # 648

# ---- per-layer fc1 slab (lane dim = HIDDEN): [fc1_w | fc1_b] -----------------
FC1B_ROW = EMBED_DIM                      # 128
FC1_ROWS = EMBED_DIM + 8                  # 136


# ---------------- shared math helpers (traced inside kernels) -----------------
def _ln(z, w, b):
    mu = jnp.mean(z, axis=-1, keepdims=True)
    var = jnp.mean(jnp.square(z - mu), axis=-1, keepdims=True)
    return (z - mu) * jax.lax.rsqrt(var + LN_EPS) * w + b


def _gelu(z):  # exact (erf) GELU == torch.nn.GELU default
    return 0.5 * z * (1.0 + jax.lax.erf(z * (2.0 ** -0.5)))


# ---------------- fused ViT kernel (one grid step == one layer) ---------------
def fused_vit_kernel(patches_ref, const_ref, bias_ref,
                     qkv_ref, fc1_ref, slab_ref,
                     o_ref, x_vmem):
    d = pl.program_id(0)
    C = EMBED_DIM

    # ---- layer 0: patch-embed matmul + pos_embed + cls prepend ---------------
    @pl.when(d == 0)
    def _embed():
        patch_w = const_ref[PW0:PW1, :]                      # (KP, C)
        patch_b = const_ref[PB_ROW:PB_ROW + 1, :]            # (1, C)
        pos = const_ref[POS0:POS1, :]                        # (NP, C)
        cls = const_ref[CLS_ROW:CLS_ROW + 1, :]              # (1, C)
        emb = (jnp.dot(patches_ref[...], patch_w,
                       preferred_element_type=jnp.float32) + patch_b)
        emb = emb + jnp.concatenate([pos] * B, axis=0)       # tile pos per sample
        # cls rows + zero pad rows in one aligned 8-row store
        row = jax.lax.broadcasted_iota(jnp.int32, (CLS_ROWS, C), 0)
        x_vmem[0:CLS_ROWS, :] = jnp.where(
            row < B, jnp.broadcast_to(cls, (CLS_ROWS, C)), 0.0)
        x_vmem[PATCH_ROW0:T_PAD, :] = emb                    # aligned 32-row store

    # ---- one transformer block: LN1 -> MHSA -> +res -> LN2 -> MLP -> +res ----
    x = x_vmem[...]                                          # (T_PAD, C)

    h1 = _ln(x, slab_ref[0, LN1W_ROW:LN1W_ROW + 1, :],
             slab_ref[0, LN1B_ROW:LN1B_ROW + 1, :])
    # single fused QKV matmul (scale pre-folded into the q columns on host)
    qkv = jnp.dot(h1, qkv_ref[0], preferred_element_type=jnp.float32)  # (T, 3C)
    q = qkv[:, 0:C]
    k = qkv[:, C:2 * C]
    v = qkv[:, 2 * C:3 * C]
    bias = bias_ref[...]                                     # block-diag mask
    outs = []
    for h in range(NUM_HEADS):
        sl = slice(h * HEAD_DIM, (h + 1) * HEAD_DIM)
        s = jax.lax.dot_general(q[:, sl], k[:, sl], (((1,), (1,)), ((), ())),
                                preferred_element_type=jnp.float32)   # (T, T)
        s = s + bias
        s = s - jnp.max(s, axis=-1, keepdims=True)
        p = jnp.exp(s)
        p = p * pl.reciprocal(jnp.sum(p, axis=-1, keepdims=True), approx=False)
        outs.append(jnp.dot(p, v[:, sl], preferred_element_type=jnp.float32))
    attn = jnp.concatenate(outs, axis=-1)                    # (T, C) head-concat
    # single full-K output projection
    x = x + (jnp.dot(attn, slab_ref[0, PROJ0:PROJ1, :],
                     preferred_element_type=jnp.float32)
             + slab_ref[0, PROJB_ROW:PROJB_ROW + 1, :])

    h2 = _ln(x, slab_ref[0, LN2W_ROW:LN2W_ROW + 1, :],
             slab_ref[0, LN2B_ROW:LN2B_ROW + 1, :])
    hid = _gelu(jnp.dot(h2, fc1_ref[0, 0:C, :],
                        preferred_element_type=jnp.float32)
                + fc1_ref[0, FC1B_ROW:FC1B_ROW + 1, :])
    x = x + (jnp.dot(hid, slab_ref[0, FC2W0:FC2W1, :],
                     preferred_element_type=jnp.float32)
             + slab_ref[0, FC2B_ROW:FC2B_ROW + 1, :])
    x_vmem[...] = x

    # ---- last layer: final LN on first 8 rows + classification head ----------
    # (rows 0..B-1 are the cls tokens; the rest is padding sliced off on host.
    #  Full (8, OUT_PAD) store -> lane- and sublane-dense, unmasked vst.)
    @pl.when(d == pl.num_programs(0) - 1)
    def _head():
        xh = x[0:CLS_ROWS, :]
        xn = _ln(xh, const_ref[NW_ROW:NW_ROW + 1, :],
                 const_ref[NB_ROW:NB_ROW + 1, :])
        o_ref[...] = (jnp.dot(xn, const_ref[HW0:HW1, :],
                              preferred_element_type=jnp.float32)
                      + const_ref[HB_ROW:HB_ROW + 1, :])


# ---------------- Pallas wrapper -----------------------------------------------
def fused_vit_forward(patches, kp):
    def full(shape):                         # depth-invariant operand (one DMA)
        zeros = (0,) * len(shape)
        return pl.BlockSpec(shape, lambda d, z=zeros: z)

    def per_layer(shape):                    # depth-stacked operand
        return pl.BlockSpec((1,) + shape,
                            lambda d, n=len(shape): (d,) + (0,) * n)

    return pl.pallas_call(
        fused_vit_kernel,
        out_shape=jax.ShapeDtypeStruct((CLS_ROWS, OUT_PAD), jnp.float32),
        grid=(DEPTH,),
        in_specs=[
            full((B * NUM_PATCHES, KP)),                    # patches (im2col)
            full((CONST_ROWS, EMBED_DIM)),                  # const slab
            full((T_PAD, T_PAD)),                           # attn bias (mask)
            per_layer((EMBED_DIM, 3 * EMBED_DIM)),          # fused qkv_w
            per_layer((FC1_ROWS, HIDDEN)),                  # fc1_w | fc1_b
            per_layer((SLAB_ROWS, EMBED_DIM)),              # proj|fc2|vectors
        ],
        out_specs=pl.BlockSpec((CLS_ROWS, OUT_PAD), lambda d: (0, 0)),
        scratch_shapes=[pltpu.VMEM((T_PAD, EMBED_DIM), jnp.float32)],
        compiler_params=pltpu.CompilerParams(
            dimension_semantics=("arbitrary",)),   # depth carries VMEM state
    )(patches, kp['const'], kp['attn_bias'], kp['qkv'], kp['fc1'], kp['slab'])


# ---------------- host-side param packing (reshapes/concat only, done once) ----
def pack_for_kernel(params):
    C = EMBED_DIM
    f32 = jnp.float32
    blocks = params['blocks']

    # depth-invariant 128-lane const slab
    head_w = jnp.pad(params['head_w'], ((0, 0), (0, OUT_PAD - NUM_CLASSES)))
    head_b = jnp.pad(params['head_b'], ((0, 0), (0, OUT_PAD - NUM_CLASSES)))
    const = jnp.concatenate([
        params['patch_w'],                                   # rows 0..191
        params['pos_embed'].reshape(NUM_PATCHES, C),         # rows 192..207
        params['patch_b'].reshape(1, C),                     # row 208
        params['cls_token'].reshape(1, C),                   # row 209
        params['norm_w'].reshape(1, C),                      # row 210
        params['norm_b'].reshape(1, C),                      # row 211
        head_b,                                              # row 212
        jnp.zeros((3, C), f32),                              # rows 213..215
        head_w,                                              # rows 216..343
    ], axis=0)
    assert const.shape == (CONST_ROWS, C)

    # fused qkv with the attention scale folded into the q columns
    def qkv_scaled(w):
        return jnp.concatenate([w[:, :C] * SCALE, w[:, C:]], axis=-1)
    qkv = jnp.stack([qkv_scaled(blk['qkv_w']) for blk in blocks], axis=0)

    fc1 = jnp.stack([
        jnp.concatenate([blk['fc1_w'], blk['fc1_b'].reshape(1, HIDDEN),
                         jnp.zeros((FC1_ROWS - C - 1, HIDDEN), f32)], axis=0)
        for blk in blocks], axis=0)

    def layer_slab(blk):
        return jnp.concatenate([
            blk['proj_w'], blk['fc2_w'],
            blk['ln1_w'].reshape(1, C), blk['ln1_b'].reshape(1, C),
            blk['proj_b'].reshape(1, C),
            blk['ln2_w'].reshape(1, C), blk['ln2_b'].reshape(1, C),
            blk['fc2_b'].reshape(1, C),
            jnp.zeros((SLAB_ROWS - FC2W1 - 6, C), f32)], axis=0)
    slab = jnp.stack([layer_slab(blk) for blk in blocks], axis=0)
    assert slab.shape == (DEPTH, SLAB_ROWS, C)

    # block-diagonal additive attention bias over the padded token rows
    # (token i attends only within its own sample; pad rows attend among
    #  themselves so they stay finite but never touch real rows).
    sid = jnp.full((T_PAD,), -1, jnp.int32)
    sid = sid.at[0:B].set(jnp.arange(B, dtype=jnp.int32))
    sid = sid.at[PATCH_ROW0:T_PAD].set(
        jnp.repeat(jnp.arange(B, dtype=jnp.int32), NUM_PATCHES))
    attn_bias = jnp.where(sid[:, None] == sid[None, :], 0.0,
                          NEG_INF).astype(f32)

    return {'const': const, 'attn_bias': attn_bias,
            'qkv': qkv, 'fc1': fc1, 'slab': slab}


# ---------------- JAX glue (reshapes only) --------------------------------------
def create_super_img(x):
    # rearrange 'b (th tw c) h w -> b c (th h) (tw w)', th = tw = SUPER_ROWS, c = 3
    b, ch, h, w = x.shape
    th = tw = SUPER_ROWS
    x = x.reshape(b, th, tw, IN_CHANS, h, w)
    x = jnp.transpose(x, (0, 3, 1, 4, 2, 5))      # b, c, th, h, tw, w
    return x.reshape(b, IN_CHANS, th * h, tw * w)


def im2col(x, p):
    # patch extraction matching Conv2d(kernel=p, stride=p): order (C, dh, dw)
    b, c, h, w = x.shape
    gh, gw = h // p, w // p
    x = x.reshape(b, c, gh, p, gw, p)
    x = jnp.transpose(x, (0, 2, 4, 1, 3, 5))      # b, gh, gw, c, p, p
    return x.reshape(b, gh * gw, c * p * p)


def forward(x, params):
    xs = create_super_img(x)                                   # (B,3,32,32)
    patches = im2col(xs, PATCH).reshape(B * NUM_PATCHES, -1)   # (B*P, 3*p*p)
    kp = pack_for_kernel(params)
    logits_pad = fused_vit_forward(patches, kp)                # (8, 128)
    return logits_pad[:B, :NUM_CLASSES]                        # slice off padding


# ---------------- pure-JAX reference (same math, no Pallas) ---------------------
def reference_forward(x, params):
    xs = create_super_img(x)
    patches = im2col(xs, PATCH).reshape(B * NUM_PATCHES, -1)
    emb = patches @ params['patch_w'] + params['patch_b']
    t = emb.reshape(B, NUM_PATCHES, EMBED_DIM) + params['pos_embed']
    cls = jnp.broadcast_to(params['cls_token'], (B, 1, EMBED_DIM))
    t = jnp.concatenate([cls, t], axis=1)
    for bp in params['blocks']:
        h1 = _ln(t, bp['ln1_w'], bp['ln1_b'])
        qkv = h1 @ bp['qkv_w']
        q, k, v = (qkv[..., :EMBED_DIM], qkv[..., EMBED_DIM:2 * EMBED_DIM],
                   qkv[..., 2 * EMBED_DIM:])
        heads = []
        for h in range(NUM_HEADS):
            sl = slice(h * HEAD_DIM, (h + 1) * HEAD_DIM)
            s = jnp.einsum('bnd,bmd->bnm', q[..., sl] * SCALE, k[..., sl])
            heads.append(jnp.einsum('bnm,bmd->bnd', jax.nn.softmax(s, -1),
                                    v[..., sl]))
        t = t + (jnp.concatenate(heads, -1) @ bp['proj_w'] + bp['proj_b'])
        h2 = _ln(t, bp['ln2_w'], bp['ln2_b'])
        t = t + (_gelu(h2 @ bp['fc1_w'] + bp['fc1_b']) @ bp['fc2_w'] + bp['fc2_b'])
    xcls = _ln(t, params['norm_w'], params['norm_b'])[:, 0]
    return xcls @ params['head_w'] + params['head_b']


# ---------------- deterministic parameter init ----------------------------------
def init_params(key):
    ks = jax.random.split(key, 8 + DEPTH)

    def tn(k, shape, std=0.02):
        return (std * jax.random.truncated_normal(k, -2.0, 2.0, shape)
                ).astype(jnp.float32)

    params = {
        'patch_w': tn(ks[0], (KP, EMBED_DIM)),
        'patch_b': tn(ks[1], (1, EMBED_DIM)),
        'cls_token': tn(ks[2], (1, 1, EMBED_DIM)),
        'pos_embed': tn(ks[3], (1, NUM_PATCHES, EMBED_DIM)),
        'norm_w': jnp.ones((1, EMBED_DIM), jnp.float32),
        'norm_b': jnp.zeros((1, EMBED_DIM), jnp.float32),
        'head_w': tn(ks[4], (EMBED_DIM, NUM_CLASSES)),
        'head_b': jnp.zeros((1, NUM_CLASSES), jnp.float32),
    }
    blocks = []
    for i in range(DEPTH):
        bk = jax.random.split(ks[8 + i], 4)
        blocks.append(dict(
            ln1_w=jnp.ones((1, EMBED_DIM), jnp.float32),
            ln1_b=jnp.zeros((1, EMBED_DIM), jnp.float32),
            qkv_w=tn(bk[0], (EMBED_DIM, 3 * EMBED_DIM)),   # qkv_bias=False
            proj_w=tn(bk[1], (EMBED_DIM, EMBED_DIM)),
            proj_b=jnp.zeros((1, EMBED_DIM), jnp.float32),
            ln2_w=jnp.ones((1, EMBED_DIM), jnp.float32),
            ln2_b=jnp.zeros((1, EMBED_DIM), jnp.float32),
            fc1_w=tn(bk[2], (EMBED_DIM, HIDDEN)),
            fc1_b=jnp.zeros((1, HIDDEN), jnp.float32),
            fc2_w=tn(bk[3], (HIDDEN, EMBED_DIM)),
            fc2_b=jnp.zeros((1, EMBED_DIM), jnp.float32),
        ))
    params['blocks'] = blocks
    return params


if __name__ == "__main__":
    key = jax.random.PRNGKey(0)
    kx, kparams = jax.random.split(key)
    # (B, 3*duration, H, W) = (2, 48, 8, 8)
    x = jax.random.normal(kx, (B, IN_CHANS * DURATION, FRAME_HW, FRAME_HW),
                          jnp.float32)
    params = init_params(kparams)

    fwd = jax.jit(forward)
    out = jax.block_until_ready(fwd(x, params))
    ref = jax.block_until_ready(reference_forward(x, params))

    assert out.shape == (B, NUM_CLASSES)
    max_err = float(jnp.max(jnp.abs(out - ref)))
    assert jnp.allclose(out, ref, atol=2e-3, rtol=2e-3), max_err
    print("KERNEL_OK")
</pallas_src>

<mosaic_0001>
module attributes {stable_mosaic.version = 11 : i64} {
  func.func @fused_vit_kernel(%arg0: i32, %arg1: memref<32x192xf32, #tpu.memory_space<vmem>>, %arg2: memref<344x128xf32, #tpu.memory_space<vmem>>, %arg3: memref<40x40xf32, #tpu.memory_space<vmem>>, %arg4: memref<1x128x384xf32, #tpu.memory_space<vmem>>, %arg5: memref<1x136x512xf32, #tpu.memory_space<vmem>>, %arg6: memref<1x648x128xf32, #tpu.memory_space<vmem>>, %arg7: memref<8x128xf32, #tpu.memory_space<vmem>>, %arg8: memref<40x128xf32, #tpu.memory_space<vmem>>) attributes {dimension_semantics = [#tpu.dimension_semantics<arbitrary>], iteration_bounds = array<i64: 2>, scalar_prefetch = 0 : i64, scratch_operands = 1 : i64, tpu.core_type = #tpu.core_type<tc>, window_params = [{pipeline_mode = #tpu.pipeline_mode<synchronous>, transform_indices = @transform_0, window_bounds = array<i64: 32, 192>}, {pipeline_mode = #tpu.pipeline_mode<synchronous>, transform_indices = @transform_1, window_bounds = array<i64: 344, 128>}, {pipeline_mode = #tpu.pipeline_mode<synchronous>, transform_indices = @transform_2, window_bounds = array<i64: 40, 40>}, {transform_indices = @transform_3, window_bounds = array<i64: 1, 128, 384>}, {transform_indices = @transform_4, window_bounds = array<i64: 1, 136, 512>}, {transform_indices = @transform_5, window_bounds = array<i64: 1, 648, 128>}, {pipeline_mode = #tpu.pipeline_mode<synchronous>, transform_indices = @transform_6, window_bounds = array<i64: 8, 128>}]} {
    %c0_i32 = arith.constant 0 : i32
    %0 = arith.cmpi eq, %arg0, %c0_i32 : i32
    %1 = arith.extui %0 : i1 to i32
    %c0_i32_0 = arith.constant 0 : i32
    %2 = arith.cmpi ne, %1, %c0_i32_0 : i32
    scf.if %2 {
      %c0_65 = arith.constant 0 : index
      %c0_66 = arith.constant 0 : index
      %163 = vector.load %arg2[%c0_65, %c0_66] : memref<344x128xf32, #tpu.memory_space<vmem>>, vector<192x128xf32>
      %c208 = arith.constant 208 : index
      %c0_67 = arith.constant 0 : index
      %164 = vector.load %arg2[%c208, %c0_67] : memref<344x128xf32, #tpu.memory_space<vmem>>, vector<1x128xf32>
      %c192 = arith.constant 192 : index
      %c0_68 = arith.constant 0 : index
      %165 = vector.load %arg2[%c192, %c0_68] : memref<344x128xf32, #tpu.memory_space<vmem>>, vector<16x128xf32>
      %c209 = arith.constant 209 : index
      %c0_69 = arith.constant 0 : index
      %166 = vector.load %arg2[%c209, %c0_69] : memref<344x128xf32, #tpu.memory_space<vmem>>, vector<1x128xf32>
      %c0_70 = arith.constant 0 : index
      %c0_71 = arith.constant 0 : index
      %167 = vector.load %arg1[%c0_70, %c0_71] : memref<32x192xf32, #tpu.memory_space<vmem>>, vector<32x192xf32>
      %cst_72 = arith.constant dense<0.000000e+00> : vector<32x128xf32>
      %168 = tpu.matmul %167, %163, %cst_72 {dimension_numbers = #tpu.dot_dimension_numbers<[1], [0], [0], [1], [0, 0, 1, 1], [], []>} : vector<32x192xf32>, vector<192x128xf32>, vector<32x128xf32> -> vector<32x128xf32>
      %169 = vector.broadcast %164 : vector<1x128xf32> to vector<32x128xf32>
      %170 = arith.addf %168, %169 : vector<32x128xf32>
      %171 = tpu.concatenate %165, %165 in 0 : vector<16x128xf32>, vector<16x128xf32> -> vector<32x128xf32>
      %172 = arith.addf %170, %171 : vector<32x128xf32>
      %173 = tpu.iota {dimensions = array<i32: 0>} : vector<8x128xi32>
      %c2_i32 = arith.constant 2 : i32
      %174 = vector.broadcast %c2_i32 : i32 to vector<8x128xi32>
      %175 = arith.cmpi slt, %173, %174 : vector<8x128xi32>
      %176 = vector.shape_cast %166 : vector<1x128xf32> to vector<1x128xf32>
      %177 = vector.broadcast %176 : vector<1x128xf32> to vector<8x128xf32>
      %cst_73 = arith.constant 0.000000e+00 : f32
      %178 = vector.broadcast %cst_73 : f32 to vector<8x128xf32>
      %179 = arith.select %175, %177, %178 : vector<8x128xi1>, vector<8x128xf32>
      %c0_74 = arith.constant 0 : index
      %c0_75 = arith.constant 0 : index
      %180 = vector.load %arg8[%c0_74, %c0_75] : memref<40x128xf32, #tpu.memory_space<vmem>>, vector<8x128xf32>
      tpu.vector_store %arg8[%c0_74, %c0_75], %179 {strides = array<i32>} : memref<40x128xf32, #tpu.memory_space<vmem>>, vector<8x128xf32>,
      %c8 = arith.constant 8 : index
      %c0_76 = arith.constant 0 : index
      %181 = vector.load %arg8[%c8, %c0_76] : memref<40x128xf32, #tpu.memory_space<vmem>>, vector<32x128xf32>
      tpu.vector_store %arg8[%c8, %c0_76], %172 {strides = array<i32>} : memref<40x128xf32, #tpu.memory_space<vmem>>, vector<32x128xf32>,
    } else {
    }
    %c0 = arith.constant 0 : index
    %c0_1 = arith.constant 0 : index
    %3 = vector.load %arg8[%c0, %c0_1] : memref<40x128xf32, #tpu.memory_space<vmem>>, vector<40x128xf32>
    %c0_2 = arith.constant 0 : index
    %c640 = arith.constant 640 : index
    %c0_3 = arith.constant 0 : index
    %4 = vector.load %arg6[%c0_2, %c640, %c0_3] : memref<1x648x128xf32, #tpu.memory_space<vmem>>, vector<1x1x128xf32>
    %5 = vector.shape_cast %4 : vector<1x1x128xf32> to vector<1x128xf32>
    %c0_4 = arith.constant 0 : index
    %c641 = arith.constant 641 : index
    %c0_5 = arith.constant 0 : index
    %6 = vector.load %arg6[%c0_4, %c641, %c0_5] : memref<1x648x128xf32, #tpu.memory_space<vmem>>, vector<1x1x128xf32>
    %7 = vector.shape_cast %6 : vector<1x1x128xf32> to vector<1x128xf32>
    %cst = arith.constant dense<0.000000e+00> : vector<40xf32>
    %8 = vector.multi_reduction <add>, %3, %cst [1] : vector<40x128xf32> to vector<40xf32>
    %9 = vector.shape_cast %8 : vector<40xf32> to vector<40x1xf32>
    %cst_6 = arith.constant 1.280000e+02 : f32
    %10 = vector.broadcast %cst_6 : f32 to vector<40x1xf32>
    %11 = arith.divf %9, %10 : vector<40x1xf32>
    %12 = vector.broadcast %11 : vector<40x1xf32> to vector<40x128xf32>
    %13 = arith.subf %3, %12 : vector<40x128xf32>
    %14 = arith.mulf %13, %13 : vector<40x128xf32>
    %cst_7 = arith.constant dense<0.000000e+00> : vector<40xf32>
    %15 = vector.multi_reduction <add>, %14, %cst_7 [1] : vector<40x128xf32> to vector<40xf32>
    %16 = vector.shape_cast %15 : vector<40xf32> to vector<40x1xf32>
    %cst_8 = arith.constant 1.280000e+02 : f32
    %17 = vector.broadcast %cst_8 : f32 to vector<40x1xf32>
    %18 = arith.divf %16, %17 : vector<40x1xf32>
    %19 = vector.broadcast %11 : vector<40x1xf32> to vector<40x128xf32>
    %20 = arith.subf %3, %19 : vector<40x128xf32>
    %cst_9 = arith.constant 9.99999974E-6 : f32
    %21 = vector.broadcast %cst_9 : f32 to vector<40x1xf32>
    %22 = arith.addf %18, %21 : vector<40x1xf32>
    %23 = math.rsqrt %22 : vector<40x1xf32>
    %24 = vector.broadcast %23 : vector<40x1xf32> to vector<40x128xf32>
    %25 = arith.mulf %20, %24 : vector<40x128xf32>
    %26 = vector.broadcast %5 : vector<1x128xf32> to vector<40x128xf32>
    %27 = arith.mulf %25, %26 : vector<40x128xf32>
    %28 = vector.broadcast %7 : vector<1x128xf32> to vector<40x128xf32>
    %29 = arith.addf %27, %28 : vector<40x128xf32>
    %c0_10 = arith.constant 0 : index
    %c0_11 = arith.constant 0 : index
    %c0_12 = arith.constant 0 : index
    %30 = vector.load %arg4[%c0_10, %c0_11, %c0_12] : memref<1x128x384xf32, #tpu.memory_space<vmem>>, vector<1x128x384xf32>
    %31 = vector.shape_cast %30 : vector<1x128x384xf32> to vector<128x384xf32>
    %cst_13 = arith.constant dense<0.000000e+00> : vector<40x384xf32>
    %32 = tpu.matmul %29, %31, %cst_13 {dimension_numbers = #tpu.dot_dimension_numbers<[1], [0], [0], [1], [0, 0, 1, 1], [], []>} : vector<40x128xf32>, vector<128x384xf32>, vector<40x384xf32> -> vector<40x384xf32>
    %33 = vector.extract_strided_slice %32 {offsets = [0, 0], sizes = [40, 128], strides = [1, 1]} : vector<40x384xf32> to vector<40x128xf32>
    %34 = vector.extract_strided_slice %32 {offsets = [0, 128], sizes = [40, 128], strides = [1, 1]} : vector<40x384xf32> to vector<40x128xf32>
    %35 = vector.extract_strided_slice %32 {offsets = [0, 256], sizes = [40, 128], strides = [1, 1]} : vector<40x384xf32> to vector<40x128xf32>
    %c0_14 = arith.constant 0 : index
    %c0_15 = arith.constant 0 : index
    %36 = vector.load %arg3[%c0_14, %c0_15] : memref<40x40xf32, #tpu.memory_space<vmem>>, vector<40x40xf32>
    %37 = vector.extract_strided_slice %33 {offsets = [0, 0], sizes = [40, 32], strides = [1, 1]} : vector<40x128xf32> to vector<40x32xf32>
    %38 = vector.extract_strided_slice %34 {offsets = [0, 0], sizes = [40, 32], strides = [1, 1]} : vector<40x128xf32> to vector<40x32xf32>
    %cst_16 = arith.constant dense<0.000000e+00> : vector<40x40xf32>
    %39 = tpu.matmul %37, %38, %cst_16 {dimension_numbers = #tpu.dot_dimension_numbers<[1], [1], [0], [0], [0, 0, 1, 0], [], []>} : vector<40x32xf32>, vector<40x32xf32>, vector<40x40xf32> -> vector<40x40xf32>
    %40 = arith.addf %39, %36 : vector<40x40xf32>
    %cst_17 = arith.constant dense<0xFF800000> : vector<40xf32>
    %41 = vector.multi_reduction <maximumf>, %40, %cst_17 [1] : vector<40x40xf32> to vector<40xf32>
    %42 = vector.shape_cast %41 : vector<40xf32> to vector<40x1xf32>
    %43 = vector.broadcast %42 : vector<40x1xf32> to vector<40x40xf32>
    %44 = arith.subf %40, %43 : vector<40x40xf32>
    %45 = math.exp %44 : vector<40x40xf32>
    %cst_18 = arith.constant dense<0.000000e+00> : vector<40xf32>
    %46 = vector.multi_reduction <add>, %45, %cst_18 [1] : vector<40x40xf32> to vector<40xf32>
    %47 = vector.shape_cast %46 : vector<40xf32> to vector<40x1xf32>
    %48 = tpu.reciprocal %47 : vector<40x1xf32> -> vector<40x1xf32>
    %49 = vector.broadcast %48 : vector<40x1xf32> to vector<40x40xf32>
    %50 = arith.mulf %45, %49 : vector<40x40xf32>
    %51 = vector.extract_strided_slice %35 {offsets = [0, 0], sizes = [40, 32], strides = [1, 1]} : vector<40x128xf32> to vector<40x32xf32>
    %cst_19 = arith.constant dense<0.000000e+00> : vector<40x32xf32>
    %52 = tpu.matmul %50, %51, %cst_19 {dimension_numbers = #tpu.dot_dimension_numbers<[1], [0], [0], [1], [0, 0, 1, 1], [], []>} : vector<40x40xf32>, vector<40x32xf32>, vector<40x32xf32> -> vector<40x32xf32>
    %53 = vector.extract_strided_slice %33 {offsets = [0, 32], sizes = [40, 32], strides = [1, 1]} : vector<40x128xf32> to vector<40x32xf32>
    %54 = vector.extract_strided_slice %34 {offsets = [0, 32], sizes = [40, 32], strides = [1, 1]} : vector<40x128xf32> to vector<40x32xf32>
    %cst_20 = arith.constant dense<0.000000e+00> : vector<40x40xf32>
    %55 = tpu.matmul %53, %54, %cst_20 {dimension_numbers = #tpu.dot_dimension_numbers<[1], [1], [0], [0], [0, 0, 1, 0], [], []>} : vector<40x32xf32>, vector<40x32xf32>, vector<40x40xf32> -> vector<40x40xf32>
    %56 = arith.addf %55, %36 : vector<40x40xf32>
    %cst_21 = arith.constant dense<0xFF800000> : vector<40xf32>
    %57 = vector.multi_reduction <maximumf>, %56, %cst_21 [1] : vector<40x40xf32> to vector<40xf32>
    %58 = vector.shape_cast %57 : vector<40xf32> to vector<40x1xf32>
    %59 = vector.broadcast %58 : vector<40x1xf32> to vector<40x40xf32>
    %60 = arith.subf %56, %59 : vector<40x40xf32>
    %61 = math.exp %60 : vector<40x40xf32>
    %cst_22 = arith.constant dense<0.000000e+00> : vector<40xf32>
    %62 = vector.multi_reduction <add>, %61, %cst_22 [1] : vector<40x40xf32> to vector<40xf32>
    %63 = vector.shape_cast %62 : vector<40xf32> to vector<40x1xf32>
    %64 = tpu.reciprocal %63 : vector<40x1xf32> -> vector<40x1xf32>
    %65 = vector.broadcast %64 : vector<40x1xf32> to vector<40x40xf32>
    %66 = arith.mulf %61, %65 : vector<40x40xf32>
    %67 = vector.extract_strided_slice %35 {offsets = [0, 32], sizes = [40, 32], strides = [1, 1]} : vector<40x128xf32> to vector<40x32xf32>
    %cst_23 = arith.constant dense<0.000000e+00> : vector<40x32xf32>
    %68 = tpu.matmul %66, %67, %cst_23 {dimension_numbers = #tpu.dot_dimension_numbers<[1], [0], [0], [1], [0, 0, 1, 1], [], []>} : vector<40x40xf32>, vector<40x32xf32>, vector<40x32xf32> -> vector<40x32xf32>
    %69 = vector.extract_strided_slice %33 {offsets = [0, 64], sizes = [40, 32], strides = [1, 1]} : vector<40x128xf32> to vector<40x32xf32>
    %70 = vector.extract_strided_slice %34 {offsets = [0, 64], sizes = [40, 32], strides = [1, 1]} : vector<40x128xf32> to vector<40x32xf32>
    %cst_24 = arith.constant dense<0.000000e+00> : vector<40x40xf32>
    %71 = tpu.matmul %69, %70, %cst_24 {dimension_numbers = #tpu.dot_dimension_numbers<[1], [1], [0], [0], [0, 0, 1, 0], [], []>} : vector<40x32xf32>, vector<40x32xf32>, vector<40x40xf32> -> vector<40x40xf32>
    %72 = arith.addf %71, %36 : vector<40x40xf32>
    %cst_25 = arith.constant dense<0xFF800000> : vector<40xf32>
    %73 = vector.multi_reduction <maximumf>, %72, %cst_25 [1] : vector<40x40xf32> to vector<40xf32>
    %74 = vector.shape_cast %73 : vector<40xf32> to vector<40x1xf32>
    %75 = vector.broadcast %74 : vector<40x1xf32> to vector<40x40xf32>
    %76 = arith.subf %72, %75 : vector<40x40xf32>
    %77 = math.exp %76 : vector<40x40xf32>
    %cst_26 = arith.constant dense<0.000000e+00> : vector<40xf32>
    %78 = vector.multi_reduction <add>, %77, %cst_26 [1] : vector<40x40xf32> to vector<40xf32>
    %79 = vector.shape_cast %78 : vector<40xf32> to vector<40x1xf32>
    %80 = tpu.reciprocal %79 : vector<40x1xf32> -> vector<40x1xf32>
    %81 = vector.broadcast %80 : vector<40x1xf32> to vector<40x40xf32>
    %82 = arith.mulf %77, %81 : vector<40x40xf32>
    %83 = vector.extract_strided_slice %35 {offsets = [0, 64], sizes = [40, 32], strides = [1, 1]} : vector<40x128xf32> to vector<40x32xf32>
    %cst_27 = arith.constant dense<0.000000e+00> : vector<40x32xf32>
    %84 = tpu.matmul %82, %83, %cst_27 {dimension_numbers = #tpu.dot_dimension_numbers<[1], [0], [0], [1], [0, 0, 1, 1], [], []>} : vector<40x40xf32>, vector<40x32xf32>, vector<40x32xf32> -> vector<40x32xf32>
    %85 = vector.extract_strided_slice %33 {offsets = [0, 96], sizes = [40, 32], strides = [1, 1]} : vector<40x128xf32> to vector<40x32xf32>
    %86 = vector.extract_strided_slice %34 {offsets = [0, 96], sizes = [40, 32], strides = [1, 1]} : vector<40x128xf32> to vector<40x32xf32>
    %cst_28 = arith.constant dense<0.000000e+00> : vector<40x40xf32>
    %87 = tpu.matmul %85, %86, %cst_28 {dimension_numbers = #tpu.dot_dimension_numbers<[1], [1], [0], [0], [0, 0, 1, 0], [], []>} : vector<40x32xf32>, vector<40x32xf32>, vector<40x40xf32> -> vector<40x40xf32>
    %88 = arith.addf %87, %36 : vector<40x40xf32>
    %cst_29 = arith.constant dense<0xFF800000> : vector<40xf32>
    %89 = vector.multi_reduction <maximumf>, %88, %cst_29 [1] : vector<40x40xf32> to vector<40xf32>
    %90 = vector.shape_cast %89 : vector<40xf32> to vector<40x1xf32>
    %91 = vector.broadcast %90 : vector<40x1xf32> to vector<40x40xf32>
    %92 = arith.subf %88, %91 : vector<40x40xf32>
    %93 = math.exp %92 : vector<40x40xf32>
    %cst_30 = arith.constant dense<0.000000e+00> : vector<40xf32>
    %94 = vector.multi_reduction <add>, %93, %cst_30 [1] : vector<40x40xf32> to vector<40xf32>
    %95 = vector.shape_cast %94 : vector<40xf32> to vector<40x1xf32>
    %96 = tpu.reciprocal %95 : vector<40x1xf32> -> vector<40x1xf32>
    %97 = vector.broadcast %96 : vector<40x1xf32> to vector<40x40xf32>
    %98 = arith.mulf %93, %97 : vector<40x40xf32>
    %99 = vector.extract_strided_slice %35 {offsets = [0, 96], sizes = [40, 32], strides = [1, 1]} : vector<40x128xf32> to vector<40x32xf32>
    %cst_31 = arith.constant dense<0.000000e+00> : vector<40x32xf32>
    %100 = tpu.matmul %98, %99, %cst_31 {dimension_numbers = #tpu.dot_dimension_numbers<[1], [0], [0], [1], [0, 0, 1, 1], [], []>} : vector<40x40xf32>, vector<40x32xf32>, vector<40x32xf32> -> vector<40x32xf32>
    %101 = tpu.concatenate %52, %68, %84, %100 in 1 : vector<40x32xf32>, vector<40x32xf32>, vector<40x32xf32>, vector<40x32xf32> -> vector<40x128xf32>
    %c0_32 = arith.constant 0 : index
    %c0_33 = arith.constant 0 : index
    %c0_34 = arith.constant 0 : index
    %102 = vector.load %arg6[%c0_32, %c0_33, %c0_34] : memref<1x648x128xf32, #tpu.memory_space<vmem>>, vector<1x128x128xf32>
    %103 = vector.shape_cast %102 : vector<1x128x128xf32> to vector<128x128xf32>
    %cst_35 = arith.constant dense<0.000000e+00> : vector<40x128xf32>
    %104 = tpu.matmul %101, %103, %cst_35 {dimension_numbers = #tpu.dot_dimension_numbers<[1], [0], [0], [1], [0, 0, 1, 1], [], []>} : vector<40x128xf32>, vector<128x128xf32>, vector<40x128xf32> -> vector<40x128xf32>
    %c0_36 = arith.constant 0 : index
    %c642 = arith.constant 642 : index
    %c0_37 = arith.constant 0 : index
    %105 = vector.load %arg6[%c0_36, %c642, %c0_37] : memref<1x648x128xf32, #tpu.memory_space<vmem>>, vector<1x1x128xf32>
    %106 = vector.shape_cast %105 : vector<1x1x128xf32> to vector<1x128xf32>
    %107 = vector.broadcast %106 : vector<1x128xf32> to vector<40x128xf32>
    %108 = arith.addf %104, %107 : vector<40x128xf32>
    %109 = arith.addf %3, %108 : vector<40x128xf32>
    %c0_38 = arith.constant 0 : index
    %c643 = arith.constant 643 : index
    %c0_39 = arith.constant 0 : index
    %110 = vector.load %arg6[%c0_38, %c643, %c0_39] : memref<1x648x128xf32, #tpu.memory_space<vmem>>, vector<1x1x128xf32>
    %111 = vector.shape_cast %110 : vector<1x1x128xf32> to vector<1x128xf32>
    %c0_40 = arith.constant 0 : index
    %c644 = arith.constant 644 : index
    %c0_41 = arith.constant 0 : index
    %112 = vector.load %arg6[%c0_40, %c644, %c0_41] : memref<1x648x128xf32, #tpu.memory_space<vmem>>, vector<1x1x128xf32>
    %113 = vector.shape_cast %112 : vector<1x1x128xf32> to vector<1x128xf32>
    %cst_42 = arith.constant dense<0.000000e+00> : vector<40xf32>
    %114 = vector.multi_reduction <add>, %109, %cst_42 [1] : vector<40x128xf32> to vector<40xf32>
    %115 = vector.shape_cast %114 : vector<40xf32> to vector<40x1xf32>
    %cst_43 = arith.constant 1.280000e+02 : f32
    %116 = vector.broadcast %cst_43 : f32 to vector<40x1xf32>
    %117 = arith.divf %115, %116 : vector<40x1xf32>
    %118 = vector.broadcast %117 : vector<40x1xf32> to vector<40x128xf32>
    %119 = arith.subf %109, %118 : vector<40x128xf32>
    %120 = arith.mulf %119, %119 : vector<40x128xf32>
    %cst_44 = arith.constant dense<0.000000e+00> : vector<40xf32>
    %121 = vector.multi_reduction <add>, %120, %cst_44 [1] : vector<40x128xf32> to vector<40xf32>
    %122 = vector.shape_cast %121 : vector<40xf32> to vector<40x1xf32>
    %cst_45 = arith.constant 1.280000e+02 : f32
    %123 = vector.broadcast %cst_45 : f32 to vector<40x1xf32>
    %124 = arith.divf %122, %123 : vector<40x1xf32>
    %125 = vector.broadcast %117 : vector<40x1xf32> to vector<40x128xf32>
    %126 = arith.subf %109, %125 : vector<40x128xf32>
    %cst_46 = arith.constant 9.99999974E-6 : f32
    %127 = vector.broadcast %cst_46 : f32 to vector<40x1xf32>
    %128 = arith.addf %124, %127 : vector<40x1xf32>
    %129 = math.rsqrt %128 : vector<40x1xf32>
    %130 = vector.broadcast %129 : vector<40x1xf32> to vector<40x128xf32>
    %131 = arith.mulf %126, %130 : vector<40x128xf32>
    %132 = vector.broadcast %111 : vector<1x128xf32> to vector<40x128xf32>
    %133 = arith.mulf %131, %132 : vector<40x128xf32>
    %134 = vector.broadcast %113 : vector<1x128xf32> to vector<40x128xf32>
    %135 = arith.addf %133, %134 : vector<40x128xf32>
    %c0_47 = arith.constant 0 : index
    %c0_48 = arith.constant 0 : index
    %c0_49 = arith.constant 0 : index
    %136 = vector.load %arg5[%c0_47, %c0_48, %c0_49] : memref<1x136x512xf32, #tpu.memory_space<vmem>>, vector<1x128x512xf32>
    %137 = vector.shape_cast %136 : vector<1x128x512xf32> to vector<128x512xf32>
    %cst_50 = arith.constant dense<0.000000e+00> : vector<40x512xf32>
    %138 = tpu.matmul %135, %137, %cst_50 {dimension_numbers = #tpu.dot_dimension_numbers<[1], [0], [0], [1], [0, 0, 1, 1], [], []>} : vector<40x128xf32>, vector<128x512xf32>, vector<40x512xf32> -> vector<40x512xf32>
    %c0_51 = arith.constant 0 : index
    %c128 = arith.constant 128 : index
    %c0_52 = arith.constant 0 : index
    %139 = vector.load %arg5[%c0_51, %c128, %c0_52] : memref<1x136x512xf32, #tpu.memory_space<vmem>>, vector<1x1x512xf32>
    %140 = vector.shape_cast %139 : vector<1x1x512xf32> to vector<1x512xf32>
    %141 = vector.broadcast %140 : vector<1x512xf32> to vector<40x512xf32>
    %142 = arith.addf %138, %141 : vector<40x512xf32>
    %cst_53 = arith.constant 5.000000e-01 : f32
    %143 = vector.broadcast %cst_53 : f32 to vector<40x512xf32>
    %144 = arith.mulf %143, %142 : vector<40x512xf32>
    %cst_54 = arith.constant 0.707106769 : f32
    %145 = vector.broadcast %cst_54 : f32 to vector<40x512xf32>
    %146 = arith.mulf %142, %145 : vector<40x512xf32>
    %147 = math.erf %146 : vector<40x512xf32>
    %cst_55 = arith.constant 1.000000e+00 : f32
    %148 = vector.broadcast %cst_55 : f32 to vector<40x512xf32>
    %149 = arith.addf %148, %147 : vector<40x512xf32>
    %150 = arith.mulf %144, %149 : vector<40x512xf32>
    %c0_56 = arith.constant 0 : index
    %c128_57 = arith.constant 128 : index
    %c0_58 = arith.constant 0 : index
    %151 = vector.load %arg6[%c0_56, %c128_57, %c0_58] : memref<1x648x128xf32, #tpu.memory_space<vmem>>, vector<1x512x128xf32>
    %152 = vector.shape_cast %151 : vector<1x512x128xf32> to vector<512x128xf32>
    %cst_59 = arith.constant dense<0.000000e+00> : vector<40x128xf32>
    %153 = tpu.matmul %150, %152, %cst_59 {dimension_numbers = #tpu.dot_dimension_numbers<[1], [0], [0], [1], [0, 0, 1, 1], [], []>} : vector<40x512xf32>, vector<512x128xf32>, vector<40x128xf32> -> vector<40x128xf32>
    %c0_60 = arith.constant 0 : index
    %c645 = arith.constant 645 : index
    %c0_61 = arith.constant 0 : index
    %154 = vector.load %arg6[%c0_60, %c645, %c0_61] : memref<1x648x128xf32, #tpu.memory_space<vmem>>, vector<1x1x128xf32>
    %155 = vector.shape_cast %154 : vector<1x1x128xf32> to vector<1x128xf32>
    %156 = vector.broadcast %155 : vector<1x128xf32> to vector<40x128xf32>
    %157 = arith.addf %153, %156 : vector<40x128xf32>
    %158 = arith.addf %109, %157 : vector<40x128xf32>
    %c0_62 = arith.constant 0 : index
    %c0_63 = arith.constant 0 : index
    %159 = vector.load %arg8[%c0_62, %c0_63] : memref<40x128xf32, #tpu.memory_space<vmem>>, vector<40x128xf32>
    tpu.vector_store %arg8[%c0_62, %c0_63], %158 {strides = array<i32>} : memref<40x128xf32, #tpu.memory_space<vmem>>, vector<40x128xf32>,
    %c1_i32 = arith.constant 1 : i32
    %160 = arith.cmpi eq, %arg0, %c1_i32 : i32
    %161 = arith.extui %160 : i1 to i32
    %c0_i32_64 = arith.constant 0 : i32
    %162 = arith.cmpi ne, %161, %c0_i32_64 : i32
    scf.if %162 {
      %163 = vector.extract_strided_slice %158 {offsets = [0, 0], sizes = [8, 128], strides = [1, 1]} : vector<40x128xf32> to vector<8x128xf32>
      %c210 = arith.constant 210 : index
      %c0_65 = arith.constant 0 : index
      %164 = vector.load %arg2[%c210, %c0_65] : memref<344x128xf32, #tpu.memory_space<vmem>>, vector<1x128xf32>
      %c211 = arith.constant 211 : index
      %c0_66 = arith.constant 0 : index
      %165 = vector.load %arg2[%c211, %c0_66] : memref<344x128xf32, #tpu.memory_space<vmem>>, vector<1x128xf32>
      %cst_67 = arith.constant dense<0.000000e+00> : vector<8xf32>
      %166 = vector.multi_reduction <add>, %163, %cst_67 [1] : vector<8x128xf32> to vector<8xf32>
      %167 = vector.shape_cast %166 : vector<8xf32> to vector<8x1xf32>
      %cst_68 = arith.constant 1.280000e+02 : f32
      %168 = vector.broadcast %cst_68 : f32 to vector<8x1xf32>
      %169 = arith.divf %167, %168 : vector<8x1xf32>
      %170 = vector.broadcast %169 : vector<8x1xf32> to vector<8x128xf32>
      %171 = arith.subf %163, %170 : vector<8x128xf32>
      %172 = arith.mulf %171, %171 : vector<8x128xf32>
      %cst_69 = arith.constant dense<0.000000e+00> : vector<8xf32>
      %173 = vector.multi_reduction <add>, %172, %cst_69 [1] : vector<8x128xf32> to vector<8xf32>
      %174 = vector.shape_cast %173 : vector<8xf32> to vector<8x1xf32>
      %cst_70 = arith.constant 1.280000e+02 : f32
      %175 = vector.broadcast %cst_70 : f32 to vector<8x1xf32>
      %176 = arith.divf %174, %175 : vector<8x1xf32>
      %177 = vector.broadcast %169 : vector<8x1xf32> to vector<8x128xf32>
      %178 = arith.subf %163, %177 : vector<8x128xf32>
      %cst_71 = arith.constant 9.99999974E-6 : f32
      %179 = vector.broadcast %cst_71 : f32 to vector<8x1xf32>
      %180 = arith.addf %176, %179 : vector<8x1xf32>
      %181 = math.rsqrt %180 : vector<8x1xf32>
      %182 = vector.broadcast %181 : vector<8x1xf32> to vector<8x128xf32>
      %183 = arith.mulf %178, %182 : vector<8x128xf32>
      %184 = vector.broadcast %164 : vector<1x128xf32> to vector<8x128xf32>
      %185 = arith.mulf %183, %184 : vector<8x128xf32>
      %186 = vector.broadcast %165 : vector<1x128xf32> to vector<8x128xf32>
      %187 = arith.addf %185, %186 : vector<8x128xf32>
      %c216 = arith.constant 216 : index
      %c0_72 = arith.constant 0 : index
      %188 = vector.load %arg2[%c216, %c0_72] : memref<344x128xf32, #tpu.memory_space<vmem>>, vector<128x128xf32>
      %cst_73 = arith.constant dense<0.000000e+00> : vector<8x128xf32>
      %189 = tpu.matmul %187, %188, %cst_73 {dimension_numbers = #tpu.dot_dimension_numbers<[1], [0], [0], [1], [0, 0, 1, 1], [], []>} : vector<8x128xf32>, vector<128x128xf32>, vector<8x128xf32> -> vector<8x128xf32>
      %c212 = arith.constant 212 : index
      %c0_74 = arith.constant 0 : index
      %190 = vector.load %arg2[%c212, %c0_74] : memref<344x128xf32, #tpu.memory_space<vmem>>, vector<1x128xf32>
      %191 = vector.broadcast %190 : vector<1x128xf32> to vector<8x128xf32>
      %192 = arith.addf %189, %191 : vector<8x128xf32>
      %c0_75 = arith.constant 0 : index
      %c0_76 = arith.constant 0 : index
      %193 = vector.load %arg7[%c0_75, %c0_76] : memref<8x128xf32, #tpu.memory_space<vmem>>, vector<8x128xf32>
      tpu.vector_store %arg7[%c0_75, %c0_76], %192 {strides = array<i32>} : memref<8x128xf32, #tpu.memory_space<vmem>>, vector<8x128xf32>,
    } else {
    }
    return
  }
  func.func @transform_0(%arg0: i32) -> (i32, i32) {
    %c0_i32 = arith.constant 0 : i32
    %c0_i32_0 = arith.constant 0 : i32
    %c0_i32_1 = arith.constant 0 : i32
    return %c0_i32, %c0_i32_0 : i32, i32
  }
  func.func @transform_1(%arg0: i32) -> (i32, i32) {
    %c0_i32 = arith.constant 0 : i32
    %c0_i32_0 = arith.constant 0 : i32
    %c0_i32_1 = arith.constant 0 : i32
    return %c0_i32, %c0_i32_0 : i32, i32
  }
  func.func @transform_2(%arg0: i32) -> (i32, i32) {
    %c0_i32 = arith.constant 0 : i32
    %c0_i32_0 = arith.constant 0 : i32
    %c0_i32_1 = arith.constant 0 : i32
    return %c0_i32, %c0_i32_0 : i32, i32
  }
  func.func @transform_3(%arg0: i32) -> (i32, i32, i32) {
    %c0_i32 = arith.constant 0 : i32
    %c0_i32_0 = arith.constant 0 : i32
    %c0_i32_1 = arith.constant 0 : i32
    return %arg0, %c0_i32, %c0_i32_0 : i32, i32, i32
  }
  func.func @transform_4(%arg0: i32) -> (i32, i32, i32) {
    %c0_i32 = arith.constant 0 : i32
    %c0_i32_0 = arith.constant 0 : i32
    %c0_i32_1 = arith.constant 0 : i32
    return %arg0, %c0_i32, %c0_i32_0 : i32, i32, i32
  }
  func.func @transform_5(%arg0: i32) -> (i32, i32, i32) {
    %c0_i32 = arith.constant 0 : i32
    %c0_i32_0 = arith.constant 0 : i32
    %c0_i32_1 = arith.constant 0 : i32
    return %arg0, %c0_i32, %c0_i32_0 : i32, i32, i32
  }
  func.func @transform_6(%arg0: i32) -> (i32, i32) {
    %c0_i32 = arith.constant 0 : i32
    %c0_i32_0 = arith.constant 0 : i32
    %c0_i32_1 = arith.constant 0 : i32
    return %c0_i32, %c0_i32_0 : i32, i32
  }
}

</mosaic_0001>

<bundles_post_ra>
// kernel: forward.1
= control target key start
LH: loop header
LB: loop body
LE: loop exit
PB: predicated region body
PF: predicated region fallthrough
CT: control target
= control target key end

     0   :  { %s3715_s21 = smov 0   ;;  %s5651_s0 = inlined_call_operand.vmem [shape: f32[32,192], index: 0, kind: input, shape index: {}]   ;;  %s5652_s1 = inlined_call_operand.vmem [shape: f32[344,128], index: 1, kind: input, shape index: {}]   ;;  %s5653_s2 = inlined_call_operand.vmem [shape: f32[40,40], index: 2, kind: input, shape index: {}]   ;;  %s5654_s3 = inlined_call_operand.vmem [shape: f32[2,128,384], index: 3, kind: input, shape index: {}]   ;;  %s5655_s4 = inlined_call_operand.vmem [shape: f32[2,136,512], index: 4, kind: input, shape index: {}]   ;;  %s5656_s5 = inlined_call_operand.vmem [shape: f32[2,648,128], index: 5, kind: input, shape index: {}]   ;;  %s5657_s6 = inlined_call_operand.vmem [shape: f32[8,128], index: 6, kind: output, shape index: {}]  }
   0x1 LB: > { %s3721_s22 = sadd.s32 4294967295, %s3674_s21   ;;  %p3333_p0 = scmp.ge.s32.totalorder %s3674_s21, 1  ;;  %s3674_s21 = sphi %s3715_s21, %s16_s21  }
   0x2   : > { %p227_p1 = scmp.lt.s32.totalorder %s3674_s21, 3 }
   0x4   : > { %p228_p2 = pnand %p3333_p0, %p227_p1 }
   0x6   : > { %231 = sbr.rel (%p228_p2) target bundleno = 2767 (0xacf), region = 44 }
   0xb   : > { %p262_p3 = scmp.lt.s32.totalorder %s3721_s22, 1  ;;  %p3337_p4 = scmp.ne.s32.totalorder %s3721_s22, 0 }
   0xd   : > { %s263_s23 = scalar_select %p262_p3, %s3721_s22, 1 }
   0xf   : > { %s3458_s24 = smul.u32 384, %s263_s23 }
  0x10   : > { %s3459_s25 = smul.u32 544, %s263_s23 }
  0x11   : > { %s3730_s28 = scalar_lea.vmem %s5654_s3, %s3458_s24  ;;  %s3460_s29 = smul.u32 648, %s263_s23 }
  0x12   : > { %s3735_s8 = scalar_lea.vmem %s5655_s4, %s3459_s25  ;;  %280 = sbr.rel (%p3337_p4) target bundleno = 203 (0xcb), region = 48 }
  0x13   : > { %s3740_s11 = scalar_lea.vmem %s5656_s5, %s3460_s29 }
  0x17   : > { %v296_v0 = vld [vmem:[%s5652_s1 + $0x78] sm:$0xff]  ;;  %v295_v1 = vld [vmem:[%s5652_s1 + $0x70] sm:$0xff]  ;;  %v294_v2 = vld [vmem:[%s5652_s1 + $0x68] sm:$0xff]  ;;  %vm318_vm0 = vcmask 523264   ;;  %v393_v32 = vlaneseq }
  0x18   : > { %331 = vmatpush.msra.mxu0 %v296_v0  ;;  %3426 = vmatpush.msra.mxu2 %v296_v0  ;;  %v304_v3 = vld [vmem:[%s5652_s1 + $0xb8] sm:$0xff]  ;;  %v303_v4 = vld [vmem:[%s5652_s1 + $0xb0] sm:$0xff]  ;;  %v293_v5 = vld [vmem:[%s5652_s1 + $0x60] sm:$0xff] }
  0x19   : > { %3427 = vmatpush.msra.mxu3 %v296_v0  ;;  %368 = vmatpush.msra.mxu1 %v304_v3  ;;  %v302_v6 = vld [vmem:[%s5652_s1 + $0xa8] sm:$0xff]  ;;  %v292_v7 = vld [vmem:[%s5652_s1 + $0x58] sm:$0xff]  ;;  %v301_v8 = vld [vmem:[%s5652_s1 + $0xa0] sm:$0xff]  ;;  %v394_v33 = vshrl.u32 %v393_v32, 7 }
  0x1a   : > { %332 = vmatpush.msra.mxu0 %v295_v1  ;;  %3428 = vmatpush.msra.mxu2 %v295_v1  ;;  %v291_v9 = vld [vmem:[%s5652_s1 + $0x50] sm:$0xff]  ;;  %v300_v10 = vld [vmem:[%s5652_s1 + $0x98] sm:$0xff]  ;;  %v290_v11 = vld [vmem:[%s5652_s1 + $0x48] sm:$0xff] }
  0x1b   : > { %3429 = vmatpush.msra.mxu3 %v295_v1  ;;  %369 = vmatpush.msra.mxu1 %v303_v4  ;;  %v299_v12 = vld [vmem:[%s5652_s1 + $0x90] sm:$0xff]  ;;  %v289_v13 = vld [vmem:[%s5652_s1 + $0x40] sm:$0xff]  ;;  %v298_v14 = vld [vmem:[%s5652_s1 + $0x88] sm:$0xff]  ;;  %vm395_vm1 = vcmp.lt.s32.totalorder %v394_v33, 2 }
  0x1c   : > { %333 = vmatpush.msra.mxu0 %v294_v2  ;;  %3430 = vmatpush.msra.mxu2 %v294_v2  ;;  %v288_v15 = vld [vmem:[%s5652_s1 + $0x38] sm:$0xff]  ;;  %v297_v16 = vld [vmem:[%s5652_s1 + $0x80] sm:$0xff]  ;;  %v287_v17 = vld [vmem:[%s5652_s1 + $0x30] sm:$0xff] }
  0x1d   : > { %3431 = vmatpush.msra.mxu3 %v294_v2  ;;  %370 = vmatpush.msra.mxu1 %v302_v6  ;;  %v310_v18 = vld [vmem:[%s5651_s0 + $0x8] sm:$0xff]  ;;  %v285_v20 = vld [vmem:[%s5652_s1 + $0x20] sm:$0xff]  ;;  %v284_v21 = vld [vmem:[%s5652_s1 + $0x18] sm:$0xff] }
  0x1e   : > { %334 = vmatpush.msra.mxu0 %v293_v5  ;;  %3432 = vmatpush.msra.mxu2 %v293_v5  ;;  %v286_v19 = vld [vmem:[%s5652_s1 + $0x28] sm:$0xff]  ;;  %v283_v22 = vld [vmem:[%s5652_s1 + $0x10] sm:$0xff]  ;;  %v312_v23 = vld [vmem:[%s5651_s0 + $0x18] sm:$0xff] }
  0x1f   : > { %3433 = vmatpush.msra.mxu3 %v293_v5  ;;  %371 = vmatpush.msra.mxu1 %v301_v8  ;;  %v282_v24 = vld [vmem:[%s5652_s1 + $0x8] sm:$0xff]  ;;  %v281_v25 = vld [vmem:[%s5652_s1] sm:$0xff]  ;;  %v311_v27 = vld [vmem:[%s5651_s0 + $0x10] sm:$0xff] }
  0x20   : > { %335 = vmatpush.msra.mxu0 %v292_v7  ;;  %3434 = vmatpush.msra.mxu2 %v292_v7  ;;  %v309_v26 = vld [vmem:[%s5651_s0] sm:$0xff]  ;;  %v314_v29 = vld [vmem:[%s5651_s0 + $0x28] sm:$0xff]  ;;  %v315_v30 = vld [vmem:[%s5651_s0 + $0x30] sm:$0xff] }
  0x21   : > { %3435 = vmatpush.msra.mxu3 %v292_v7  ;;  %372 = vmatpush.msra.mxu1 %v300_v10  ;;  %v313_v28 = vld [vmem:[%s5651_s0 + $0x20] sm:$0xff]  ;;  %v316_v31 = vld [vmem:[%s5651_s0 + $0x38] sm:$0xff]  ;;  %v3474_v35 = vld [vmem:[%s5652_s1 + $0xd1] ss:$0 sm:$0xff] }
  0x22   : > { %336 = vmatpush.msra.mxu0 %v291_v9  ;;  %3436 = vmatpush.msra.mxu2 %v291_v9  ;;  %v397_v36 = vsel %vm395_vm1, %v3474_v35, 0.0  ;;  %v3473_v38 = vld [vmem:[%s5652_s1 + $0xd0] ss:$0 sm:$0xff]  ;;  %v306_v41 = vld [vmem:[%s5652_s1 + $0xc0] sm:$0xff]  ;;  %v307_v49 = vld [vmem:[%s5652_s1 + $0xc8] sm:$0xff] }
  0x23   : > { %3437 = vmatpush.msra.mxu3 %v291_v9  ;;  %373 = vmatpush.msra.mxu1 %v299_v12  ;;  %398 = vst [vmem:[#allocation2 + $0x8] sm:$0xff] %v397_v36 }
  0x24   : > { %337 = vmatpush.msra.mxu0 %v290_v11  ;;  %3438 = vmatpush.msra.mxu2 %v290_v11 }
  0x25   : > { %3439 = vmatpush.msra.mxu3 %v290_v11  ;;  %374 = vmatpush.msra.mxu1 %v298_v14 }
  0x26   : > { %338 = vmatpush.msra.mxu0 %v289_v13  ;;  %3440 = vmatpush.msra.mxu2 %v289_v13 }
  0x27   : > { %3441 = vmatpush.msra.mxu3 %v289_v13  ;;  %375 = vmatpush.msra.mxu1 %v297_v16 }
  0x28   : > { %339 = vmatpush.msra.mxu0 %v288_v15  ;;  %3442 = vmatpush.msra.mxu2 %v288_v15 }
  0x29   : > { %3443 = vmatpush.msra.mxu3 %v288_v15  ;;  %3338 = vmatmul.msk.f32.vlgmr.msra.gmra.mxu1 %vm318_vm0, %v310_v18 }
  0x2a   : > { %340 = vmatpush.msra.mxu0 %v287_v17  ;;  %3444 = vmatpush.msra.mxu2 %v287_v17 }
  0x2b   : > { %3445 = vmatpush.msra.mxu3 %v287_v17 }
  0x2c   : > { %341 = vmatpush.msra.mxu0 %v286_v19  ;;  %3446 = vmatpush.msra.mxu2 %v286_v19 }
  0x2d   : > { %3447 = vmatpush.msra.mxu3 %v286_v19 }
  0x2e   : > { %342 = vmatpush.msra.mxu0 %v285_v20  ;;  %3448 = vmatpush.msra.mxu2 %v285_v20 }
  0x2f   : > { %3449 = vmatpush.msra.mxu3 %v285_v20 }
  0x30   : > { %343 = vmatpush.msra.mxu0 %v284_v21  ;;  %3450 = vmatpush.msra.mxu2 %v284_v21 }
  0x31   : > { %3451 = vmatpush.msra.mxu3 %v284_v21  ;;  %3339 = vmatmul.msk.f32.gmra.mxu1 %vm318_vm0, %v312_v23 }
  0x32   : > { %344 = vmatpush.msra.mxu0 %v283_v22  ;;  %3452 = vmatpush.msra.mxu2 %v283_v22 }
  0x33   : > { %3453 = vmatpush.msra.mxu3 %v283_v22 }
  0x34   : > { %345 = vmatpush.msra.mxu0 %v282_v24  ;;  %3454 = vmatpush.msra.mxu2 %v282_v24 }
  0x35   : > { %3455 = vmatpush.msra.mxu3 %v282_v24 }
  0x36   : > { %346 = vmatpush.msra.mxu0 %v281_v25  ;;  %3456 = vmatpush.msra.mxu2 %v281_v25 }
  0x37   : > { %3457 = vmatpush.msra.mxu3 %v281_v25  ;;  %347 = vmatmul.f32.vlgmr.msra.gmra.mxu0 %v309_v26 }
  0x38   : > { %350 = vmatmul.f32.vlgmr.msra.gmra.mxu2 %v311_v27  ;;  %353 = vmatmul.f32.vlgmr.msra.gmra.mxu3 %v313_v28 }
  0x39   : > { %3340 = vmatmul.msk.f32.gmra.mxu1 %vm318_vm0, %v314_v29 }
  0x40   : > { %356 = vmatmul.f32.gmra.mxu3 %v315_v30 }
  0x41   : > { %3341 = vmatmul.msk.f32.gmra.mxu1 %vm318_vm0, %v316_v31 }
  0xa6   : > { %v377_v34 = vpop.f32.mrf.mxu1 }
  0xae   : > { %v380_v37 = vpop.f32.mrf.mxu1 }
  0xb4   : > { %v348_v39 = vpop.f32.mrf.mxu0 }
  0xb5   : > { %v349_v40 = vadd.f32 %v3473_v38, %v348_v39 }
  0xb6   : > { %v383_v43 = vpop.f32.mrf.mxu1 }
  0xb7   : > { %v378_v42 = vadd.f32 %v377_v34, %v349_v40 }
  0xb9   : > { %v389_v44 = vadd.f32 %v378_v42, %v306_v41 }
  0xbb   : > { %v351_v45 = vpop.f32.mrf.mxu2  ;;  %v354_v46 = vpop.f32.mrf.mxu3  ;;  %399 = vst [vmem:[#allocation2] sm:$0xff] %v389_v44 }
  0xbc   : > { %v352_v47 = vadd.f32 %v3473_v38, %v351_v45  ;;  %v355_v48 = vadd.f32 %v3473_v38, %v354_v46 }
  0xbe   : > { %v381_v50 = vadd.f32 %v380_v37, %v352_v47  ;;  %v384_v51 = vadd.f32 %v383_v43, %v355_v48  ;;  %v386_v55 = vpop.f32.mrf.mxu1 }
  0xc0   : > { %v391_v52 = vadd.f32 %v384_v51, %v306_v41  ;;  %v390_v53 = vadd.f32 %v381_v50, %v307_v49 }
  0xc2   : > { %401 = vst [vmem:[#allocation2 + $0x10] sm:$0xff] %v391_v52 }
  0xc3   : > { %v357_v54 = vpop.f32.mrf.mxu3  ;;  %400 = vst [vmem:[#allocation2 + $0x20] sm:$0xff] %v390_v53 }
  0xc4   : > { %v358_v56 = vadd.f32 %v3473_v38, %v357_v54 }
  0xc6   : > { %v387_v57 = vadd.f32 %v386_v55, %v358_v56 }
  0xc8   : > { %v392_v58 = vadd.f32 %v387_v57, %v307_v49 }
  0xca   : > { %402 = vst [vmem:[#allocation2 + $0x18] sm:$0xff] %v392_v58 }
  0xcb PF: > { %v405_v59 = vld [vmem:[#allocation2 + $0x20] sm:$0xff]  ;;  %v403_v60 = vld [vmem:[#allocation2 + $0x8] sm:$0xff]  ;;  %v406_v62 = vld [vmem:[#allocation2 + $0x10] sm:$0xff]  ;;  %v3676_v0 = vmov 128.0   ;;  %s3678_s30 = smov 64   ;;  %s3679_s7 = smov 32  }
  0xcc   : > { %414 = vadd.xlane.f32.xlu1 %v405_v59  ;;  %410 = vadd.xlane.f32.xlu0 %v403_v60  ;;  %v404_v63 = vld [vmem:[#allocation2] sm:$0xff]  ;;  %3516 = vrcp.f32 %v3676_v0  ;;  %v574_v5 = vld [vmem:[%s3730_s28 + $0x168] sm:$0xff]  ;;  %v575_v6 = vld [vmem:[%s3730_s28 + $0x170] sm:$0xff]  ;;  %p3423_p5 = scmp.ne.s32.totalorder %s3721_s22, 1 }
  0xcd   : > { %v576_v7 = vld [vmem:[%s3730_s28 + $0x178] sm:$0xff]  ;;  %577 = vmatpush.msra.mxu0 %v574_v5  ;;  %609 = vmatpush.msra.mxu1 %v575_v6  ;;  %v571_v8 = vld [vmem:[%s3730_s28 + $0x150] sm:$0xff]  ;;  %v573_v10 = vld [vmem:[%s3730_s28 + $0x160] sm:$0xff] }
  0xce   : > { %v572_v9 = vld [vmem:[%s3730_s28 + $0x158] sm:$0xff]  ;;  %641 = vmatpush.msra.mxu2 %v576_v7  ;;  %v569_v34 = vld [vmem:[%s3730_s28 + $0x140] sm:$0xff]  ;;  %v570_v35 = vld [vmem:[%s3730_s28 + $0x148] sm:$0xff] }
  0xcf   : > { %578 = vmatpush.msra.mxu0 %v571_v8  ;;  %610 = vmatpush.msra.mxu1 %v572_v9  ;;  %v568_v33 = vld [vmem:[%s3730_s28 + $0x138] sm:$0xff]  ;;  %v565_v36 = vld [vmem:[%s3730_s28 + $0x120] sm:$0xff]  ;;  %v566_v37 = vld [vmem:[%s3730_s28 + $0x128] sm:$0xff] }
  0xd0   : > { %642 = vmatpush.msra.mxu2 %v573_v10  ;;  %v567_v38 = vld [vmem:[%s3730_s28 + $0x130] sm:$0xff]  ;;  %v562_v39 = vld [vmem:[%s3730_s28 + $0x108] sm:$0xff]  ;;  %v564_v41 = vld [vmem:[%s3730_s28 + $0x118] sm:$0xff] }
  0xd1   : > { %v407_v61 = vld [vmem:[#allocation2 + $0x18] sm:$0xff]  ;;  %579 = vmatpush.msra.mxu0 %v568_v33  ;;  %611 = vmatpush.msra.mxu1 %v569_v34  ;;  %v563_v40 = vld [vmem:[%s3730_s28 + $0x110] sm:$0xff]  ;;  %v561_v44 = vld [vmem:[%s3730_s28 + $0x100] sm:$0xff] }
  0xd2   : > { %418 = vadd.xlane.f32.xlu2 %v407_v61  ;;  %v3517_v1 = vpop.eup %3516  ;;  %643 = vmatpush.msra.mxu2 %v570_v35  ;;  %v559_v42 = vld [vmem:[%s3730_s28 + $0xf0] sm:$0xff]  ;;  %v560_v43 = vld [vmem:[%s3730_s28 + $0xf8] sm:$0xff]  ;;  %v557_v46 = vld [vmem:[%s3730_s28 + $0xe0] sm:$0xff] }
  0xd3   : > { %v421_v2 = vmul.f32 128.0, %v3517_v1  ;;  %vm425_vm2 = vweird.f32 %v3517_v1  ;;  %580 = vmatpush.msra.mxu0 %v565_v36  ;;  %612 = vmatpush.msra.mxu1 %v566_v37  ;;  %v556_v45 = vld [vmem:[%s3730_s28 + $0xd8] sm:$0xff]  ;;  %v558_v47 = vld [vmem:[%s3730_s28 + $0xe8] sm:$0xff]  ;;  %v553_v48 = vld [vmem:[%s3730_s28 + $0xc0] sm:$0xff] }
  0xd4   : > { %416 = vadd.xlane.f32.xlu1 %v406_v62  ;;  %412 = vadd.xlane.f32.xlu0 %v404_v63  ;;  %v554_v49 = vld [vmem:[%s3730_s28 + $0xc8] sm:$0xff]  ;;  %v555_v50 = vld [vmem:[%s3730_s28 + $0xd0] sm:$0xff]  ;;  %v552_v53 = vld [vmem:[%s3730_s28 + $0xb8] sm:$0xff] }
  0xd5   : > { %v422_v3 = vsub.f32 1.0, %v421_v2  ;;  %644 = vmatpush.msra.mxu2 %v567_v38  ;;  %581 = vmatpush.msra.mxu0 %v562_v39  ;;  %v550_v51 = vld [vmem:[%s3730_s28 + $0xa8] sm:$0xff]  ;;  %v551_v52 = vld [vmem:[%s3730_s28 + $0xb0] sm:$0xff]  ;;  %v548_v55 = vld [vmem:[%s3730_s28 + $0x98] sm:$0xff] }
  0xd6   : > { %613 = vmatpush.msra.mxu1 %v563_v40  ;;  %v547_v54 = vld [vmem:[%s3730_s28 + $0x90] sm:$0xff]  ;;  %v549_v56 = vld [vmem:[%s3730_s28 + $0xa0] sm:$0xff]  ;;  %v544_v57 = vld [vmem:[%s3730_s28 + $0x78] sm:$0xff] }
  0xd7   : > { %v423_v4 = vmul.f32 %v3517_v1, %v422_v3  ;;  %645 = vmatpush.msra.mxu2 %v564_v41  ;;  %582 = vmatpush.msra.mxu0 %v559_v42  ;;  %v545_v58 = vld [vmem:[%s3730_s28 + $0x80] sm:$0xff]  ;;  %v539_v0 = vld [vmem:[%s3730_s28 + $0x50] sm:$0xff]  ;;  %v536_v3 = vld [vmem:[%s3730_s28 + $0x38] sm:$0xff] }
  0xd8   : > { %614 = vmatpush.msra.mxu1 %v560_v43  ;;  %v535_v2 = vld [vmem:[%s3730_s28 + $0x30] sm:$0xff]  ;;  %v532_v5 = vld [vmem:[%s3730_s28 + $0x18] sm:$0xff]  ;;  %v533_v6 = vld [vmem:[%s3730_s28 + $0x20] sm:$0xff] }
  0xd9   : > { %v424_v11 = vadd.f32 %v3517_v1, %v423_v4  ;;  %646 = vmatpush.msra.mxu2 %v561_v44  ;;  %583 = vmatpush.msra.mxu0 %v556_v45  ;;  %v537_v4 = vld [vmem:[%s3730_s28 + $0x40] sm:$0xff]  ;;  %v534_v7 = vld [vmem:[%s3730_s28 + $0x28] sm:$0xff]  ;;  %v531_v10 = vld [vmem:[%s3730_s28 + $0x10] sm:$0xff] }
  0xda   : > { %615 = vmatpush.msra.mxu1 %v557_v46  ;;  %v529_v8 = vld [vmem:[%s3730_s28] sm:$0xff]  ;;  %v530_v9 = vld [vmem:[%s3730_s28 + $0x8] sm:$0xff] }
  0xdb   : > { %v3861_v12 = vsel %vm425_vm2, %v3517_v1, %v424_v11  ;;  %647 = vmatpush.msra.mxu2 %v558_v47  ;;  %584 = vmatpush.msra.mxu0 %v553_v48  ;;  %v540_v1 = vld [vmem:[%s3730_s28 + $0x58] sm:$0xff]  ;;  %v3510_v46 = vld [vmem:[%s3740_s11 + $0x280] ss:$0 sm:$0xff]  ;;  %vm678_vm2 = vcmask 261120  }
  0xdc   : > { %5668 = vst [vmem:[#allocation3_spill] sm:$0xff] %v3861_v12  ;;  %616 = vmatpush.msra.mxu1 %v554_v49 }
  0xdd   : > { %648 = vmatpush.msra.mxu2 %v555_v50  ;;  %585 = vmatpush.msra.mxu0 %v550_v51  ;;  %v3511_v50 = vld [vmem:[%s3740_s11 + $0x281] ss:$0 sm:$0xff] }
  0xde   : > { %617 = vmatpush.msra.mxu1 %v551_v52 }
  0xdf   : > { %649 = vmatpush.msra.mxu2 %v552_v53  ;;  %586 = vmatpush.msra.mxu0 %v547_v54 }
  0xe0   : > { %618 = vmatpush.msra.mxu1 %v548_v55 }
  0xe1   : > { %650 = vmatpush.msra.mxu2 %v549_v56  ;;  %587 = vmatpush.msra.mxu0 %v544_v57 }
  0xe2   : > { %619 = vmatpush.msra.mxu1 %v545_v58 }
 0x13f   : > { %v415_v13 = vpop.xlane.xlu1 %414  ;;  %v411_v14 = vpop.xlane.xlu0 %410 }
 0x140   : > { %v429_v15 = vmul.f32 %v3861_v12, %v415_v13  ;;  %v427_v16 = vmul.f32 %v3861_v12, %v411_v14 }
 0x142   : > { %v3865_v17 = vsub.f32 %v405_v59, %v429_v15  ;;  %v3867_v18 = vsub.f32 %v403_v60, %v427_v16  ;;  %v546_v59 = vld [vmem:[%s3730_s28 + $0x88] sm:$0xff]  ;;  %v541_v60 = vld [vmem:[%s3730_s28 + $0x60] sm:$0xff] }
 0x143   : > { %651 = vmatpush.msra.mxu2 %v546_v59  ;;  %588 = vmatpush.msra.mxu0 %v541_v60 }
 0x144   : > { %v439_v19 = vmul.f32 %v3865_v17, %v3865_v17  ;;  %v437_v20 = vmul.f32 %v3867_v18, %v3867_v18 }
 0x145   : > { %v419_v21 = vpop.xlane.xlu2 %418 }
 0x146   : > { %446 = vadd.xlane.f32.xlu1 %v439_v19  ;;  %442 = vadd.xlane.f32.xlu2 %v437_v20  ;;  %v431_v28 = vmul.f32 %v3861_v12, %v419_v21 }
 0x147   : > { %v417_v22 = vpop.xlane.xlu1 %416  ;;  %v413_v23 = vpop.xlane.xlu0 %412 }
 0x148   : > { %v430_v24 = vmul.f32 %v3861_v12, %v417_v22  ;;  %v428_v25 = vmul.f32 %v3861_v12, %v413_v23  ;;  %v3884_v31 = vsub.f32 %v407_v61, %v431_v28  ;;  %v542_v61 = vld [vmem:[%s3730_s28 + $0x68] sm:$0xff] }
 0x149   : > { %620 = vmatpush.msra.mxu1 %v542_v61 }
 0x14a   : > { %v3875_v26 = vsub.f32 %v406_v62, %v430_v24  ;;  %v3877_v27 = vsub.f32 %v404_v63, %v428_v25  ;;  %v441_v32 = vmul.f32 %v3884_v31, %v3884_v31  ;;  %v543_v62 = vld [vmem:[%s3730_s28 + $0x70] sm:$0xff]  ;;  %v538_v63 = vld [vmem:[%s3730_s28 + $0x48] sm:$0xff]  ;;  %s3677_s28 = smov 96  }
 0x14b   : > { %652 = vmatpush.msra.mxu2 %v543_v62  ;;  %589 = vmatpush.msra.mxu0 %v538_v63 }
 0x14c   : > { %v440_v29 = vmul.f32 %v3875_v26, %v3875_v26  ;;  %v438_v30 = vmul.f32 %v3877_v27, %v3877_v27  ;;  %621 = vmatpush.msra.mxu1 %v539_v0 }
 0x14d   : > { %653 = vmatpush.msra.mxu2 %v540_v1  ;;  %590 = vmatpush.msra.mxu0 %v535_v2 }
 0x14e   : > { %448 = vadd.xlane.f32.xlu2 %v440_v29  ;;  %444 = vadd.xlane.f32.xlu0 %v438_v30 }
 0x14f   : > { %622 = vmatpush.msra.mxu1 %v536_v3  ;;  %654 = vmatpush.msra.mxu2 %v537_v4 }
 0x150   : > { %591 = vmatpush.msra.mxu0 %v532_v5 }
 0x151   : > { %623 = vmatpush.msra.mxu1 %v533_v6  ;;  %655 = vmatpush.msra.mxu2 %v534_v7 }
 0x152   : > { %592 = vmatpush.msra.mxu0 %v529_v8 }
 0x153   : > { %624 = vmatpush.msra.mxu1 %v530_v9  ;;  %656 = vmatpush.msra.mxu2 %v531_v10 }
 0x156   : > { %450 = vadd.xlane.f32.xlu0 %v441_v32 }
 0x1b9   : > { %v447_v11 = vpop.xlane.xlu1 %446  ;;  %v443_v13 = vpop.xlane.xlu2 %442 }
 0x1ba   : > { %v454_v14 = vmul.f32 %v447_v11, %v3861_v12  ;;  %v452_v15 = vmul.f32 %v443_v13, %v3861_v12 }
 0x1bc   : > { %v459_v16 = vadd.f32 1e-05, %v454_v14  ;;  %v457_v19 = vadd.f32 1e-05, %v452_v15 }
 0x1be   : > { %3518 = vrsqrt.f32 %v459_v16  ;;  %vm468_vm4 = vweird.f32 %v457_v19  ;;  %vm488_vm6 = vweird.f32 %v459_v16 }
 0x1bf   : > { %3520 = vrsqrt.f32 %v457_v19 }
 0x1c1   : > { %v449_v20 = vpop.xlane.xlu2 %448  ;;  %v445_v21 = vpop.xlane.xlu0 %444 }
 0x1c2   : > { %v455_v22 = vmul.f32 %v449_v20, %v3861_v12  ;;  %v453_v23 = vmul.f32 %v445_v21, %v3861_v12 }
 0x1c4   : > { %v3519_v24 = vpop.eup %3518  ;;  %v460_v25 = vadd.f32 1e-05, %v455_v22  ;;  %v458_v28 = vadd.f32 1e-05, %v453_v23 }
 0x1c5   : > { %v3521_v29 = vpop.eup %3520  ;;  %v483_v30 = vmul.f32 %v3519_v24, %v459_v16  ;;  %vm489_vm7 = vweird.f32 %v3519_v24 }
 0x1c6   : > { %v463_v32 = vmul.f32 %v3521_v29, %v457_v19  ;;  %3522 = vrsqrt.f32 %v460_v25  ;;  %vm469_vm3 = vweird.f32 %v3521_v29  ;;  %vm478_vm9 = vweird.f32 %v458_v28  ;;  %vm3938_vm10 = vmor %vm488_vm6, %vm489_vm7 }
 0x1c7   : > { %3524 = vrsqrt.f32 %v458_v28  ;;  %v484_v34 = vmul.f32 %v3519_v24, %v483_v30  ;;  %vm470_vm5 = vmor %vm468_vm4, %vm469_vm3  ;;  %vm498_vm12 = vweird.f32 %v460_v25  ;;  %vm741_vm3 = vcmask 326656  }
 0x1c8   : > { %v464_v33 = vmul.f32 %v3521_v29, %v463_v32 }
 0x1c9   : > { %v451_v35 = vpop.xlane.xlu0 %450  ;;  %v485_v42 = vmul.f32 0.5, %v484_v34 }
 0x1ca   : > { %v465_v36 = vmul.f32 0.5, %v464_v33  ;;  %v456_v37 = vmul.f32 %v451_v35, %v3861_v12 }
 0x1cb   : > { %v486_v51 = vsub.f32 1.5, %v485_v42 }
 0x1cc   : > { %v3523_v38 = vpop.eup %3522  ;;  %v466_v39 = vsub.f32 1.5, %v465_v36  ;;  %v461_v40 = vadd.f32 1e-05, %v456_v37 }
 0x1cd   : > { %v3525_v41 = vpop.eup %3524  ;;  %v493_v44 = vmul.f32 %v3523_v38, %v460_v25  ;;  %v487_v58 = vmul.f32 %v3519_v24, %v486_v51  ;;  %vm499_vm13 = vweird.f32 %v3523_v38 }
 0x1ce   : > { %v467_v43 = vmul.f32 %v3521_v29, %v466_v39  ;;  %v473_v45 = vmul.f32 %v3525_v41, %v458_v28  ;;  %3526 = vrsqrt.f32 %v461_v40  ;;  %vm479_vm8 = vweird.f32 %v3525_v41  ;;  %vm500_vm14 = vmor %vm498_vm12, %vm499_vm13 }
 0x1cf   : > { %v494_v52 = vmul.f32 %v3523_v38, %v493_v44  ;;  %vm480_vm11 = vmor %vm478_vm9, %vm479_vm8  ;;  %v491_v0 = vsel %vm3938_vm10, %v3519_v24, %v487_v58  ;;  %vm508_vm15 = vweird.f32 %v461_v40 }
 0x1d0   : > { %v471_v47 = vsel %vm470_vm5, %v3521_v29, %v467_v43  ;;  %v474_v48 = vmul.f32 %v3525_v41, %v473_v45  ;;  %v514_v5 = vmul.f32 %v491_v0, %v3865_v17 }
 0x1d1   : > { %v512_v49 = vmul.f32 %v471_v47, %v3867_v18  ;;  %v495_v60 = vmul.f32 0.5, %v494_v52 }
 0x1d2   : > { %v475_v53 = vmul.f32 0.5, %v474_v48  ;;  %v520_v8 = vmul.f32 %v3510_v46, %v514_v5 }
 0x1d3   : > { %v518_v54 = vmul.f32 %v3510_v46, %v512_v49  ;;  %v496_v1 = vsub.f32 1.5, %v495_v60  ;;  %v4018_v60 = vld [vmem:[%s5653_s2] sm:$0xff] }
 0x1d4   : > { %v3527_v55 = vpop.eup %3526  ;;  %v476_v56 = vsub.f32 1.5, %v475_v53  ;;  %v526_v10 = vadd.f32 %v3511_v50, %v520_v8 }
 0x1d5   : > { %v524_v57 = vadd.f32 %v3511_v50, %v518_v54  ;;  %v503_v18 = vmul.f32 %v3527_v55, %v461_v40  ;;  %v497_v6 = vmul.f32 %v3523_v38, %v496_v1  ;;  %vm509_vm0 = vweird.f32 %v3527_v55 }
 0x1d6   : > { %v477_v61 = vmul.f32 %v3525_v41, %v476_v56  ;;  %vm510_vm1 = vmor %vm508_vm15, %vm509_vm0 }
 0x1d7   : > { %593 = vmatmul.f32.vlgmr.msra.gmra.mxu0 %v524_v57  ;;  %625 = vmatmul.f32.vlgmr.msra.gmra.mxu1 %v524_v57  ;;  %v504_v2 = vmul.f32 %v3527_v55, %v503_v18  ;;  %v501_v9 = vsel %vm500_vm14, %v3523_v38, %v497_v6 }
 0x1d8   : > { %v481_v62 = vsel %vm480_vm11, %v3525_v41, %v477_v61  ;;  %657 = vmatmul.f32.vlgmr.msra.gmra.mxu2 %v524_v57  ;;  %v515_v11 = vmul.f32 %v501_v9, %v3875_v26 }
 0x1d9   : > { %v513_v63 = vmul.f32 %v481_v62, %v3877_v27  ;;  %v505_v7 = vmul.f32 0.5, %v504_v2  ;;  %v4031_v2 = vld [vmem:[%s5653_s2 + $0x8] sm:$0xff] }
 0x1da   : > { %v521_v17 = vmul.f32 %v3510_v46, %v515_v11 }
 0x1db   : > { %v519_v3 = vmul.f32 %v3510_v46, %v513_v63  ;;  %v506_v27 = vsub.f32 1.5, %v505_v7 }
 0x1dc   : > { %v527_v15 = vadd.f32 %v3511_v50, %v521_v17 }
 0x1dd   : > { %v525_v4 = vadd.f32 %v3511_v50, %v519_v3  ;;  %v507_v13 = vmul.f32 %v3527_v55, %v506_v27  ;;  %v4044_v27 = vld [vmem:[%s5653_s2 + $0x10] sm:$0xff] }
 0x1df   : > { %596 = vmatmul.f32.gmra.mxu0 %v525_v4  ;;  %628 = vmatmul.f32.gmra.mxu1 %v525_v4  ;;  %v511_v14 = vsel %vm510_vm1, %v3527_v55, %v507_v13 }
 0x1e0   : > { %660 = vmatmul.f32.gmra.mxu2 %v525_v4  ;;  %v516_v16 = vmul.f32 %v511_v14, %v3884_v31 }
 0x1e2   : > { %v522_v19 = vmul.f32 %v3510_v46, %v516_v16  ;;  %v4057_v16 = vld [vmem:[%s5653_s2 + $0x18] sm:$0xff] }
 0x1e4   : > { %v528_v20 = vadd.f32 %v3511_v50, %v522_v19 }
 0x1e7   : > { %599 = vmatmul.f32.gmra.mxu0 %v526_v10  ;;  %631 = vmatmul.f32.gmra.mxu1 %v526_v10 }
 0x1e8   : > { %663 = vmatmul.f32.gmra.mxu2 %v526_v10 }
 0x1ef   : > { %602 = vmatmul.f32.gmra.mxu0 %v527_v15  ;;  %634 = vmatmul.f32.gmra.mxu1 %v527_v15 }
 0x1f0   : > { %666 = vmatmul.f32.gmra.mxu2 %v527_v15 }
 0x1f7   : > { %605 = vmatmul.f32.gmra.mxu0 %v528_v20  ;;  %637 = vmatmul.f32.gmra.mxu1 %v528_v20 }
 0x1f8   : > { %669 = vmatmul.f32.gmra.mxu2 %v528_v20 }
 0x254   : > { %v626_v21 = vpop.f32.mrf.mxu1  ;;  %v594_v28 = vpop.f32.mrf.mxu0 }
 0x25b   : > { %v3948_v26 = vpop.f32.mrf.mxu2 }
 0x25c   : > { %v629_v22 = vpop.f32.mrf.mxu1  ;;  %v597_v32 = vpop.f32.mrf.mxu0 }
 0x263   : > { %v661_v23 = vpop.f32.mrf.mxu2 }
 0x264   : > { %v632_v24 = vpop.f32.mrf.mxu1  ;;  %v600_v34 = vpop.f32.mrf.mxu0 }
 0x265   : > { %923 = vrot.lane.b32.xlu0 %v632_v24, %s3677_s28 }
 0x26b   : > { %v664_v25 = vpop.f32.mrf.mxu2 }
 0x26c   : > { %v635_v31 = vpop.f32.mrf.mxu1  ;;  %v3951_v29 = vpack.i.bf16 %v661_v23, %v664_v25  ;;  %v603_v36 = vpop.f32.mrf.mxu0 }
 0x26d   : > { %909 = vrot.lane.b32.xlu0 %v594_v28, %s3677_s28  ;;  %925 = vrot.lane.b32.xlu2 %v635_v31, %s3677_s28 }
 0x273   : > { %v667_v33 = vpop.f32.mrf.mxu2 }
 0x274   : > { %v638_v30 = vpop.f32.mrf.mxu1  ;;  %v606_v37 = vpop.f32.mrf.mxu0 }
 0x275   : > { %1184 = vrot.lane.b32.xlu0 %v635_v31, %s3678_s30  ;;  %921 = vrot.lane.b32.xlu2 %v629_v22, %s3677_s28 }
 0x276   : > { %927 = vrot.lane.b32.xlu1 %v638_v30, %s3677_s28  ;;  %3342 = vmatpush.xpose.msk.msra.mxu3 %vm678_vm2, %v638_v30 }
 0x27a   : > { %3343 = vmatpush.xpose.msk.msra.mxu3 %vm678_vm2, %v635_v31 }
 0x27b   : > { %v670_v35 = vpop.f32.mrf.mxu2 }
 0x27c   : > { %v3490_v38 = vpack.i.bf16 %v667_v33, %v670_v35 }
 0x27d   : > { %1180 = vrot.lane.b32.xlu0 %v629_v22, %s3678_s30  ;;  %911 = vrot.lane.b32.xlu2 %v597_v32, %s3677_s28 }
 0x27e   : > { %919 = vrot.lane.b32.xlu1 %v626_v21, %s3677_s28  ;;  %3344 = vmatpush.xpose.msk.msra.mxu3 %vm678_vm2, %v632_v24 }
 0x282   : > { %3345 = vmatpush.xpose.msk.msra.mxu3 %vm678_vm2, %v629_v22 }
 0x285   : > { %1178 = vrot.lane.b32.xlu0 %v626_v21, %s3678_s30  ;;  %913 = vrot.lane.b32.xlu2 %v600_v34, %s3677_s28 }
 0x286   : > { %1182 = vrot.lane.b32.xlu1 %v632_v24, %s3678_s30  ;;  %3346 = vmatpush.xpose.msk.msra.mxu3 %vm678_vm2, %v626_v21 }
 0x289   : > { %3347 = vmatmul.msk.f32.vlgmr.msra.gmra.mxu3 %vm678_vm2, %v594_v28 }
 0x28a   : > { %888 = vmatpush.msrb.mxu3 %v670_v35 }
 0x28c   : > { %889 = vmatpush.msrb.mxu3 %v667_v33 }
 0x28d   : > { %1436 = vrot.lane.b32.xlu0 %v632_v24, %s3679_s7  ;;  %1438 = vrot.lane.b32.xlu2 %v635_v31, %s3679_s7  ;;  %v4069_v24 = vld [vmem:[%s5653_s2 + $0x20] sm:$0xff] }
 0x28e   : > { %890 = vmatpush.msrb.mxu3 %v664_v25  ;;  %1186 = vrot.lane.b32.xlu1 %v638_v30, %s3678_s30 }
 0x290   : > { %891 = vmatpush.msrb.mxu3 %v661_v23 }
 0x291   : > { %3348 = vmatmul.msk.f32.gmra.mxu3 %vm678_vm2, %v597_v32 }
 0x292   : > { %892 = vmatpush.msrb.mxu3 %v3948_v26 }
 0x295   : > { %1170 = vrot.lane.b32.xlu0 %v597_v32, %s3678_s30  ;;  %1440 = vrot.lane.b32.xlu2 %v638_v30, %s3679_s7 }
 0x296   : > { %915 = vrot.lane.b32.xlu1 %v603_v36, %s3677_s28 }
 0x299   : > { %3349 = vmatmul.msk.f32.gmra.mxu3 %vm678_vm2, %v600_v34 }
 0x29d   : > { %1172 = vrot.lane.b32.xlu0 %v600_v34, %s3678_s30  ;;  %917 = vrot.lane.b32.xlu2 %v606_v37, %s3677_s28 }
 0x29e   : > { %1168 = vrot.lane.b32.xlu1 %v594_v28, %s3678_s30 }
 0x2a1   : > { %3350 = vmatmul.msk.f32.gmra.mxu3 %vm678_vm2, %v603_v36 }
 0x2a5   : > { %1426 = vrot.lane.b32.xlu0 %v600_v34, %s3679_s7  ;;  %1432 = vrot.lane.b32.xlu2 %v626_v21, %s3679_s7 }
 0x2a6   : > { %1434 = vrot.lane.b32.xlu1 %v629_v22, %s3679_s7 }
 0x2a9   : > { %3351 = vmatmul.msk.f32.gmra.mxu3 %vm678_vm2, %v606_v37 }
 0x2ad   : > { %1430 = vrot.lane.b32.xlu0 %v606_v37, %s3679_s7  ;;  %1424 = vrot.lane.b32.xlu2 %v597_v32, %s3679_s7 }
 0x2ae   : > { %1422 = vrot.lane.b32.xlu1 %v594_v28, %s3679_s7 }
 0x2b5   : > { %3476 = vrot.lane.b32.xlu0 %v3951_v29, %s3677_s28  ;;  %1176 = vrot.lane.b32.xlu2 %v606_v37, %s3678_s30 }
 0x2b6   : > { %1174 = vrot.lane.b32.xlu1 %v603_v36, %s3678_s30 }
 0x2bd   : > { %3481 = vrot.lane.b32.xlu0 %v3951_v29, %s3678_s30  ;;  %3491 = vrot.lane.b32.xlu2 %v3490_v38, %s3678_s30 }
 0x2be   : > { %1428 = vrot.lane.b32.xlu1 %v603_v36, %s3679_s7 }
 0x2c6   : > { %1106 = vrot.lane.b32.xlu1 %v3948_v26, %s3677_s28 }
 0x2c7   : > { %v926_v39 = vpop.permute.xlu2 %925 }
 0x2ce   : > { %3486 = vrot.lane.b32.xlu1 %v3490_v38, %s3677_s28 }
 0x2cf   : > { %v922_v40 = vpop.permute.xlu2 %921 }
 0x2d6   : > { %3496 = vrot.lane.b32.xlu1 %v3490_v38, %s3679_s7 }
 0x2d7   : > { %v912_v41 = vpop.permute.xlu2 %911  ;;  %v924_v42 = vpop.permute.xlu0 %923 }
 0x2df   : > { %v914_v43 = vpop.permute.xlu2 %913  ;;  %v910_v44 = vpop.permute.xlu0 %909 }
 0x2e7   : > { %v1439_v45 = vpop.permute.xlu2 %1438  ;;  %v1185_v46 = vpop.permute.xlu0 %1184 }
 0x2e8   : > { %v928_v47 = vpop.permute.xlu1 %927 }
 0x2e9   : > { %3357 = vmatpush.xpose.msk.msrb.mxu0 %vm678_vm2, %v928_v47 }
 0x2ed   : > { %3358 = vmatpush.xpose.msk.msrb.mxu0 %vm678_vm2, %v926_v39 }
 0x2ef   : > { %v1441_v48 = vpop.permute.xlu2 %1440  ;;  %v1181_v49 = vpop.permute.xlu0 %1180 }
 0x2f0   : > { %v920_v50 = vpop.permute.xlu1 %919 }
 0x2f1   : > { %3359 = vmatpush.xpose.msk.msrb.mxu0 %vm678_vm2, %v924_v42 }
 0x2f5   : > { %3360 = vmatpush.xpose.msk.msrb.mxu0 %vm678_vm2, %v922_v40 }
 0x2f7   : > { %v918_v51 = vpop.permute.xlu2 %917  ;;  %v1179_v52 = vpop.permute.xlu0 %1178 }
 0x2f8   : > { %v1183_v53 = vpop.permute.xlu1 %1182 }
 0x2f9   : > { %3361 = vmatpush.xpose.msk.msrb.mxu0 %vm678_vm2, %v920_v50 }
 0x2fc   : > { %3362 = vmatmul.msk.f32.vlgmr.msrb.gmra.mxu0 %vm678_vm2, %v910_v44 }
 0x2fd   : > { %3387 = vmatpush.xpose.msk.msra.mxu0 %vm678_vm2, %v1441_v48 }
 0x2ff   : > { %v1433_v54 = vpop.permute.xlu2 %1432  ;;  %v1437_v55 = vpop.permute.xlu0 %1436 }
 0x300   : > { %v1187_v56 = vpop.permute.xlu1 %1186 }
 0x301   : > { %3388 = vmatpush.xpose.msk.msra.mxu0 %vm678_vm2, %v1439_v45  ;;  %3372 = vmatpush.xpose.msk.msrb.mxu2 %vm678_vm2, %v1187_v56 }
 0x304   : > { %3363 = vmatmul.msk.f32.gmra.mxu0 %vm678_vm2, %v912_v41 }
 0x305   : > { %3389 = vmatpush.xpose.msk.msra.mxu0 %vm678_vm2, %v1437_v55  ;;  %3373 = vmatpush.xpose.msk.msrb.mxu2 %vm678_vm2, %v1185_v46 }
 0x307   : > { %v1425_v57 = vpop.permute.xlu2 %1424  ;;  %v1171_v58 = vpop.permute.xlu0 %1170 }
 0x308   : > { %v916_v59 = vpop.permute.xlu1 %915 }
 0x309   : > { %3374 = vmatpush.xpose.msk.msrb.mxu2 %vm678_vm2, %v1183_v53 }
 0x30c   : > { %v726_v61 = vpop.f32.mrf.mxu3  ;;  %3364 = vmatmul.msk.f32.gmra.mxu0 %vm678_vm2, %v914_v43 }
 0x30d   : > { %v4022_v18 = vadd.f32 %v726_v61, %v4018_v60  ;;  %3375 = vmatpush.xpose.msk.msrb.mxu2 %vm678_vm2, %v1181_v49 }
 0x30f   : > { %v742_v62 = vsel %vm741_vm3, %v4022_v18, -inf  ;;  %v1177_v63 = vpop.permute.xlu2 %1176  ;;  %v1173_v0 = vpop.permute.xlu0 %1172 }
 0x310   : > { %v1169_v1 = vpop.permute.xlu1 %1168  ;;  %743 = vmax.xlane.f32.xlu2 %v742_v62 }
 0x311   : > { %3376 = vmatpush.xpose.msk.msrb.mxu2 %vm678_vm2, %v1179_v52 }
 0x314   : > { %v729_v3 = vpop.f32.mrf.mxu3  ;;  %3365 = vmatmul.msk.f32.gmra.mxu0 %vm678_vm2, %v916_v59  ;;  %3377 = vmatmul.msk.f32.vlgmr.msrb.gmra.mxu2 %vm678_vm2, %v1169_v1 }
 0x315   : > { %v4036_v4 = vadd.f32 %v729_v3, %v4031_v2 }
 0x317   : > { %v745_v5 = vsel %vm741_vm3, %v4036_v4, -inf  ;;  %v3492_v6 = vpop.permute.xlu2 %3491  ;;  %v1427_v7 = vpop.permute.xlu0 %1426 }
 0x318   : > { %v1435_v8 = vpop.permute.xlu1 %1434  ;;  %746 = vmax.xlane.f32.xlu0 %v745_v5  ;;  %v3493_v9 = vunpack.i.l.bf16 %v3492_v6  ;;  %v3494_v10 = vunpack.i.h.bf16 %v3492_v6 }
 0x319   : > { %3390 = vmatpush.xpose.msk.msra.mxu0 %vm678_vm2, %v1435_v8 }
 0x31a   : > { %1401 = vmatpush.msra.mxu3 %v3493_v9 }
 0x31c   : > { %v732_v11 = vpop.f32.mrf.mxu3  ;;  %3366 = vmatmul.msk.f32.gmra.mxu0 %vm678_vm2, %v918_v51  ;;  %3378 = vmatmul.msk.f32.gmra.mxu2 %vm678_vm2, %v1171_v58 }
 0x31d   : > { %v4049_v13 = vadd.f32 %v732_v11, %v4044_v27  ;;  %1402 = vmatpush.msra.mxu3 %v3494_v10  ;;  %3391 = vmatpush.xpose.msk.msra.mxu0 %vm678_vm2, %v1433_v54 }
 0x31f   : > { %v748_v17 = vsel %vm741_vm3, %v4049_v13, -inf  ;;  %v1431_v14 = vpop.permute.xlu0 %1430 }
 0x320   : > { %v1423_v15 = vpop.permute.xlu1 %1422  ;;  %749 = vmax.xlane.f32.xlu1 %v748_v17 }
 0x324   : > { %v735_v19 = vpop.f32.mrf.mxu3  ;;  %3379 = vmatmul.msk.f32.gmra.mxu2 %vm678_vm2, %v1173_v0  ;;  %3392 = vmatmul.msk.f32.vlgmr.msra.gmra.mxu0 %vm678_vm2, %v1423_v15 }
 0x325   : > { %v4062_v20 = vadd.f32 %v735_v19, %v4057_v16 }
 0x327   : > { %v751_v21 = vsel %vm741_vm3, %v4062_v20, -inf  ;;  %v3477_v22 = vpop.permute.xlu0 %3476 }
 0x328   : > { %v1175_v23 = vpop.permute.xlu1 %1174  ;;  %752 = vmax.xlane.f32.xlu2 %v751_v21  ;;  %v3478_v39 = vunpack.i.l.bf16 %v3477_v22  ;;  %v3479_v40 = vunpack.i.h.bf16 %v3477_v22 }
 0x32c   : > { %v738_v25 = vpop.f32.mrf.mxu3  ;;  %3380 = vmatmul.msk.f32.gmra.mxu2 %vm678_vm2, %v1175_v23  ;;  %3393 = vmatmul.msk.f32.gmra.mxu0 %vm678_vm2, %v1425_v57 }
 0x32d   : > { %v4074_v28 = vadd.f32 %v738_v25, %v4069_v24 }
 0x32f   : > { %v754_v31 = vsel %vm741_vm3, %v4074_v28, -inf  ;;  %v3482_v30 = vpop.permute.xlu0 %3481 }
 0x330   : > { %v1429_v32 = vpop.permute.xlu1 %1428  ;;  %755 = vmax.xlane.f32.xlu0 %v754_v31  ;;  %v3483_v33 = vunpack.i.l.bf16 %v3482_v30  ;;  %v3484_v34 = vunpack.i.h.bf16 %v3482_v30 }
 0x332   : > { %1403 = vmatpush.msra.mxu3 %v3483_v33 }
 0x334   : > { %3381 = vmatmul.msk.f32.gmra.mxu2 %vm678_vm2, %v1177_v63  ;;  %3394 = vmatmul.msk.f32.gmra.mxu0 %vm678_vm2, %v1427_v7 }
 0x335   : > { %1404 = vmatpush.msra.mxu3 %v3484_v34 }
 0x338   : > { %v1107_v35 = vpop.permute.xlu1 %1106 }
 0x33c   : > { %3395 = vmatmul.msk.f32.gmra.mxu0 %vm678_vm2, %v1429_v32 }
 0x340   : > { %v3487_v36 = vpop.permute.xlu1 %3486 }
 0x341   : > { %v3488_v37 = vunpack.i.l.bf16 %v3487_v36  ;;  %v3489_v38 = vunpack.i.h.bf16 %v3487_v36 }
 0x343   : > { %1147 = vmatpush.msrb.mxu1 %v3488_v37 }
 0x344   : > { %3396 = vmatmul.msk.f32.gmra.mxu0 %vm678_vm2, %v1431_v14 }
 0x345   : > { %1148 = vmatpush.msrb.mxu1 %v3489_v38 }
 0x347   : > { %1149 = vmatpush.msrb.mxu1 %v3478_v39 }
 0x348   : > { %v3497_v41 = vpop.permute.xlu1 %3496 }
 0x349   : > { %v3498_v42 = vunpack.i.l.bf16 %v3497_v41  ;;  %1150 = vmatpush.msrb.mxu1 %v3479_v40  ;;  %v3499_v43 = vunpack.i.h.bf16 %v3497_v41 }
 0x34b   : > { %1151 = vmatpush.msrb.mxu1 %v1107_v35 }
 0x34d   : > { %1655 = vmatpush.msra.mxu1 %v3498_v42 }
 0x34f   : > { %1656 = vmatpush.msra.mxu1 %v3499_v43 }
 0x379   : > { %v966_v44 = vpop.f32.mrf.mxu0 }
 0x37a   : > { %v4083_v45 = vadd.f32 %v966_v44, %v4018_v60 }
 0x37c   : > { %v981_v46 = vsel %vm741_vm3, %v4083_v45, -inf }
 0x37d   : > { %982 = vmax.xlane.f32.xlu1 %v981_v46 }
 0x381   : > { %v969_v47 = vpop.f32.mrf.mxu0 }
 0x382   : > { %v4088_v48 = vadd.f32 %v969_v47, %v4031_v2 }
 0x383   : > { %v744_v55 = vpop.xlane.xlu2 %743 }
 0x384   : > { %v984_v49 = vsel %vm741_vm3, %v4088_v48, -inf  ;;  %v757_v57 = vsub.f32 %v4022_v18, %v744_v55 }
 0x385   : > { %985 = vmax.xlane.f32.xlu2 %v984_v49 }
 0x386   : > { %v762_v59 = vmul.f32 1.442695, %v757_v57 }
 0x389   : > { %v972_v50 = vpop.f32.mrf.mxu0 }
 0x38a   : > { %v4093_v51 = vadd.f32 %v972_v50, %v4044_v27 }
 0x38b   : > { %v747_v52 = vpop.xlane.xlu0 %746 }
 0x38c   : > { %v758_v53 = vsub.f32 %v4036_v4, %v747_v52  ;;  %v987_v54 = vsel %vm741_vm3, %v4093_v51, -inf }
 0x38d   : > { %988 = vmax.xlane.f32.xlu0 %v987_v54 }
 0x38e   : > { %v764_v56 = vmul.f32 1.442695, %v758_v53 }
 0x390   : > { %3528 = vpow2.f32 %v764_v56 }
 0x391   : > { %v975_v58 = vpop.f32.mrf.mxu0  ;;  %3530 = vpow2.f32 %v762_v59 }
 0x392   : > { %v4123_v17 = vadd.f32 %v975_v58, %v4057_v16 }
 0x393   : > { %v750_v11 = vpop.xlane.xlu1 %749 }
 0x394   : > { %v990_v25 = vsel %vm741_vm3, %v4123_v17, -inf }
 0x396   : > { %v4099_v61 = vpop.eup %3528 }
 0x397   : > { %v1225_v62 = vpop.f32.mrf.mxu2  ;;  %v775_v63 = vsel %vm741_vm3, %v4099_v61, 0.0  ;;  %v4108_v4 = vpop.eup %3530 }
 0x398   : > { %v4104_v0 = vadd.f32 %v1225_v62, %v4018_v60  ;;  %776 = vadd.xlane.f32.xlu0 %v775_v63  ;;  %v772_v8 = vsel %vm741_vm3, %v4108_v4, 0.0 }
 0x399   : > { %v978_v1 = vpop.f32.mrf.mxu0 }
 0x39a   : > { %v1240_v3 = vsel %vm741_vm3, %v4104_v0, -inf }
 0x39b   : > { %1241 = vmax.xlane.f32.xlu1 %v1240_v3  ;;  %v753_v38 = vpop.xlane.xlu2 %752 }
 0x39c   : > { %v760_v40 = vsub.f32 %v4062_v20, %v753_v38 }
 0x39e   : > { %v768_v49 = vmul.f32 1.442695, %v760_v40 }
 0x39f   : > { %v1228_v18 = vpop.f32.mrf.mxu2 }
 0x3a0   : > { %v4111_v5 = vadd.f32 %v1228_v18, %v4031_v2 }
 0x3a1   : > { %v1479_v6 = vpop.f32.mrf.mxu0 }
 0x3a2   : > { %v4114_v7 = vadd.f32 %v1479_v6, %v4018_v60  ;;  %v1243_v9 = vsel %vm741_vm3, %v4111_v5, -inf  ;;  %v759_v60 = vsub.f32 %v4049_v13, %v750_v11 }
 0x3a3   : > { %773 = vadd.xlane.f32.xlu1 %v772_v8  ;;  %1244 = vmax.xlane.f32.xlu2 %v1243_v9  ;;  %v756_v14 = vpop.xlane.xlu0 %755 }
 0x3a4   : > { %v1494_v10 = vsel %vm741_vm3, %v4114_v7, -inf  ;;  %v761_v21 = vsub.f32 %v4074_v28, %v756_v14  ;;  %v766_v30 = vmul.f32 1.442695, %v759_v60  ;;  %v4140_v28 = vadd.f32 %v978_v1, %v4069_v24 }
 0x3a5   : > { %1495 = vmax.xlane.f32.xlu0 %v1494_v10 }
 0x3a6   : > { %v770_v32 = vmul.f32 1.442695, %v761_v21  ;;  %3532 = vpow2.f32 %v766_v30  ;;  %v993_v36 = vsel %vm741_vm3, %v4140_v28, -inf }
 0x3a7   : > { %v1231_v15 = vpop.f32.mrf.mxu2 }
 0x3a8   : > { %v4127_v19 = vadd.f32 %v1231_v15, %v4044_v27  ;;  %3534 = vpow2.f32 %v770_v32 }
 0x3a9   : > { %v1482_v22 = vpop.f32.mrf.mxu0  ;;  %3536 = vpow2.f32 %v768_v49 }
 0x3aa   : > { %v4131_v23 = vadd.f32 %v1482_v22, %v4031_v2  ;;  %v1246_v31 = vsel %vm741_vm3, %v4127_v19, -inf }
 0x3ab   : > { %991 = vmax.xlane.f32.xlu1 %v990_v25  ;;  %1247 = vmax.xlane.f32.xlu2 %v1246_v31 }
 0x3ac   : > { %v1497_v13 = vsel %vm741_vm3, %v4131_v23, -inf  ;;  %v4149_v37 = vpop.eup %3532 }
 0x3ad   : > { %1498 = vmax.xlane.f32.xlu0 %v1497_v13  ;;  %v778_v43 = vsel %vm741_vm3, %v4149_v37, 0.0 }
 0x3ae   : > { %v4151_v39 = vpop.eup %3534 }
 0x3af   : > { %v1234_v33 = vpop.f32.mrf.mxu2  ;;  %v784_v44 = vsel %vm741_vm3, %v4151_v39, 0.0  ;;  %v4168_v50 = vpop.eup %3536 }
 0x3b0   : > { %v4143_v2 = vadd.f32 %v1234_v33, %v4057_v16  ;;  %v781_v52 = vsel %vm741_vm3, %v4168_v50, 0.0 }
 0x3b1   : > { %v1485_v34 = vpop.f32.mrf.mxu0 }
 0x3b2   : > { %v1249_v35 = vsel %vm741_vm3, %v4143_v2, -inf  ;;  %v4173_v53 = vadd.f32 %v1485_v34, %v4044_v27 }
 0x3b3   : > { %1250 = vmax.xlane.f32.xlu1 %v1249_v35  ;;  %994 = vmax.xlane.f32.xlu2 %v993_v36 }
 0x3b4   : > { %v1500_v54 = vsel %vm741_vm3, %v4173_v53, -inf }
 0x3b7   : > { %v1237_v46 = vpop.f32.mrf.mxu2 }
 0x3b8   : > { %v4164_v20 = vadd.f32 %v1237_v46, %v4069_v24 }
 0x3b9   : > { %v1488_v41 = vpop.f32.mrf.mxu0 }
 0x3ba   : > { %v4155_v42 = vadd.f32 %v1488_v41, %v4057_v16  ;;  %v1252_v16 = vsel %vm741_vm3, %v4164_v20, -inf }
 0x3bb   : > { %779 = vadd.xlane.f32.xlu2 %v778_v43  ;;  %785 = vadd.xlane.f32.xlu1 %v784_v44 }
 0x3bc   : > { %v1503_v47 = vsel %vm741_vm3, %v4155_v42, -inf }
 0x3bd   : > { %1504 = vmax.xlane.f32.xlu0 %v1503_v47 }
 0x3c1   : > { %v1491_v55 = vpop.f32.mrf.mxu0 }
 0x3c2   : > { %v4178_v56 = vadd.f32 %v1491_v55, %v4069_v24 }
 0x3c3   : > { %1253 = vmax.xlane.f32.xlu2 %v1252_v16 }
 0x3c4   : > { %v1506_v57 = vsel %vm741_vm3, %v4178_v56, -inf }
 0x3cb   : > { %782 = vadd.xlane.f32.xlu2 %v781_v52 }
 0x3d3   : > { %1501 = vmax.xlane.f32.xlu2 %v1500_v54 }
 0x3db   : > { %1507 = vmax.xlane.f32.xlu2 %v1506_v57 }
 0x3f0   : > { %v983_v58 = vpop.xlane.xlu1 %982 }
 0x3f1   : > { %v996_v59 = vsub.f32 %v4083_v45, %v983_v58 }
 0x3f3   : > { %v1001_v62 = vmul.f32 1.442695, %v996_v59 }
 0x3f5   : > { %3538 = vpow2.f32 %v1001_v62 }
 0x3f8   : > { %v986_v63 = vpop.xlane.xlu2 %985 }
 0x3f9   : > { %v997_v27 = vsub.f32 %v4088_v48, %v986_v63 }
 0x3fb   : > { %v4184_v1 = vpop.eup %3538  ;;  %v1003_v3 = vmul.f32 1.442695, %v997_v27 }
 0x3fc   : > { %v1011_v18 = vsel %vm741_vm3, %v4184_v1, 0.0 }
 0x3fd   : > { %3540 = vpow2.f32 %v1003_v3  ;;  %1012 = vadd.xlane.f32.xlu1 %v1011_v18 }
 0x400   : > { %v989_v8 = vpop.xlane.xlu0 %988 }
 0x401   : > { %v998_v60 = vsub.f32 %v4093_v51, %v989_v8 }
 0x403   : > { %v4188_v24 = vpop.eup %3540  ;;  %v1005_v13 = vmul.f32 1.442695, %v998_v60 }
 0x404   : > { %v1014_v6 = vsel %vm741_vm3, %v4188_v24, 0.0 }
 0x405   : > { %1015 = vadd.xlane.f32.xlu0 %v1014_v6 }
 0x40b   : > { %v4192_v45 = vpop.xlane.xlu0 %776 }
 0x40c   : > { %3542 = vrcp.f32 %v4192_v45  ;;  %v812_v62 = vand.u32 2147483648, %v4192_v45  ;;  %vm806_vm9 = vweird.f32 %v4192_v45  ;;  %v810_v18 = vand.u32 2147483647, %v4192_v45 }
 0x40e   : > { %v1242_v9 = vpop.xlane.xlu1 %1241  ;;  %vm811_vm11 = vcmp.eq.f32.partialorder %v810_v18, 8.507059e+37 }
 0x40f   : > { %v1255_v48 = vsub.f32 %v4104_v0, %v1242_v9 }
 0x411   : > { %v1260_v10 = vmul.f32 1.442695, %v1255_v48 }
 0x412   : > { %v4196_v11 = vpop.eup %3542 }
 0x413   : > { %3544 = vpow2.f32 %v1260_v10  ;;  %v802_v0 = vmul.f32 %v4196_v11, %v4192_v45  ;;  %vm807_vm7 = vweird.f32 %v4196_v11  ;;  %v813_v10 = vor.u32 1.1754944e-38, %v812_v62 }
 0x414   : > { %vm4229_vm10 = vmor %vm806_vm9, %vm807_vm7 }
 0x415   : > { %v803_v33 = vsub.f32 1.0, %v802_v0 }
 0x416   : > { %v774_v14 = vpop.xlane.xlu1 %773  ;;  %v1245_v15 = vpop.xlane.xlu2 %1244 }
 0x417   : > { %3546 = vrcp.f32 %v774_v14  ;;  %v1256_v21 = vsub.f32 %v4111_v5, %v1245_v15  ;;  %v804_v41 = vmul.f32 %v4196_v11, %v803_v33  ;;  %v798_v43 = vand.u32 2147483648, %v774_v14 }
 0x418   : > { %v4200_v22 = vpop.xlane.xlu0 %1495  ;;  %v796_v16 = vand.u32 2147483647, %v774_v14  ;;  %vm792_vm5 = vweird.f32 %v774_v14 }
 0x419   : > { %v4202_v25 = vpop.eup %3544  ;;  %v1262_v31 = vmul.f32 1.442695, %v1256_v21  ;;  %v799_v54 = vor.u32 1.1754944e-38, %v798_v43 }
 0x41a   : > { %v1270_v30 = vsel %vm741_vm3, %v4202_v25, 0.0  ;;  %vm797_vm8 = vcmp.eq.f32.partialorder %v796_v16, 8.507059e+37 }
 0x41b   : > { %1271 = vadd.xlane.f32.xlu2 %v1270_v30  ;;  %3548 = vpow2.f32 %v1262_v31 }
 0x41c   : > { %3550 = vpow2.f32 %v1005_v13 }
 0x41d   : > { %v3547_v32 = vpop.eup %3546 }
 0x41e   : > { %v788_v34 = vmul.f32 %v3547_v32, %v774_v14  ;;  %v992_v51 = vpop.xlane.xlu1 %991  ;;  %v1248_v35 = vpop.xlane.xlu2 %1247  ;;  %vm793_vm4 = vweird.f32 %v3547_v32 }
 0x41f   : > { %v999_v5 = vsub.f32 %v4123_v17, %v992_v51  ;;  %v1257_v36 = vsub.f32 %v4127_v19, %v1248_v35  ;;  %vm794_vm6 = vmor %vm792_vm5, %vm793_vm4 }
 0x420   : > { %v789_v38 = vsub.f32 1.0, %v788_v34  ;;  %v1499_v40 = vpop.xlane.xlu0 %1498 }
 0x421   : > { %v1007_v44 = vmul.f32 1.442695, %v999_v5  ;;  %v1264_v46 = vmul.f32 1.442695, %v1257_v36  ;;  %v4211_v47 = vpop.eup %3548  ;;  %v1510_v52 = vsub.f32 %v4131_v23, %v1499_v40  ;;  %v805_v23 = vadd.f32 %v4196_v11, %v804_v41 }
 0x422   : > { %v790_v49 = vmul.f32 %v3547_v32, %v789_v38  ;;  %v1273_v17 = vsel %vm741_vm3, %v4211_v47, 0.0  ;;  %v4217_v55 = vpop.eup %3550 }
 0x423   : > { %3552 = vpow2.f32 %v1007_v44  ;;  %1274 = vadd.xlane.f32.xlu2 %v1273_v17  ;;  %v1516_v57 = vmul.f32 1.442695, %v1510_v52  ;;  %v809_v45 = vsel %vm4229_vm10, %v4196_v11, %v805_v23  ;;  %v1017_v15 = vsel %vm741_vm3, %v4217_v55, 0.0 }
 0x424   : > { %v791_v19 = vadd.f32 %v3547_v32, %v790_v49  ;;  %3554 = vpow2.f32 %v1264_v46 }
 0x425   : > { %3556 = vpow2.f32 %v1516_v57 }
 0x426   : > { %v995_v58 = vpop.xlane.xlu2 %994  ;;  %v795_v59 = vsel %vm794_vm6, %v3547_v32, %v791_v19  ;;  %v4247_v60 = vpop.xlane.xlu1 %1250 }
 0x427   : > { %v1000_v63 = vsub.f32 %v4140_v28, %v995_v58  ;;  %v800_v27 = vsel %vm797_vm8, %v799_v54, %v795_v59  ;;  %v1509_v28 = vsub.f32 %v4114_v7, %v4200_v22  ;;  %v814_v7 = vsel %vm811_vm11, %v813_v10, %v809_v45 }
 0x428   : > { %v857_v3 = vmul.f32 %v4108_v4, %v800_v27  ;;  %v858_v11 = vmul.f32 %v4099_v61, %v814_v7 }
 0x429   : > { %v4225_v6 = vpop.eup %3552  ;;  %v1009_v8 = vmul.f32 1.442695, %v1000_v63  ;;  %v1514_v21 = vmul.f32 1.442695, %v1509_v28 }
 0x42a   : > { %v4233_v48 = vpop.eup %3554  ;;  %3352 = vmatmul.msk.f32.vlgmr.msrb.gmra.mxu3 %vm741_vm3, %v857_v3  ;;  %v1020_v4 = vsel %vm741_vm3, %v4225_v6, 0.0 }
 0x42b   : > { %1021 = vadd.xlane.f32.xlu0 %v1020_v4  ;;  %v1276_v14 = vsel %vm741_vm3, %v4233_v48, 0.0  ;;  %3558 = vpow2.f32 %v1009_v8  ;;  %1018 = vadd.xlane.f32.xlu2 %v1017_v15  ;;  %v4249_v0 = vpop.eup %3556 }
 0x42c   : > { %1277 = vadd.xlane.f32.xlu1 %v1276_v14  ;;  %v1527_v13 = vsel %vm741_vm3, %v4249_v0, 0.0 }
 0x42e   : > { %v780_v22 = vpop.xlane.xlu2 %779  ;;  %v786_v34 = vpop.xlane.xlu1 %785 }
 0x42f   : > { %3560 = vrcp.f32 %v780_v22  ;;  %v826_v5 = vand.u32 2147483648, %v780_v22  ;;  %v824_v38 = vand.u32 2147483647, %v780_v22  ;;  %vm820_vm13 = vweird.f32 %v780_v22 }
 0x430   : > { %3562 = vpow2.f32 %v1514_v21  ;;  %v854_v8 = vand.u32 2147483648, %v786_v34  ;;  %vm848_vm7 = vweird.f32 %v786_v34  ;;  %v852_v4 = vand.u32 2147483647, %v786_v34 }
 0x431   : > { %v4252_v31 = vpop.eup %3558  ;;  %3564 = vrcp.f32 %v786_v34  ;;  %v827_v43 = vor.u32 1.1754944e-38, %v826_v5  ;;  %vm825_vm15 = vcmp.eq.f32.partialorder %v824_v38, 8.507059e+37 }
 0x432   : > { %3353 = vmatmul.msk.f32.gmra.mxu3 %vm741_vm3, %v858_v11  ;;  %v1023_v30 = vsel %vm741_vm3, %v4252_v31, 0.0  ;;  %v855_v10 = vor.u32 1.1754944e-38, %v854_v8  ;;  %vm853_vm9 = vcmp.eq.f32.partialorder %v852_v4, 8.507059e+37 }
 0x433   : > { %1024 = vadd.xlane.f32.xlu2 %v1023_v30 }
 0x434   : > { %1528 = vadd.xlane.f32.xlu1 %v1527_v13 }
 0x435   : > { %v3561_v32 = vpop.eup %3560 }
 0x436   : > { %v816_v33 = vmul.f32 %v3561_v32, %v780_v22  ;;  %v1254_v51 = vpop.xlane.xlu2 %1253  ;;  %v4259_v35 = vpop.eup %3562  ;;  %vm821_vm12 = vweird.f32 %v3561_v32 }
 0x437   : > { %v1524_v40 = vsel %vm741_vm3, %v4259_v35, 0.0  ;;  %vm822_vm14 = vmor %vm820_vm13, %vm821_vm12  ;;  %v3565_v49 = vpop.eup %3564  ;;  %v1505_v22 = vpop.xlane.xlu0 %1504 }
 0x438   : > { %v817_v61 = vsub.f32 1.0, %v816_v33  ;;  %v844_v17 = vmul.f32 %v3565_v49, %v786_v34  ;;  %vm849_vm6 = vweird.f32 %v3565_v49  ;;  %v1512_v13 = vsub.f32 %v4155_v42, %v1505_v22 }
 0x439   : > { %vm850_vm8 = vmor %vm848_vm7, %vm849_vm6 }
 0x43a   : > { %v818_v36 = vmul.f32 %v3561_v32, %v817_v61  ;;  %v845_v54 = vsub.f32 1.0, %v844_v17 }
 0x43b   : > { %1525 = vadd.xlane.f32.xlu2 %v1524_v40 }
 0x43c   : > { %v819_v41 = vadd.f32 %v3561_v32, %v818_v36  ;;  %v846_v23 = vmul.f32 %v3565_v49, %v845_v54 }
 0x43e   : > { %v783_v44 = vpop.xlane.xlu2 %782  ;;  %v823_v46 = vsel %vm822_vm14, %v3561_v32, %v819_v41  ;;  %v847_v18 = vadd.f32 %v3565_v49, %v846_v23  ;;  %v1520_v32 = vmul.f32 1.442695, %v1512_v13 }
 0x43f   : > { %3566 = vrcp.f32 %v783_v44  ;;  %1360 = vrot.lane.b32.xlu0 %v3948_v26, %s3678_s30  ;;  %v828_v16 = vsel %vm825_vm15, %v827_v43, %v823_v46  ;;  %v840_v59 = vand.u32 2147483648, %v783_v44  ;;  %v838_v63 = vand.u32 2147483647, %v783_v44 }
 0x440   : > { %v859_v52 = vmul.f32 %v4149_v37, %v828_v16  ;;  %vm834_vm1 = vweird.f32 %v783_v44  ;;  %v851_v45 = vsel %vm850_vm8, %v3565_v49, %v847_v18 }
 0x441   : > { %v841_v3 = vor.u32 1.1754944e-38, %v840_v59  ;;  %vm839_vm5 = vcmp.eq.f32.partialorder %v838_v63, 8.507059e+37 }
 0x442   : > { %3354 = vmatmul.msk.f32.gmra.mxu3 %vm741_vm3, %v859_v52 }
 0x445   : > { %v3567_v19 = vpop.eup %3566 }
 0x446   : > { %v830_v57 = vmul.f32 %v3567_v19, %v783_v44  ;;  %vm835_vm0 = vweird.f32 %v3567_v19  ;;  %v1502_v14 = vpop.xlane.xlu2 %1501 }
 0x447   : > { %vm836_vm4 = vmor %vm834_vm1, %vm835_vm0  ;;  %v1511_v15 = vsub.f32 %v4173_v53, %v1502_v14 }
 0x448   : > { %v831_v58 = vsub.f32 1.0, %v830_v57 }
 0x449   : > { %v1518_v21 = vmul.f32 1.442695, %v1511_v15 }
 0x44a   : > { %v832_v62 = vmul.f32 %v3567_v19, %v831_v58 }
 0x44b   : > { %3568 = vpow2.f32 %v1518_v21 }
 0x44c   : > { %v833_v27 = vadd.f32 %v3567_v19, %v832_v62 }
 0x44d   : > { %1614 = vrot.lane.b32.xlu1 %v3948_v26, %s3679_s7  ;;  %v856_v26 = vsel %vm853_vm9, %v855_v10, %v851_v45 }
 0x44e   : > { %v837_v37 = vsel %vm836_vm4, %v3567_v19, %v833_v27  ;;  %v861_v7 = vmul.f32 %v4151_v39, %v856_v26  ;;  %v1258_v39 = vsub.f32 %v4143_v2, %v4247_v60  ;;  %v1508_v33 = vpop.xlane.xlu2 %1507 }
 0x44f   : > { %v842_v9 = vsel %vm839_vm5, %v841_v3, %v837_v37  ;;  %v1513_v61 = vsub.f32 %v4178_v56, %v1508_v33 }
 0x450   : > { %v860_v28 = vmul.f32 %v4168_v50, %v842_v9  ;;  %v1259_v50 = vsub.f32 %v4164_v20, %v1254_v51  ;;  %v1266_v20 = vmul.f32 1.442695, %v1258_v39 }
 0x451   : > { %v4277_v30 = vpop.eup %3568  ;;  %v1522_v60 = vmul.f32 1.442695, %v1513_v61 }
 0x452   : > { %3355 = vmatmul.msk.f32.gmra.mxu3 %vm741_vm3, %v860_v28  ;;  %v1268_v11 = vmul.f32 1.442695, %v1259_v50 }
 0x453   : > { %3501 = vrot.lane.b32.xlu2 %v3951_v29, %s3679_s7  ;;  %v1530_v29 = vsel %vm741_vm3, %v4277_v30, 0.0 }
 0x454   : > { %3570 = vpow2.f32 %v1268_v11 }
 0x455   : > { %3572 = vpow2.f32 %v1520_v32 }
 0x45a   : > { %3356 = vmatmul.msk.f32.gmra.mxu3 %vm741_vm3, %v861_v7  ;;  %v4284_v53 = vpop.eup %3570 }
 0x45b   : > { %v1282_v51 = vsel %vm741_vm3, %v4284_v53, 0.0  ;;  %v4288_v42 = vpop.eup %3572 }
 0x45c   : > { %v1533_v5 = vsel %vm741_vm3, %v4288_v42, 0.0 }
 0x469   : > { %1531 = vadd.xlane.f32.xlu0 %v1530_v29 }
 0x470   : > { %v1013_v34 = vpop.xlane.xlu1 %1012 }
 0x471   : > { %3574 = vrcp.f32 %v1013_v34  ;;  %1283 = vadd.xlane.f32.xlu0 %v1282_v51  ;;  %v1037_v43 = vand.u32 2147483648, %v1013_v34  ;;  %v1035_v46 = vand.u32 2147483647, %v1013_v34  ;;  %vm1031_vm11 = vweird.f32 %v1013_v34 }
 0x472   : > { %3576 = vpow2.f32 %v1266_v20 }
 0x473   : > { %v1038_v52 = vor.u32 1.1754944e-38, %v1037_v43  ;;  %vm1036_vm13 = vcmp.eq.f32.partialorder %v1035_v46, 8.507059e+37 }
 0x477   : > { %v3575_v2 = vpop.eup %3574  ;;  %1534 = vadd.xlane.f32.xlu1 %v1533_v5 }
 0x478   : > { %v1027_v36 = vmul.f32 %v3575_v2, %v1013_v34  ;;  %v1016_v38 = vpop.xlane.xlu0 %1015  ;;  %v4293_v40 = vpop.eup %3576  ;;  %vm1032_vm10 = vweird.f32 %v3575_v2 }
 0x479   : > { %3578 = vrcp.f32 %v1016_v38  ;;  %v1279_v56 = vsel %vm741_vm3, %v4293_v40, 0.0  ;;  %vm1033_vm12 = vmor %vm1031_vm11, %vm1032_vm10  ;;  %v1051_v23 = vand.u32 2147483648, %v1016_v38  ;;  %v1049_v27 = vand.u32 2147483647, %v1016_v38 }
 0x47a   : > { %v1028_v41 = vsub.f32 1.0, %v1027_v36  ;;  %3580 = vpow2.f32 %v1522_v60  ;;  %vm1045_vm15 = vweird.f32 %v1016_v38 }
 0x47b   : > { %v1052_v37 = vor.u32 1.1754944e-38, %v1051_v23  ;;  %vm1050_vm1 = vcmp.eq.f32.partialorder %v1049_v27, 8.507059e+37 }
 0x47c   : > { %v1029_v44 = vmul.f32 %v3575_v2, %v1028_v41  ;;  %1280 = vadd.xlane.f32.xlu2 %v1279_v56 }
 0x47e   : > { %v1030_v49 = vadd.f32 %v3575_v2, %v1029_v44 }
 0x47f   : > { %v3579_v16 = vpop.eup %3578 }
 0x480   : > { %v1041_v17 = vmul.f32 %v3579_v16, %v1016_v38  ;;  %v1034_v19 = vsel %vm1033_vm12, %v3575_v2, %v1030_v49  ;;  %v4297_v54 = vpop.eup %3580  ;;  %vm1046_vm14 = vweird.f32 %v3579_v16 }
 0x481   : > { %v1039_v57 = vsel %vm1036_vm13, %v1038_v52, %v1034_v19  ;;  %v1536_v63 = vsel %vm741_vm3, %v4297_v54, 0.0  ;;  %vm1047_vm0 = vmor %vm1045_vm15, %vm1046_vm14 }
 0x482   : > { %v1042_v58 = vsub.f32 1.0, %v1041_v17  ;;  %v1096_v59 = vmul.f32 %v4184_v1, %v1039_v57 }
 0x484   : > { %v1043_v62 = vmul.f32 %v3579_v16, %v1042_v58  ;;  %3367 = vmatmul.msk.f32.vlgmr.msrb.gmra.mxu1 %vm741_vm3, %v1096_v59  ;;  %1537 = vadd.xlane.f32.xlu2 %v1536_v63 }
 0x486   : > { %v1044_v3 = vadd.f32 %v3579_v16, %v1043_v62 }
 0x488   : > { %v1048_v18 = vsel %vm1047_vm0, %v3579_v16, %v1044_v3 }
 0x489   : > { %v1053_v8 = vsel %vm1050_vm1, %v1052_v37, %v1048_v18 }
 0x48a   : > { %v1097_v9 = vmul.f32 %v4188_v24, %v1053_v8 }
 0x48c   : > { %3368 = vmatmul.msk.f32.gmra.mxu1 %vm741_vm3, %v1097_v9 }
 0x48e   : > { %v1272_v1 = vpop.xlane.xlu2 %1271 }
 0x48f   : > { %3582 = vrcp.f32 %v1272_v1  ;;  %v1296_v29 = vand.u32 2147483648, %v1272_v1  ;;  %vm1290_vm5 = vweird.f32 %v1272_v1  ;;  %v1294_v33 = vand.u32 2147483647, %v1272_v1 }
 0x491   : > { %v1297_v2 = vor.u32 1.1754944e-38, %v1296_v29  ;;  %vm1295_vm7 = vcmp.eq.f32.partialorder %v1294_v33, 8.507059e+37 }
 0x495   : > { %v3583_v28 = vpop.eup %3582 }
 0x496   : > { %v4305_v4 = vpop.xlane.xlu2 %1274  ;;  %v1286_v45 = vmul.f32 %v3583_v28, %v1272_v1  ;;  %vm1291_vm4 = vweird.f32 %v3583_v28 }
 0x497   : > { %3584 = vrcp.f32 %v4305_v4  ;;  %vm1292_vm6 = vmor %vm1290_vm5, %vm1291_vm4  ;;  %vm1304_vm8 = vweird.f32 %v4305_v4  ;;  %v1310_v49 = vand.u32 2147483648, %v4305_v4  ;;  %v1308_v52 = vand.u32 2147483647, %v4305_v4 }
 0x498   : > { %v1287_v10 = vsub.f32 1.0, %v1286_v45 }
 0x499   : > { %vm1309_vm4 = vcmp.eq.f32.partialorder %v1308_v52, 8.507059e+37 }
 0x49a   : > { %v1288_v24 = vmul.f32 %v3583_v28, %v1287_v10  ;;  %v1311_v10 = vor.u32 1.1754944e-38, %v1310_v49 }
 0x49c   : > { %v1289_v22 = vadd.f32 %v3583_v28, %v1288_v24 }
 0x49d   : > { %v4313_v7 = vpop.eup %3584 }
 0x49e   : > { %v4308_v14 = vpop.xlane.xlu0 %1021  ;;  %v1019_v15 = vpop.xlane.xlu2 %1018  ;;  %v1300_v21 = vmul.f32 %v4313_v7, %v4305_v4  ;;  %v1293_v61 = vsel %vm1292_vm6, %v3583_v28, %v1289_v22  ;;  %vm1305_vm11 = vweird.f32 %v4313_v7 }
 0x49f   : > { %v4310_v26 = vpop.xlane.xlu1 %1277  ;;  %3586 = vrcp.f32 %v4308_v14  ;;  %v1065_v41 = vand.u32 2147483648, %v1019_v15  ;;  %v1063_v43 = vand.u32 2147483647, %v1019_v15  ;;  %v1298_v44 = vsel %vm1295_vm7, %v1297_v2, %v1293_v61  ;;  %vm4354_vm0 = vmor %vm1304_vm8, %vm1305_vm11 }
 0x4a0   : > { %3588 = vrcp.f32 %v1019_v15  ;;  %v1301_v32 = vsub.f32 1.0, %v1300_v21  ;;  %vm1059_vm10 = vweird.f32 %v1019_v15  ;;  %v1355_v23 = vmul.f32 %v4202_v25, %v1298_v44 }
 0x4a1   : > { %3590 = vrcp.f32 %v4310_v26  ;;  %v1066_v59 = vor.u32 1.1754944e-38, %v1065_v41  ;;  %vm1064_vm13 = vcmp.eq.f32.partialorder %v1063_v43, 8.507059e+37  ;;  %vm1073_vm15 = vweird.f32 %v4308_v14 }
 0x4a2   : > { %v1302_v60 = vmul.f32 %v4313_v7, %v1301_v32  ;;  %v1079_v18 = vand.u32 2147483648, %v4308_v14  ;;  %v1077_v28 = vand.u32 2147483647, %v4308_v14  ;;  %vm1318_vm5 = vweird.f32 %v4310_v26 }
 0x4a4   : > { %v1303_v58 = vadd.f32 %v4313_v7, %v1302_v60  ;;  %vm1078_vm6 = vcmp.eq.f32.partialorder %v1077_v28, 8.507059e+37 }
 0x4a5   : > { %v4318_v50 = vpop.eup %3586 }
 0x4a6   : > { %v1069_v11 = vmul.f32 %v4318_v50, %v4308_v14  ;;  %v3589_v13 = vpop.eup %3588  ;;  %v4322_v39 = vpop.xlane.xlu2 %1024  ;;  %vm1074_vm14 = vweird.f32 %v4318_v50  ;;  %v1307_v45 = vsel %vm4354_vm0, %v4313_v7, %v1303_v58  ;;  %v1080_v7 = vor.u32 1.1754944e-38, %v1079_v18 }
 0x4a7   : > { %v4324_v20 = vpop.eup %3590  ;;  %v1055_v34 = vmul.f32 %v3589_v13, %v1019_v15  ;;  %3592 = vrcp.f32 %v4322_v39  ;;  %vm1060_vm9 = vweird.f32 %v3589_v13  ;;  %v4344_v63 = vpop.xlane.xlu1 %1528  ;;  %vm4366_vm1 = vmor %vm1073_vm15, %vm1074_vm14  ;;  %v1312_v24 = vsel %vm1309_vm4, %v1311_v10, %v1307_v45 }
 0x4a8   : > { %v1070_v51 = vsub.f32 1.0, %v1069_v11  ;;  %v1314_v36 = vmul.f32 %v4324_v20, %v4310_v26  ;;  %vm1061_vm12 = vmor %vm1059_vm10, %vm1060_vm9  ;;  %vm1319_vm7 = vweird.f32 %v4324_v20  ;;  %vm1087_vm10 = vweird.f32 %v4322_v39 }
 0x4a9   : > { %v1056_v5 = vsub.f32 1.0, %v1055_v34  ;;  %v1356_v34 = vmul.f32 %v4211_v47, %v1312_v24  ;;  %vm4387_vm9 = vmor %vm1318_vm5, %vm1319_vm7  ;;  %v1091_v47 = vand.u32 2147483647, %v4322_v39  ;;  %vm1558_vm5 = vweird.f32 %v4344_v63 }
 0x4aa   : > { %v1071_v46 = vmul.f32 %v4318_v50, %v1070_v51  ;;  %v1315_v17 = vsub.f32 1.0, %v1314_v36 }
 0x4ab   : > { %v1057_v38 = vmul.f32 %v3589_v13, %v1056_v5  ;;  %v1093_v5 = vand.u32 2147483648, %v4322_v39 }
 0x4ac   : > { %v1072_v37 = vadd.f32 %v4318_v50, %v1071_v46  ;;  %v1316_v9 = vmul.f32 %v4324_v20, %v1315_v17 }
 0x4ad   : > { %v4332_v56 = vpop.eup %3592  ;;  %v1058_v16 = vadd.f32 %v3589_v13, %v1057_v38 }
 0x4ae   : > { %v1083_v19 = vmul.f32 %v4332_v56, %v4322_v39  ;;  %v4338_v57 = vpop.xlane.xlu2 %1525  ;;  %v1317_v11 = vadd.f32 %v4324_v20, %v1316_v9  ;;  %vm1088_vm8 = vweird.f32 %v4332_v56 }
 0x4af   : > { %3594 = vrcp.f32 %v4338_v57  ;;  %v1062_v3 = vsel %vm1061_vm12, %v3589_v13, %v1058_v16  ;;  %v1324_v13 = vand.u32 2147483648, %v4310_v26  ;;  %vm1089_vm11 = vmor %vm1087_vm10, %vm1088_vm8  ;;  %v1550_v17 = vand.u32 2147483648, %v4338_v57 }
 0x4b0   : > { %v1084_v62 = vsub.f32 1.0, %v1083_v19  ;;  %v1067_v8 = vsel %vm1064_vm13, %v1066_v59, %v1062_v3  ;;  %3596 = vrcp.f32 %v4344_v63  ;;  %v1321_v38 = vsel %vm4387_vm9, %v4324_v20, %v1317_v11 }
 0x4b1   : > { %v1361_v27 = vpop.permute.xlu0 %1360  ;;  %v1098_v1 = vmul.f32 %v4217_v55, %v1067_v8  ;;  %v1076_v55 = vsel %vm4366_vm1, %v4318_v50, %v1072_v37  ;;  %v1322_v50 = vand.u32 2147483647, %v4310_v26  ;;  %v1325_v41 = vor.u32 1.1754944e-38, %v1324_v13 }
 0x4b2   : > { %1405 = vmatpush.msra.mxu3 %v1361_v27  ;;  %v1085_v15 = vmul.f32 %v4332_v56, %v1084_v62  ;;  %v1081_v32 = vsel %vm1078_vm6, %v1080_v7, %v1076_v55  ;;  %vm1092_vm13 = vcmp.eq.f32.partialorder %v1091_v47, 8.507059e+37  ;;  %vm1544_vm15 = vweird.f32 %v4338_v57 }
 0x4b3   : > { %3382 = vmatmul.msk.f32.vlgmr.msra.gmra.mxu3 %vm741_vm3, %v1355_v23  ;;  %3369 = vmatmul.msk.f32.gmra.mxu1 %vm741_vm3, %v1098_v1  ;;  %v1099_v36 = vmul.f32 %v4225_v6, %v1081_v32  ;;  %vm1323_vm12 = vcmp.eq.f32.partialorder %v1322_v50, 8.507059e+37  ;;  %v1094_v6 = vor.u32 1.1754944e-38, %v1093_v5  ;;  %v1548_v19 = vand.u32 2147483647, %v4338_v57 }
 0x4b4   : > { %v1086_v51 = vadd.f32 %v4332_v56, %v1085_v15  ;;  %v1326_v46 = vsel %vm1323_vm12, %v1325_v41, %v1321_v38  ;;  %v1551_v23 = vor.u32 1.1754944e-38, %v1550_v17 }
 0x4b5   : > { %v3595_v14 = vpop.eup %3594  ;;  %v1357_v20 = vmul.f32 %v4233_v48, %v1326_v46  ;;  %vm1549_vm1 = vcmp.eq.f32.partialorder %v1548_v19, 8.507059e+37  ;;  %v1564_v48 = vand.u32 2147483648, %v4344_v63 }
 0x4b6   : > { %v1540_v21 = vmul.f32 %v3595_v14, %v4338_v57  ;;  %v3502_v22 = vpop.permute.xlu2 %3501  ;;  %v3597_v61 = vpop.eup %3596  ;;  %v1090_v44 = vsel %vm1089_vm11, %v4332_v56, %v1086_v51  ;;  %vm1545_vm14 = vweird.f32 %v3595_v14 }
 0x4b7   : > { %v3503_v29 = vunpack.i.l.bf16 %v3502_v22  ;;  %v3504_v2 = vunpack.i.h.bf16 %v3502_v22  ;;  %v1554_v26 = vmul.f32 %v3597_v61, %v4344_v63  ;;  %v1095_v39 = vsel %vm1092_vm13, %v1094_v6, %v1090_v44  ;;  %vm1546_vm0 = vmor %vm1544_vm15, %vm1545_vm14 }
 0x4b8   : > { %v1541_v33 = vsub.f32 1.0, %v1540_v21  ;;  %v1100_v56 = vmul.f32 %v4252_v31, %v1095_v39  ;;  %vm1559_vm4 = vweird.f32 %v3597_v61  ;;  %v1562_v31 = vand.u32 2147483647, %v4344_v63 }
 0x4b9   : > { %1657 = vmatpush.msra.mxu1 %v3503_v29  ;;  %v1555_v16 = vsub.f32 1.0, %v1554_v26  ;;  %vm1560_vm6 = vmor %vm1558_vm5, %vm1559_vm4  ;;  %v1565_v37 = vor.u32 1.1754944e-38, %v1564_v48 }
 0x4ba   : > { %v1542_v43 = vmul.f32 %v3595_v14, %v1541_v33  ;;  %vm1563_vm7 = vcmp.eq.f32.partialorder %v1562_v31, 8.507059e+37 }
 0x4bb   : > { %3383 = vmatmul.msk.f32.gmra.mxu3 %vm741_vm3, %v1356_v34  ;;  %1658 = vmatpush.msra.mxu1 %v3504_v2  ;;  %v1556_v58 = vmul.f32 %v3597_v61, %v1555_v16 }
 0x4bc   : > { %3370 = vmatmul.msk.f32.gmra.mxu1 %vm741_vm3, %v1099_v36  ;;  %v1543_v52 = vadd.f32 %v3595_v14, %v1542_v43 }
 0x4bd   : > { %v1557_v27 = vadd.f32 %v3597_v61, %v1556_v58 }
 0x4be   : > { %v1547_v59 = vsel %vm1546_vm0, %v3595_v14, %v1543_v52 }
 0x4bf   : > { %v1615_v49 = vpop.permute.xlu1 %1614  ;;  %v1552_v62 = vsel %vm1549_vm1, %v1551_v23, %v1547_v59  ;;  %v1561_v3 = vsel %vm1560_vm6, %v3597_v61, %v1557_v27 }
 0x4c0   : > { %1659 = vmatpush.msra.mxu1 %v1615_v49  ;;  %v1609_v57 = vmul.f32 %v4259_v35, %v1552_v62  ;;  %v1566_v18 = vsel %vm1563_vm7, %v1565_v37, %v1561_v3 }
 0x4c1   : > { %v1610_v8 = vmul.f32 %v4249_v0, %v1566_v18 }
 0x4c3   : > { %3384 = vmatmul.msk.f32.gmra.mxu3 %vm741_vm3, %v1357_v20 }
 0x4c4   : > { %3371 = vmatmul.msk.f32.gmra.mxu1 %vm741_vm3, %v1100_v56 }
 0x4cc   : > { %3397 = vmatmul.msk.f32.vlgmr.msra.gmra.mxu1 %vm741_vm3, %v1609_v57 }
 0x4d4   : > { %3398 = vmatmul.msk.f32.gmra.mxu1 %vm741_vm3, %v1610_v8  ;;  %v4435_v8 = vpop.f32.mrf.mxu3 }
 0x4dc   : > { %v1532_v25 = vpop.xlane.xlu0 %1531 }
 0x4dd   : > { %3598 = vrcp.f32 %v1532_v25  ;;  %v1578_v45 = vand.u32 2147483648, %v1532_v25  ;;  %v1576_v10 = vand.u32 2147483647, %v1532_v25  ;;  %vm1572_vm9 = vweird.f32 %v1532_v25 }
 0x4df   : > { %v1579_v55 = vor.u32 1.1754944e-38, %v1578_v45  ;;  %vm1577_vm11 = vcmp.eq.f32.partialorder %v1576_v10, 8.507059e+37 }
 0x4e3   : > { %v3599_v9 = vpop.eup %3598 }
 0x4e4   : > { %v1568_v1 = vmul.f32 %v3599_v9, %v1532_v25  ;;  %v4415_v35 = vpop.xlane.xlu0 %1283  ;;  %vm1573_vm8 = vweird.f32 %v3599_v9 }
 0x4e5   : > { %3600 = vrcp.f32 %v4415_v35  ;;  %vm1574_vm10 = vmor %vm1572_vm9, %vm1573_vm8  ;;  %v1352_v20 = vand.u32 2147483648, %v4415_v35  ;;  %vm1346_vm7 = vweird.f32 %v4415_v35  ;;  %v1350_v58 = vand.u32 2147483647, %v4415_v35 }
 0x4e6   : > { %v1569_v28 = vsub.f32 1.0, %v1568_v1 }
 0x4e7   : > { %v1353_v48 = vor.u32 1.1754944e-38, %v1352_v20 }
 0x4e8   : > { %v1570_v63 = vmul.f32 %v3599_v9, %v1569_v28  ;;  %v4442_v28 = vpop.f32.mrf.mxu3 }
 0x4ea   : > { %v1535_v4 = vpop.xlane.xlu1 %1534  ;;  %v1571_v15 = vadd.f32 %v3599_v9, %v1570_v63 }
 0x4eb   : > { %3602 = vrcp.f32 %v1535_v4  ;;  %v4419_v24 = vpop.eup %3600  ;;  %v1592_v32 = vand.u32 2147483648, %v1535_v4  ;;  %v1590_v33 = vand.u32 2147483647, %v1535_v4  ;;  %vm1586_vm13 = vweird.f32 %v1535_v4 }
 0x4ec   : > { %v1575_v0 = vsel %vm1574_vm10, %v3599_v9, %v1571_v15  ;;  %v1342_v13 = vmul.f32 %v4419_v24, %v4415_v35  ;;  %vm1347_vm5 = vweird.f32 %v4419_v24 }
 0x4ed   : > { %v1580_v14 = vsel %vm1577_vm11, %v1579_v55, %v1575_v0  ;;  %v1593_v2 = vor.u32 1.1754944e-38, %v1592_v32  ;;  %vm1591_vm15 = vcmp.eq.f32.partialorder %v1590_v33, 8.507059e+37  ;;  %vm1348_vm8 = vmor %vm1346_vm7, %vm1347_vm5  ;;  %vm1351_vm11 = vcmp.eq.f32.partialorder %v1350_v58, 8.507059e+37 }
 0x4ee   : > { %v1611_v7 = vmul.f32 %v4277_v30, %v1580_v14  ;;  %v1343_v51 = vsub.f32 1.0, %v1342_v13  ;;  %v1764_v13 = vld [vmem:[%s3740_s11 + $0x58] sm:$0xff] }
 0x4ef   : > { %v1281_v21 = vpop.xlane.xlu2 %1280 }
 0x4f0   : > { %3399 = vmatmul.msk.f32.gmra.mxu1 %vm741_vm3, %v1611_v7  ;;  %3604 = vrcp.f32 %v1281_v21  ;;  %v1344_v47 = vmul.f32 %v4419_v24, %v1343_v51  ;;  %v1338_v38 = vand.u32 2147483648, %v1281_v21  ;;  %v1336_v44 = vand.u32 2147483647, %v1281_v21  ;;  %v4444_v45 = vpop.f32.mrf.mxu3  ;;  %v1761_v51 = vld [vmem:[%s3740_s11 + $0x40] sm:$0xff] }
 0x4f1   : > { %v3603_v22 = vpop.eup %3602  ;;  %vm1332_vm1 = vweird.f32 %v1281_v21 }
 0x4f2   : > { %v1582_v11 = vmul.f32 %v3603_v22, %v1535_v4  ;;  %vm1587_vm12 = vweird.f32 %v3603_v22  ;;  %v1339_v49 = vor.u32 1.1754944e-38, %v1338_v38  ;;  %vm1337_vm6 = vcmp.eq.f32.partialorder %v1336_v44, 8.507059e+37  ;;  %v1754_v38 = vld [vmem:[%s3740_s11 + $0x8] sm:$0xff] }
 0x4f3   : > { %vm1588_vm14 = vmor %vm1586_vm13, %vm1587_vm12  ;;  %v1345_v52 = vadd.f32 %v4419_v24, %v1344_v47  ;;  %v1755_v47 = vld [vmem:[%s3740_s11 + $0x10] sm:$0xff] }
 0x4f4   : > { %v1583_v29 = vsub.f32 1.0, %v1582_v11  ;;  %v1765_v11 = vld [vmem:[%s3740_s11 + $0x60] sm:$0xff] }
 0x4f5   : > { %v1349_v62 = vsel %vm1348_vm8, %v4419_v24, %v1345_v52  ;;  %v1768_v24 = vld [vmem:[%s3740_s11 + $0x78] sm:$0xff] }
 0x4f6   : > { %v1584_v50 = vmul.f32 %v3603_v22, %v1583_v29  ;;  %v3605_v34 = vpop.eup %3604  ;;  %v1354_v3 = vsel %vm1351_vm11, %v1353_v48, %v1349_v62  ;;  %1771 = vmatpush.msra.mxu2 %v1768_v24  ;;  %v1763_v29 = vld [vmem:[%s3740_s11 + $0x50] sm:$0xff] }
 0x4f7   : > { %v1328_v30 = vmul.f32 %v3605_v34, %v1281_v21  ;;  %v1538_v61 = vpop.xlane.xlu2 %1537  ;;  %vm1333_vm0 = vweird.f32 %v3605_v34  ;;  %v1359_v9 = vmul.f32 %v4284_v53, %v1354_v3  ;;  %v1767_v21 = vld [vmem:[%s3740_s11 + $0x70] sm:$0xff] }
 0x4f8   : > { %v1585_v5 = vadd.f32 %v3603_v22, %v1584_v50  ;;  %3606 = vrcp.f32 %v1538_v61  ;;  %vm1334_vm4 = vmor %vm1332_vm1, %vm1333_vm0  ;;  %v1606_v59 = vand.u32 2147483648, %v1538_v61  ;;  %v1604_v27 = vand.u32 2147483647, %v1538_v61  ;;  %v4446_v35 = vpop.f32.mrf.mxu3  ;;  %1772 = vmatpush.msra.mxu2 %v1767_v21  ;;  %v1762_v50 = vld [vmem:[%s3740_s11 + $0x48] sm:$0xff] }
 0x4f9   : > { %v1329_v60 = vsub.f32 1.0, %v1328_v30  ;;  %vm1600_vm10 = vweird.f32 %v1538_v61  ;;  %v1760_v30 = vld [vmem:[%s3740_s11 + $0x38] sm:$0xff] }
 0x4fa   : > { %v1589_v36 = vsel %vm1588_vm14, %v3603_v22, %v1585_v5  ;;  %v1607_v31 = vor.u32 1.1754944e-38, %v1606_v59  ;;  %vm1605_vm13 = vcmp.eq.f32.partialorder %v1604_v27, 8.507059e+37  ;;  %v1766_v22 = vld [vmem:[%s3740_s11 + $0x68] sm:$0xff]  ;;  %v1759_v5 = vld [vmem:[%s3740_s11 + $0x30] sm:$0xff]  ;;  %vm1747_vm14 = vcmask 785408  }
 0x4fb   : > { %v1594_v41 = vsel %vm1591_vm15, %v1593_v2, %v1589_v36  ;;  %v1330_v26 = vmul.f32 %v3605_v34, %v1329_v60  ;;  %1773 = vmatpush.msra.mxu2 %v1766_v22  ;;  %v1758_v2 = vld [vmem:[%s3740_s11 + $0x28] sm:$0xff]  ;;  %v1757_v60 = vld [vmem:[%s3740_s11 + $0x20] sm:$0xff]  ;;  %v1756_v36 = vld [vmem:[%s3740_s11 + $0x18] sm:$0xff] }
 0x4fc   : > { %v1612_v43 = vmul.f32 %v4288_v42, %v1594_v41  ;;  %v1753_v41 = vld [vmem:[%s3740_s11] sm:$0xff] }
 0x4fd   : > { %v1331_v6 = vadd.f32 %v3605_v34, %v1330_v26  ;;  %1774 = vmatpush.msra.mxu2 %v1765_v11  ;;  %v3661_v11 = vld [vmem:[#allocation2 + $0x10] sm:$0xff] }
 0x4fe   : > { %3400 = vmatmul.msk.f32.gmra.mxu1 %vm741_vm3, %v1612_v43  ;;  %v3607_v46 = vpop.eup %3606 }
 0x4ff   : > { %v1596_v39 = vmul.f32 %v3607_v46, %v1538_v61  ;;  %v1335_v16 = vsel %vm1334_vm4, %v3605_v34, %v1331_v6  ;;  %vm1601_vm9 = vweird.f32 %v3607_v46  ;;  %1775 = vmatpush.msra.mxu2 %v1764_v13 }
 0x500   : > { %v1340_v42 = vsel %vm1337_vm6, %v1339_v49, %v1335_v16  ;;  %vm1602_vm12 = vmor %vm1600_vm10, %vm1601_vm9  ;;  %v4448_v63 = vpop.f32.mrf.mxu3 }
 0x501   : > { %v1153_v17 = vpop.f32.mrf.mxu1  ;;  %v1597_v19 = vsub.f32 1.0, %v1596_v39  ;;  %v1358_v56 = vmul.f32 %v4293_v40, %v1340_v42  ;;  %1776 = vmatpush.msra.mxu2 %v1763_v29 }
 0x503   : > { %v1598_v23 = vmul.f32 %v3607_v46, %v1597_v19  ;;  %3385 = vmatmul.msk.f32.gmra.mxu3 %vm741_vm3, %v1358_v56  ;;  %1777 = vmatpush.msra.mxu2 %v1762_v50  ;;  %v3662_v50 = vld [vmem:[#allocation2 + $0x18] sm:$0xff] }
 0x505   : > { %v1599_v57 = vadd.f32 %v3607_v46, %v1598_v23  ;;  %1778 = vmatpush.msra.mxu2 %v1761_v51 }
 0x507   : > { %v1603_v37 = vsel %vm1602_vm12, %v3607_v46, %v1599_v57  ;;  %1779 = vmatpush.msra.mxu2 %v1760_v30 }
 0x508   : > { %v1608_v18 = vsel %vm1605_vm13, %v1607_v31, %v1603_v37 }
 0x509   : > { %v1156_v40 = vpop.f32.mrf.mxu1  ;;  %v1613_v1 = vmul.f32 %v4297_v54, %v1608_v18  ;;  %1780 = vmatpush.msra.mxu2 %v1759_v5 }
 0x50a   : > { %v3505_v25 = vpack.i.bf16 %v1156_v40, %v1153_v17 }
 0x50b   : > { %3386 = vmatmul.msk.f32.gmra.mxu3 %vm741_vm3, %v1359_v9  ;;  %3401 = vmatmul.msk.f32.gmra.mxu1 %vm741_vm3, %v1613_v1  ;;  %vm1741_vm3 = vcmask 523264  }
 0x50c   : > { %3506 = vrot.lane.b32.xlu0 %v3505_v25, %s3679_s7  ;;  %1781 = vmatpush.msra.mxu2 %v1758_v2 }
 0x50e   : > { %1782 = vmatpush.msra.mxu2 %v1757_v60 }
 0x510   : > { %1783 = vmatpush.msra.mxu2 %v1756_v36 }
 0x512   : > { %1784 = vmatpush.msra.mxu2 %v1755_v47 }
 0x514   : > { %1785 = vmatpush.msra.mxu2 %v1754_v38 }
 0x516   : > { %1786 = vmatpush.msra.mxu2 %v1753_v41 }
 0x530   : > { %v1159_v10 = vpop.f32.mrf.mxu1 }
 0x536   : > { %v1407_v4 = vpop.f32.mrf.mxu3 }
 0x537   : > { %1701 = vrot.lane.b32.xlu2 %v1407_v4, %s3678_s30  ;;  %v3658_v4 = vld [vmem:[#allocation2 + $0x8] sm:$0xff] }
 0x539   : > { %v1162_v53 = vpop.f32.mrf.mxu1 }
 0x53e   : > { %v1410_v54 = vpop.f32.mrf.mxu3 }
 0x53f   : > { %1703 = vrot.lane.b32.xlu0 %v1410_v54, %s3678_s30 }
 0x541   : > { %v1165_v15 = vpop.f32.mrf.mxu1 }
 0x546   : > { %v1413_v14 = vpop.f32.mrf.mxu3 }
 0x547   : > { %1685 = vrot.lane.b32.xlu0 %v1159_v10, %s3679_s7 }
 0x549   : > { %v1661_v55 = vpop.f32.mrf.mxu1 }
 0x54a   : > { %1721 = vrot.lane.b32.xlu1 %v1661_v55, %s3677_s28  ;;  %v3659_v55 = vld [vmem:[#allocation2] sm:$0xff] }
 0x551   : > { %v1664_v0 = vpop.f32.mrf.mxu1 }
 0x552   : > { %1687 = vrot.lane.b32.xlu1 %v1162_v53, %s3679_s7  ;;  %1723 = vrot.lane.b32.xlu2 %v1664_v0, %s3677_s28 }
 0x55a   : > { %1689 = vrot.lane.b32.xlu1 %v1165_v15, %s3679_s7  ;;  %1705 = vrot.lane.b32.xlu2 %v1413_v14, %s3678_s30 }
 0x56d   : > { %v1667_v7 = vpop.f32.mrf.mxu1 }
 0x56e   : > { %1725 = vrot.lane.b32.xlu0 %v1667_v7, %s3677_s28  ;;  %v3660_v7 = vld [vmem:[#allocation2 + $0x20] sm:$0xff] }
 0x57b   : > { %v1670_v32 = vpop.f32.mrf.mxu1 }
 0x57c   : > { %1727 = vrot.lane.b32.xlu0 %v1670_v32, %s3677_s28 }
 0x57e   : > { %v3507_v26 = vpop.permute.xlu0 %3506 }
 0x57f   : > { %v3508_v43 = vunpack.i.l.bf16 %v3507_v26  ;;  %v3509_v39 = vunpack.i.h.bf16 %v3507_v26  ;;  %v1982_v26 = vld [vmem:[%s3735_s8 + $0x1e0] sm:$0xff] }
 0x580   : > { %1997 = vmatpush.msrb.mxu3 %v1982_v26  ;;  %v1940_v26 = vld [vmem:[%s3735_s8 + $0x90] sm:$0xff] }
 0x581   : > { %v1736_v6 = vsel %vm678_vm2, %v4435_v8, %v3508_v43  ;;  %v1737_v20 = vsel %vm678_vm2, %v4442_v28, %v3509_v39  ;;  %v1983_v43 = vld [vmem:[%s3735_s8 + $0x1e8] sm:$0xff] }
 0x582   : > { %2029 = vmatpush.msrb.mxu0 %v1983_v43  ;;  %v1941_v43 = vld [vmem:[%s3735_s8 + $0x98] sm:$0xff] }
 0x586   : > { %v1416_v33 = vpop.f32.mrf.mxu3 }
 0x587   : > { %1707 = vrot.lane.b32.xlu2 %v1416_v33, %s3678_s30 }
 0x588   : > { %v1673_v34 = vpop.f32.mrf.mxu1 }
 0x589   : > { %1729 = vrot.lane.b32.xlu0 %v1673_v34, %s3677_s28 }
 0x58e   : > { %v1419_v61 = vpop.f32.mrf.mxu3 }
 0x58f   : > { %1709 = vrot.lane.b32.xlu2 %v1419_v61, %s3678_s30 }
 0x591   : > { %v1702_v44 = vpop.permute.xlu2 %1701 }
 0x592   : > { %v1742_v46 = vsel %vm1741_vm3, %v1736_v6, %v1702_v44  ;;  %v1984_v44 = vld [vmem:[%s3735_s8 + $0x1f0] sm:$0xff]  ;;  %v1985_v6 = vld [vmem:[%s3735_s8 + $0x1f8] sm:$0xff] }
 0x593   : > { %2061 = vmatpush.msrb.mxu1 %v1984_v44  ;;  %2093 = vmatpush.msrb.mxu2 %v1985_v6  ;;  %v1934_v44 = vld [vmem:[%s3735_s8 + $0x60] sm:$0xff]  ;;  %v1935_v6 = vld [vmem:[%s3735_s8 + $0x68] sm:$0xff] }
 0x5ac   : > { %v1724_v42 = vpop.permute.xlu2 %1723 }
 0x5b1   : > { %v1704_v52 = vpop.permute.xlu0 %1703 }
 0x5b2   : > { %v1743_v17 = vsel %vm1741_vm3, %v1737_v20, %v1704_v52  ;;  %v1981_v52 = vld [vmem:[%s3735_s8 + $0x1d8] sm:$0xff] }
 0x5b3   : > { %v1749_v19 = vsel %vm1747_vm14, %v1743_v17, %v1724_v42  ;;  %2094 = vmatpush.msrb.mxu2 %v1981_v52  ;;  %v1932_v52 = vld [vmem:[%s3735_s8 + $0x50] sm:$0xff] }
 0x5b4   : > { %v1706_v59 = vpop.permute.xlu2 %1705 }
 0x5b9   : > { %v1686_v56 = vpop.permute.xlu0 %1685 }
 0x5ba   : > { %v1738_v58 = vsel %vm678_vm2, %v4444_v45, %v1686_v56  ;;  %v3512_v45 = vld [vmem:[%s3740_s11 + $0x282] ss:$0 sm:$0xff] }
 0x5bb   : > { %v1744_v62 = vsel %vm1741_vm3, %v1738_v58, %v1706_v59 }
 0x5bc   : > { %v1722_v49 = vpop.permute.xlu1 %1721 }
 0x5bd   : > { %v1748_v16 = vsel %vm1747_vm14, %v1742_v46, %v1722_v49  ;;  %v1978_v46 = vld [vmem:[%s3735_s8 + $0x1c0] sm:$0xff]  ;;  %v1979_v49 = vld [vmem:[%s3735_s8 + $0x1c8] sm:$0xff] }
 0x5be   : > { %1787 = vmatmul.f32.vlgmr.msra.gmra.mxu2 %v1748_v16  ;;  %v1980_v16 = vld [vmem:[%s3735_s8 + $0x1d0] sm:$0xff]  ;;  %1998 = vmatpush.msrb.mxu3 %v1978_v46 }
 0x5bf   : > { %2030 = vmatpush.msrb.mxu0 %v1979_v49  ;;  %2062 = vmatpush.msrb.mxu1 %v1980_v16  ;;  %v1936_v46 = vld [vmem:[%s3735_s8 + $0x70] sm:$0xff]  ;;  %v1937_v49 = vld [vmem:[%s3735_s8 + $0x78] sm:$0xff]  ;;  %v1931_v16 = vld [vmem:[%s3735_s8 + $0x48] sm:$0xff] }
 0x5c4   : > { %v1688_v48 = vpop.permute.xlu1 %1687 }
 0x5c5   : > { %v1739_v31 = vsel %vm678_vm2, %v4446_v35, %v1688_v48  ;;  %v1976_v48 = vld [vmem:[%s3735_s8 + $0x1b0] sm:$0xff] }
 0x5c6   : > { %1790 = vmatmul.f32.gmra.mxu2 %v1749_v19  ;;  %2063 = vmatpush.msrb.mxu1 %v1976_v48  ;;  %v1923_v48 = vld [vmem:[%s3735_s8 + $0x8] sm:$0xff] }
 0x5cc   : > { %v1690_v18 = vpop.permute.xlu1 %1689 }
 0x5cd   : > { %v1740_v25 = vsel %vm678_vm2, %v4448_v63, %v1690_v18  ;;  %v1966_v18 = vld [vmem:[%s3735_s8 + $0x160] sm:$0xff] }
 0x5e0   : > { %v1726_v23 = vpop.permute.xlu0 %1725 }
 0x5e1   : > { %v1750_v27 = vsel %vm1747_vm14, %v1744_v62, %v1726_v23  ;;  %v1708_v57 = vpop.permute.xlu2 %1707  ;;  %v1974_v62 = vld [vmem:[%s3735_s8 + $0x1a0] sm:$0xff] }
 0x5e2   : > { %1793 = vmatmul.f32.gmra.mxu2 %v1750_v27  ;;  %v1745_v3 = vsel %vm1741_vm3, %v1739_v31, %v1708_v57  ;;  %v1975_v27 = vld [vmem:[%s3735_s8 + $0x1a8] sm:$0xff]  ;;  %1999 = vmatpush.msrb.mxu3 %v1974_v62  ;;  %v1977_v57 = vld [vmem:[%s3735_s8 + $0x1b8] sm:$0xff]  ;;  %v1970_v31 = vld [vmem:[%s3735_s8 + $0x180] sm:$0xff] }
 0x5e3   : > { %2031 = vmatpush.msrb.mxu0 %v1975_v27  ;;  %2095 = vmatpush.msrb.mxu2 %v1977_v57  ;;  %v1929_v62 = vld [vmem:[%s3735_s8 + $0x38] sm:$0xff]  ;;  %v1922_v27 = vld [vmem:[%s3735_s8] sm:$0xff]  ;;  %v1924_v57 = vld [vmem:[%s3735_s8 + $0x10] sm:$0xff] }
 0x5e4   : > { %2000 = vmatpush.msrb.mxu3 %v1970_v31  ;;  %v1925_v31 = vld [vmem:[%s3735_s8 + $0x18] sm:$0xff] }
 0x5e6   : > { %2001 = vmatpush.msrb.mxu3 %v1966_v18 }
 0x5e9   : > { %v1710_v8 = vpop.permute.xlu2 %1709 }
 0x5ea   : > { %v1746_v9 = vsel %vm1741_vm3, %v1740_v25, %v1710_v8  ;;  %v1967_v8 = vld [vmem:[%s3735_s8 + $0x168] sm:$0xff]  ;;  %v1968_v25 = vld [vmem:[%s3735_s8 + $0x170] sm:$0xff] }
 0x5ee   : > { %v1728_v37 = vpop.permute.xlu0 %1727 }
 0x5ef   : > { %v1751_v40 = vsel %vm1747_vm14, %v1745_v3, %v1728_v37  ;;  %v1971_v3 = vld [vmem:[%s3735_s8 + $0x188] sm:$0xff]  ;;  %v1972_v37 = vld [vmem:[%s3735_s8 + $0x190] sm:$0xff] }
 0x5f0   : > { %1796 = vmatmul.f32.gmra.mxu2 %v1751_v40  ;;  %2032 = vmatpush.msrb.mxu0 %v1971_v3  ;;  %v1973_v40 = vld [vmem:[%s3735_s8 + $0x198] sm:$0xff] }
 0x5f1   : > { %2064 = vmatpush.msrb.mxu1 %v1972_v37  ;;  %2096 = vmatpush.msrb.mxu2 %v1973_v40 }
 0x5f2   : > { %2033 = vmatpush.msrb.mxu0 %v1967_v8 }
 0x5f3   : > { %2065 = vmatpush.msrb.mxu1 %v1968_v25 }
 0x5fb   : > { %v1730_v1 = vpop.permute.xlu0 %1729 }
 0x5fc   : > { %v1752_v28 = vsel %vm1747_vm14, %v1746_v9, %v1730_v1  ;;  %v1969_v9 = vld [vmem:[%s3735_s8 + $0x178] sm:$0xff]  ;;  %v1962_v1 = vld [vmem:[%s3735_s8 + $0x140] sm:$0xff] }
 0x5fd   : > { %1799 = vmatmul.f32.gmra.mxu2 %v1752_v28  ;;  %v1963_v28 = vld [vmem:[%s3735_s8 + $0x148] sm:$0xff]  ;;  %2002 = vmatpush.msrb.mxu3 %v1962_v1 }
 0x5fe   : > { %2097 = vmatpush.msrb.mxu2 %v1969_v9  ;;  %2034 = vmatpush.msrb.mxu0 %v1963_v28 }
 0x641   : > { %v1788_v10 = vpop.f32.mrf.mxu2 }
 0x642   : > { %v1789_v35 = vadd.f32 %v3512_v45, %v1788_v10  ;;  %v1965_v10 = vld [vmem:[%s3735_s8 + $0x158] sm:$0xff] }
 0x643   : > { %2098 = vmatpush.msrb.mxu2 %v1965_v10 }
 0x644   : > { %v4500_v53 = vadd.f32 %v3658_v4, %v1789_v35  ;;  %v1958_v35 = vld [vmem:[%s3735_s8 + $0x120] sm:$0xff]  ;;  %v1959_v4 = vld [vmem:[%s3735_s8 + $0x128] sm:$0xff] }
 0x645   : > { %2003 = vmatpush.msrb.mxu3 %v1958_v35  ;;  %2035 = vmatpush.msrb.mxu0 %v1959_v4  ;;  %v4612_v4 = vld [vmem:[%s3740_s11 + $0x283] ss:$0 sm:$0xff] }
 0x646   : > { %5679 = vst [vmem:[#allocation4_spill] sm:$0xff] %v4500_v53  ;;  %1810 = vadd.xlane.f32.xlu1 %v4500_v53 }
 0x649   : > { %v1791_v54 = vpop.f32.mrf.mxu2 }
 0x64a   : > { %v1792_v15 = vadd.f32 %v3512_v45, %v1791_v54  ;;  %v1960_v54 = vld [vmem:[%s3735_s8 + $0x130] sm:$0xff] }
 0x64c   : > { %v4503_v0 = vadd.f32 %v3659_v55, %v1792_v15  ;;  %v1961_v15 = vld [vmem:[%s3735_s8 + $0x138] sm:$0xff]  ;;  %v1954_v55 = vld [vmem:[%s3735_s8 + $0x100] sm:$0xff] }
 0x64d   : > { %2099 = vmatpush.msrb.mxu2 %v1961_v15  ;;  %2004 = vmatpush.msrb.mxu3 %v1954_v55 }
 0x64e   : > { %5680 = vst [vmem:[#allocation5_spill] sm:$0xff] %v4503_v0  ;;  %1812 = vadd.xlane.f32.xlu2 %v4503_v0 }
 0x665   : > { %v1794_v63 = vpop.f32.mrf.mxu2 }
 0x666   : > { %v1795_v14 = vadd.f32 %v3512_v45, %v1794_v63  ;;  %v1955_v63 = vld [vmem:[%s3735_s8 + $0x108] sm:$0xff] }
 0x667   : > { %2036 = vmatpush.msrb.mxu0 %v1955_v63  ;;  %v4616_v63 = vld [vmem:[%s3740_s11 + $0x284] ss:$0 sm:$0xff] }
 0x668   : > { %v4506_v24 = vadd.f32 %v3660_v7, %v1795_v14  ;;  %v1956_v14 = vld [vmem:[%s3735_s8 + $0x110] sm:$0xff]  ;;  %v1957_v7 = vld [vmem:[%s3735_s8 + $0x118] sm:$0xff] }
 0x669   : > { %2100 = vmatpush.msrb.mxu2 %v1957_v7 }
 0x66a   : > { %5681 = vst [vmem:[#allocation6_spill] sm:$0xff] %v4506_v24  ;;  %1814 = vadd.xlane.f32.xlu0 %v4506_v24 }
 0x673   : > { %v1797_v21 = vpop.f32.mrf.mxu2 }
 0x674   : > { %v1798_v22 = vadd.f32 %v3512_v45, %v1797_v21  ;;  %v1950_v21 = vld [vmem:[%s3735_s8 + $0xe0] sm:$0xff] }
 0x675   : > { %2005 = vmatpush.msrb.mxu3 %v1950_v21 }
 0x676   : > { %v4509_v13 = vadd.f32 %v3661_v11, %v1798_v22  ;;  %v1951_v22 = vld [vmem:[%s3735_s8 + $0xe8] sm:$0xff]  ;;  %v1952_v11 = vld [vmem:[%s3735_s8 + $0xf0] sm:$0xff] }
 0x677   : > { %2037 = vmatpush.msrb.mxu0 %v1951_v22 }
 0x678   : > { %5682 = vst [vmem:[#allocation7_spill] sm:$0xff] %v4509_v13  ;;  %1816 = vadd.xlane.f32.xlu2 %v4509_v13 }
 0x680   : > { %v1800_v29 = vpop.f32.mrf.mxu2 }
 0x681   : > { %v1801_v32 = vadd.f32 %v3512_v45, %v1800_v29  ;;  %v1964_v45 = vld [vmem:[%s3735_s8 + $0x150] sm:$0xff]  ;;  %v1953_v29 = vld [vmem:[%s3735_s8 + $0xf8] sm:$0xff] }
 0x682   : > { %2066 = vmatpush.msrb.mxu1 %v1964_v45  ;;  %2101 = vmatpush.msrb.mxu2 %v1953_v29 }
 0x683   : > { %v4512_v33 = vadd.f32 %v3662_v50, %v1801_v32  ;;  %v1946_v32 = vld [vmem:[%s3735_s8 + $0xc0] sm:$0xff]  ;;  %v1947_v50 = vld [vmem:[%s3735_s8 + $0xc8] sm:$0xff] }
 0x684   : > { %2067 = vmatpush.msrb.mxu1 %v1960_v54  ;;  %2006 = vmatpush.msrb.mxu3 %v1946_v32 }
 0x685   : > { %5683 = vst [vmem:[#allocation8_spill] sm:$0xff] %v4512_v33  ;;  %1818 = vadd.xlane.f32.xlu1 %v4512_v33  ;;  %2038 = vmatpush.msrb.mxu0 %v1947_v50 }
 0x686   : > { %2068 = vmatpush.msrb.mxu1 %v1956_v14 }
 0x688   : > { %2069 = vmatpush.msrb.mxu1 %v1952_v11 }
 0x6b9   : > { %v1811_v34 = vpop.xlane.xlu1 %1810 }
 0x6ba   : > { %v1820_v51 = vmul.f32 %v1811_v34, %v3861_v12  ;;  %v1948_v34 = vld [vmem:[%s3735_s8 + $0xd0] sm:$0xff] }
 0x6bb   : > { %2070 = vmatpush.msrb.mxu1 %v1948_v34 }
 0x6bc   : > { %v4517_v30 = vsub.f32 %v4500_v53, %v1820_v51  ;;  %v1949_v51 = vld [vmem:[%s3735_s8 + $0xd8] sm:$0xff] }
 0x6bd   : > { %2102 = vmatpush.msrb.mxu2 %v1949_v51 }
 0x6be   : > { %v1830_v61 = vmul.f32 %v4517_v30, %v4517_v30 }
 0x6c0   : > { %1835 = vadd.xlane.f32.xlu0 %v1830_v61  ;;  %v1942_v61 = vld [vmem:[%s3735_s8 + $0xa0] sm:$0xff] }
 0x6c1   : > { %v1813_v5 = vpop.xlane.xlu2 %1812  ;;  %2007 = vmatpush.msrb.mxu3 %v1942_v61 }
 0x6c2   : > { %v1821_v2 = vmul.f32 %v1813_v5, %v3861_v12  ;;  %v1943_v5 = vld [vmem:[%s3735_s8 + $0xa8] sm:$0xff] }
 0x6c3   : > { %2039 = vmatpush.msrb.mxu0 %v1943_v5 }
 0x6c4   : > { %v4523_v60 = vsub.f32 %v4503_v0, %v1821_v2  ;;  %v1944_v2 = vld [vmem:[%s3735_s8 + $0xb0] sm:$0xff] }
 0x6c5   : > { %2071 = vmatpush.msrb.mxu1 %v1944_v2 }
 0x6c6   : > { %v1831_v36 = vmul.f32 %v4523_v60, %v4523_v60 }
 0x6c7   : > { %2072 = vmatpush.msrb.mxu1 %v1940_v26 }
 0x6c8   : > { %1837 = vadd.xlane.f32.xlu2 %v1831_v36  ;;  %v1945_v36 = vld [vmem:[%s3735_s8 + $0xb8] sm:$0xff] }
 0x6c9   : > { %2103 = vmatpush.msrb.mxu2 %v1945_v36  ;;  %2073 = vmatpush.msrb.mxu1 %v1936_v46 }
 0x6cb   : > { %2104 = vmatpush.msrb.mxu2 %v1941_v43  ;;  %2074 = vmatpush.msrb.mxu1 %v1932_v52 }
 0x6cd   : > { %2105 = vmatpush.msrb.mxu2 %v1937_v49 }
 0x6dd   : > { %v1815_v47 = vpop.xlane.xlu0 %1814 }
 0x6de   : > { %v1822_v38 = vmul.f32 %v1815_v47, %v3861_v12  ;;  %v1938_v47 = vld [vmem:[%s3735_s8 + $0x80] sm:$0xff] }
 0x6df   : > { %2008 = vmatpush.msrb.mxu3 %v1938_v47 }
 0x6e0   : > { %v4529_v41 = vsub.f32 %v4506_v24, %v1822_v38  ;;  %v1939_v38 = vld [vmem:[%s3735_s8 + $0x88] sm:$0xff] }
 0x6e1   : > { %2040 = vmatpush.msrb.mxu0 %v1939_v38  ;;  %2009 = vmatpush.msrb.mxu3 %v1934_v44 }
 0x6e2   : > { %v1832_v39 = vmul.f32 %v4529_v41, %v4529_v41 }
 0x6e3   : > { %2041 = vmatpush.msrb.mxu0 %v1935_v6 }
 0x6e4   : > { %1839 = vadd.xlane.f32.xlu1 %v1832_v39  ;;  %v1930_v39 = vld [vmem:[%s3735_s8 + $0x40] sm:$0xff] }
 0x6e5   : > { %2010 = vmatpush.msrb.mxu3 %v1930_v39  ;;  %2042 = vmatpush.msrb.mxu0 %v1931_v16 }
 0x6eb   : > { %v1817_v20 = vpop.xlane.xlu2 %1816 }
 0x6ec   : > { %v1823_v17 = vmul.f32 %v1817_v20, %v3861_v12 }
 0x6ee   : > { %v4543_v42 = vsub.f32 %v4509_v13, %v1823_v17  ;;  %v1933_v17 = vld [vmem:[%s3735_s8 + $0x58] sm:$0xff] }
 0x6ef   : > { %2106 = vmatpush.msrb.mxu2 %v1933_v17 }
 0x6f0   : > { %v1833_v19 = vmul.f32 %v4543_v42, %v4543_v42 }
 0x6f1   : > { %2107 = vmatpush.msrb.mxu2 %v1929_v62 }
 0x6f2   : > { %1841 = vadd.xlane.f32.xlu0 %v1833_v19  ;;  %v1926_v19 = vld [vmem:[%s3735_s8 + $0x20] sm:$0xff] }
 0x6f3   : > { %2011 = vmatpush.msrb.mxu3 %v1926_v19  ;;  %2108 = vmatpush.msrb.mxu2 %v1925_v31 }
 0x6f5   : > { %2012 = vmatpush.msrb.mxu3 %v1922_v27 }
 0x6f8   : > { %v1819_v56 = vpop.xlane.xlu1 %1818 }
 0x6f9   : > { %v1824_v58 = vmul.f32 %v1819_v56, %v3861_v12  ;;  %v1927_v56 = vld [vmem:[%s3735_s8 + $0x28] sm:$0xff] }
 0x6fa   : > { %2043 = vmatpush.msrb.mxu0 %v1927_v56 }
 0x6fb   : > { %v4549_v59 = vsub.f32 %v4512_v33, %v1824_v58 }
 0x6fc   : > { %2044 = vmatpush.msrb.mxu0 %v1923_v48 }
 0x6fd   : > { %v1834_v23 = vmul.f32 %v4549_v59, %v4549_v59 }
 0x6ff   : > { %1843 = vadd.xlane.f32.xlu2 %v1834_v23  ;;  %v1928_v23 = vld [vmem:[%s3735_s8 + $0x30] sm:$0xff] }
 0x700   : > { %2075 = vmatpush.msrb.mxu1 %v1928_v23 }
 0x702   : > { %2076 = vmatpush.msrb.mxu1 %v1924_v57 }
 0x733   : > { %v1836_v20 = vpop.xlane.xlu0 %1835 }
 0x734   : > { %v1845_v58 = vmul.f32 %v1836_v20, %v3861_v12 }
 0x736   : > { %v1850_v3 = vadd.f32 1e-05, %v1845_v58 }
 0x738   : > { %3608 = vrsqrt.f32 %v1850_v3  ;;  %vm1861_vm15 = vweird.f32 %v1850_v3 }
 0x73b   : > { %v1838_v37 = vpop.xlane.xlu2 %1837 }
 0x73c   : > { %v1846_v40 = vmul.f32 %v1838_v37, %v3861_v12 }
 0x73e   : > { %v3609_v18 = vpop.eup %3608  ;;  %v1851_v8 = vadd.f32 1e-05, %v1846_v40 }
 0x73f   : > { %v1856_v25 = vmul.f32 %v3609_v18, %v1850_v3  ;;  %vm1862_vm2 = vweird.f32 %v3609_v18 }
 0x740   : > { %3610 = vrsqrt.f32 %v1851_v8  ;;  %vm1863_vm0 = vmor %vm1861_vm15, %vm1862_vm2  ;;  %vm1871_vm4 = vweird.f32 %v1851_v8 }
 0x741   : > { %v1857_v9 = vmul.f32 %v3609_v18, %v1856_v25 }
 0x743   : > { %v1858_v1 = vmul.f32 0.5, %v1857_v9 }
 0x745   : > { %v1859_v28 = vsub.f32 1.5, %v1858_v1 }
 0x746   : > { %v3611_v45 = vpop.eup %3610 }
 0x747   : > { %v1860_v10 = vmul.f32 %v3609_v18, %v1859_v28  ;;  %v1866_v35 = vmul.f32 %v3611_v45, %v1851_v8  ;;  %vm1872_vm1 = vweird.f32 %v3611_v45  ;;  %v3402_v28 = vld [vmem:[%s3735_s8 + $0x200] ss:$8 sm:$0xf] }
 0x748   : > { %vm1873_vm5 = vmor %vm1871_vm4, %vm1872_vm1 }
 0x749   : > { %v1864_v54 = vsel %vm1863_vm0, %v3609_v18, %v1860_v10  ;;  %v1867_v15 = vmul.f32 %v3611_v45, %v1866_v35  ;;  %v4638_v10 = vperm.slane %v3402_v28, 2 }
 0x74a   : > { %v1905_v55 = vmul.f32 %v1864_v54, %v4517_v30 }
 0x74b   : > { %v1868_v14 = vmul.f32 0.5, %v1867_v15 }
 0x74c   : > { %v1911_v7 = vmul.f32 %v4612_v4, %v1905_v55  ;;  %v4649_v55 = vperm.slane %v3402_v28, 0 }
 0x74d   : > { %v1869_v21 = vsub.f32 1.5, %v1868_v14  ;;  %v4654_v14 = vperm.slane %v3402_v28, 3 }
 0x74e   : > { %v1917_v22 = vadd.f32 %v4616_v63, %v1911_v7 }
 0x74f   : > { %v1870_v11 = vmul.f32 %v3611_v45, %v1869_v21 }
 0x750   : > { %2013 = vmatmul.f32.vlgmr.msrb.gmra.mxu3 %v1917_v22  ;;  %2045 = vmatmul.f32.vlgmr.msrb.gmra.mxu0 %v1917_v22 }
 0x751   : > { %v1874_v29 = vsel %vm1873_vm5, %v3611_v45, %v1870_v11  ;;  %2077 = vmatmul.f32.vlgmr.msrb.gmra.mxu1 %v1917_v22  ;;  %2109 = vmatmul.f32.vlgmr.msrb.gmra.mxu2 %v1917_v22  ;;  %v4636_v45 = vperm.slane %v3402_v28, 1 }
 0x752   : > { %v1906_v32 = vmul.f32 %v1874_v29, %v4523_v60 }
 0x754   : > { %v1912_v30 = vmul.f32 %v4612_v4, %v1906_v32 }
 0x756   : > { %v1918_v50 = vadd.f32 %v4616_v63, %v1912_v30 }
 0x757   : > { %v1840_v34 = vpop.xlane.xlu1 %1839 }
 0x758   : > { %v1847_v51 = vmul.f32 %v1840_v34, %v3861_v12  ;;  %2016 = vmatmul.f32.gmra.mxu3 %v1918_v50  ;;  %2048 = vmatmul.f32.gmra.mxu0 %v1918_v50 }
 0x759   : > { %2080 = vmatmul.f32.gmra.mxu1 %v1918_v50  ;;  %2112 = vmatmul.f32.gmra.mxu2 %v1918_v50 }
 0x75a   : > { %v1852_v61 = vadd.f32 1e-05, %v1847_v51 }
 0x75c   : > { %3612 = vrsqrt.f32 %v1852_v61  ;;  %vm1881_vm7 = vweird.f32 %v1852_v61 }
 0x762   : > { %v3613_v5 = vpop.eup %3612 }
 0x763   : > { %v1876_v2 = vmul.f32 %v3613_v5, %v1852_v61  ;;  %vm1882_vm6 = vweird.f32 %v3613_v5 }
 0x764   : > { %vm1883_vm8 = vmor %vm1881_vm7, %vm1882_vm6 }
 0x765   : > { %v1877_v36 = vmul.f32 %v3613_v5, %v1876_v2  ;;  %v1842_v47 = vpop.xlane.xlu0 %1841 }
 0x766   : > { %v1848_v38 = vmul.f32 %v1842_v47, %v3861_v12 }
 0x767   : > { %v1878_v60 = vmul.f32 0.5, %v1877_v36 }
 0x768   : > { %v1853_v26 = vadd.f32 1e-05, %v1848_v38 }
 0x769   : > { %v1879_v43 = vsub.f32 1.5, %v1878_v60 }
 0x76a   : > { %3614 = vrsqrt.f32 %v1853_v26  ;;  %vm1891_vm10 = vweird.f32 %v1853_v26 }
 0x76b   : > { %v1880_v44 = vmul.f32 %v3613_v5, %v1879_v43 }
 0x76d   : > { %v1884_v6 = vsel %vm1883_vm8, %v3613_v5, %v1880_v44 }
 0x76e   : > { %v1907_v46 = vmul.f32 %v1884_v6, %v4529_v41 }
 0x770   : > { %v3615_v49 = vpop.eup %3614  ;;  %v1913_v39 = vmul.f32 %v4612_v4, %v1907_v46 }
 0x771   : > { %v1886_v16 = vmul.f32 %v3615_v49, %v1853_v26  ;;  %vm1892_vm9 = vweird.f32 %v3615_v49 }
 0x772   : > { %v1919_v52 = vadd.f32 %v4616_v63, %v1913_v39  ;;  %v1844_v17 = vpop.xlane.xlu2 %1843  ;;  %vm1893_vm11 = vmor %vm1891_vm10, %vm1892_vm9 }
 0x773   : > { %v1887_v20 = vmul.f32 %v3615_v49, %v1886_v16  ;;  %v1849_v19 = vmul.f32 %v1844_v17, %v3861_v12 }
 0x774   : > { %2019 = vmatmul.f32.gmra.mxu3 %v1919_v52  ;;  %2051 = vmatmul.f32.gmra.mxu0 %v1919_v52 }
 0x775   : > { %v1888_v56 = vmul.f32 0.5, %v1887_v20  ;;  %2083 = vmatmul.f32.gmra.mxu1 %v1919_v52  ;;  %2115 = vmatmul.f32.gmra.mxu2 %v1919_v52  ;;  %v1854_v58 = vadd.f32 1e-05, %v1849_v19 }
 0x777   : > { %v1889_v23 = vsub.f32 1.5, %v1888_v56  ;;  %3616 = vrsqrt.f32 %v1854_v58  ;;  %vm1901_vm13 = vweird.f32 %v1854_v58 }
 0x779   : > { %v1890_v41 = vmul.f32 %v3615_v49, %v1889_v23 }
 0x77b   : > { %v1894_v62 = vsel %vm1893_vm11, %v3615_v49, %v1890_v41 }
 0x77c   : > { %v1908_v27 = vmul.f32 %v1894_v62, %v4543_v42 }
 0x77d   : > { %v3617_v48 = vpop.eup %3616 }
 0x77e   : > { %v1914_v57 = vmul.f32 %v4612_v4, %v1908_v27  ;;  %v1896_v31 = vmul.f32 %v3617_v48, %v1854_v58  ;;  %vm1902_vm12 = vweird.f32 %v3617_v48 }
 0x77f   : > { %vm1903_vm3 = vmor %vm1901_vm13, %vm1902_vm12 }
 0x780   : > { %v1920_v3 = vadd.f32 %v4616_v63, %v1914_v57  ;;  %v1897_v37 = vmul.f32 %v3617_v48, %v1896_v31 }
 0x782   : > { %2022 = vmatmul.f32.gmra.mxu3 %v1920_v3  ;;  %2054 = vmatmul.f32.gmra.mxu0 %v1920_v3  ;;  %v1898_v40 = vmul.f32 0.5, %v1897_v37 }
 0x783   : > { %2086 = vmatmul.f32.gmra.mxu1 %v1920_v3  ;;  %2118 = vmatmul.f32.gmra.mxu2 %v1920_v3 }
 0x784   : > { %v1899_v18 = vsub.f32 1.5, %v1898_v40 }
 0x786   : > { %v1900_v8 = vmul.f32 %v3617_v48, %v1899_v18 }
 0x788   : > { %v1904_v25 = vsel %vm1903_vm3, %v3617_v48, %v1900_v8 }
 0x789   : > { %v1909_v42 = vmul.f32 %v1904_v25, %v4549_v59 }
 0x78b   : > { %v1915_v9 = vmul.f32 %v4612_v4, %v1909_v42 }
 0x78d   : > { %v1921_v1 = vadd.f32 %v4616_v63, %v1915_v9 }
 0x78f   : > { %2025 = vmatmul.f32.gmra.mxu3 %v1921_v1  ;;  %2057 = vmatmul.f32.gmra.mxu0 %v1921_v1 }
 0x790   : > { %2089 = vmatmul.f32.gmra.mxu1 %v1921_v1  ;;  %2121 = vmatmul.f32.gmra.mxu2 %v1921_v1 }
 0x7cd   : > { %v2046_v35 = vpop.f32.mrf.mxu0 }
 0x7ce   : > { %v4641_v54 = vadd.f32 %v2046_v35, %v4636_v45  ;;  %v2078_v15 = vpop.f32.mrf.mxu1 }
 0x7cf   : > { %v4644_v59 = vadd.f32 %v2078_v15, %v4638_v10 }
 0x7d0   : > { %v4647_v4 = vmul.f32 0.70710677, %v4641_v54 }
 0x7d1   : > { %v4652_v63 = vmul.f32 0.70710677, %v4644_v59 }
 0x7d2   : > { %v2205_v7 = vmul.f32 %v4647_v4, %v4647_v4 }
 0x7d3   : > { %v2245_v21 = vmul.f32 %v4652_v63, %v4652_v63  ;;  %v2014_v22 = vpop.f32.mrf.mxu3 }
 0x7d4   : > { %v4660_v11 = vmin.f32 %v2205_v7, 16.0  ;;  %v4663_v29 = vadd.f32 %v2014_v22, %v4649_v55  ;;  %v2110_v32 = vpop.f32.mrf.mxu2 }
 0x7d5   : > { %v4665_v30 = vmin.f32 %v2245_v21, 16.0  ;;  %v4668_v50 = vadd.f32 %v2110_v32, %v4654_v14  ;;  %v2049_v42 = vpop.f32.mrf.mxu0 }
 0x7d6   : > { %v2207_v34 = vmul.f32 2.1237322e-06, %v4660_v11  ;;  %v2218_v51 = vmul.f32 3.8918573e-05, %v4660_v11  ;;  %v4675_v2 = vmul.f32 0.70710677, %v4663_v29 }
 0x7d7   : > { %v2247_v61 = vmul.f32 2.1237322e-06, %v4665_v30  ;;  %v2258_v5 = vmul.f32 3.8918573e-05, %v4665_v30  ;;  %v4680_v43 = vmul.f32 0.70710677, %v4668_v50 }
 0x7d8   : > { %v2208_v36 = vadd.f32 0.00028619796, %v2207_v34  ;;  %v2219_v47 = vadd.f32 0.001143296, %v2218_v51  ;;  %v2165_v26 = vmul.f32 %v4675_v2, %v4675_v2  ;;  %v4707_v51 = vadd.f32 %v2049_v42, %v4636_v45 }
 0x7d9   : > { %v2248_v38 = vadd.f32 0.00028619796, %v2247_v61  ;;  %v2259_v60 = vadd.f32 0.001143296, %v2258_v5  ;;  %v2285_v16 = vmul.f32 %v4680_v43, %v4680_v43 }
 0x7da   : > { %v2209_v44 = vmul.f32 %v2208_v36, %v4660_v11  ;;  %v2220_v6 = vmul.f32 %v2219_v47, %v4660_v11  ;;  %v4686_v39 = vmin.f32 %v2165_v26, 16.0  ;;  %v2081_v36 = vpop.f32.mrf.mxu1  ;;  %v3036_v47 = vld [vmem:[%s3740_s11 + $0x178] sm:$0xff] }
 0x7db   : > { %v2249_v46 = vmul.f32 %v2248_v38, %v4665_v30  ;;  %v2260_v49 = vmul.f32 %v2259_v60, %v4665_v30  ;;  %v4694_v62 = vmin.f32 %v2285_v16, 16.0  ;;  %v3052_v38 = vld [vmem:[%s3740_s11 + $0x1f8] sm:$0xff]  ;;  %3103 = vmatpush.msra.mxu0 %v3036_v47  ;;  %v3018_v47 = vld [vmem:[%s3740_s11 + $0xe8] sm:$0xff] }
 0x7dc   : > { %v2210_v52 = vadd.f32 0.0036580483, %v2209_v44  ;;  %v2221_v20 = vadd.f32 0.014752088, %v2220_v6  ;;  %v2167_v56 = vmul.f32 2.1237322e-06, %v4686_v39  ;;  %3135 = vmatpush.msra.mxu1 %v3052_v38 }
 0x7dd   : > { %v2250_v17 = vadd.f32 0.0036580483, %v2249_v46  ;;  %v2261_v19 = vadd.f32 0.014752088, %v2260_v49  ;;  %v2178_v41 = vmul.f32 3.8918573e-05, %v4686_v39 }
 0x7de   : > { %v2211_v58 = vmul.f32 %v2210_v52, %v4660_v11  ;;  %v2222_v23 = vmul.f32 %v2221_v20, %v4660_v11  ;;  %v2168_v57 = vadd.f32 0.00028619796, %v2167_v56  ;;  %v2287_v25 = vmul.f32 2.1237322e-06, %v4694_v62  ;;  %v3035_v46 = vld [vmem:[%s3740_s11 + $0x170] sm:$0xff] }
 0x7df   : > { %v2251_v27 = vmul.f32 %v2250_v17, %v4665_v30  ;;  %v2262_v48 = vmul.f32 %v2261_v19, %v4665_v30  ;;  %v2179_v37 = vadd.f32 0.001143296, %v2178_v41  ;;  %v2298_v35 = vmul.f32 3.8918573e-05, %v4694_v62  ;;  %v3051_v49 = vld [vmem:[%s3740_s11 + $0x1f0] sm:$0xff]  ;;  %3104 = vmatpush.msra.mxu0 %v3035_v46 }
 0x7e0   : > { %v2212_v31 = vadd.f32 0.05243302, %v2211_v58  ;;  %v2223_v3 = vadd.f32 0.112945676, %v2222_v23  ;;  %v2169_v8 = vmul.f32 %v2168_v57, %v4686_v39  ;;  %v2288_v21 = vadd.f32 0.00028619796, %v2287_v25  ;;  %3136 = vmatpush.msra.mxu1 %v3051_v49 }
 0x7e1   : > { %v2252_v40 = vadd.f32 0.05243302, %v2251_v27  ;;  %v2263_v18 = vadd.f32 0.112945676, %v2262_v48  ;;  %v2180_v28 = vmul.f32 %v2179_v37, %v4686_v39  ;;  %v2299_v6 = vadd.f32 0.001143296, %v2298_v35  ;;  %v2113_v35 = vpop.f32.mrf.mxu2 }
 0x7e2   : > { %v2213_v9 = vmul.f32 %v2212_v31, %v4660_v11  ;;  %v2224_v1 = vmul.f32 %v2223_v3, %v4660_v11  ;;  %v2170_v7 = vadd.f32 0.0036580483, %v2169_v8  ;;  %v2289_v44 = vmul.f32 %v2288_v21, %v4694_v62  ;;  %v3034_v58 = vld [vmem:[%s3740_s11 + $0x168] sm:$0xff]  ;;  %v3020_v3 = vld [vmem:[%s3740_s11 + $0xf8] sm:$0xff]  ;;  %v3033_v37 = vld [vmem:[%s3740_s11 + $0x160] sm:$0xff] }
 0x7e3   : > { %v2264_v15 = vmul.f32 %v2263_v18, %v4665_v30  ;;  %v2253_v32 = vmul.f32 %v2252_v40, %v4665_v30  ;;  %v2181_v34 = vadd.f32 0.014752088, %v2180_v28  ;;  %v4721_v19 = vmul.f32 0.70710677, %v4707_v51  ;;  %v3050_v48 = vld [vmem:[%s3740_s11 + $0x1e8] sm:$0xff]  ;;  %3105 = vmatpush.msra.mxu0 %v3034_v58  ;;  %v3049_v40 = vld [vmem:[%s3740_s11 + $0x1e0] sm:$0xff]  ;;  %3071 = vmatpush.msra.mxu3 %v3020_v3 }
 0x7e4   : > { %v2225_v22 = vadd.f32 0.4994258, %v2224_v1  ;;  %v2214_v61 = vadd.f32 0.18741608, %v2213_v9  ;;  %v2171_v52 = vmul.f32 %v2170_v7, %v4686_v39  ;;  %v4724_v56 = vadd.f32 %v2081_v36, %v4638_v10  ;;  %3137 = vmatpush.msra.mxu1 %v3050_v48  ;;  %v3068_v8 = vld [vmem:[%s3740_s11 + $0x278] sm:$0xff]  ;;  %v2017_v9 = vpop.f32.mrf.mxu3  ;;  %v3067_v36 = vld [vmem:[%s3740_s11 + $0x270] sm:$0xff] }
 0x7e5   : > { %v2265_v5 = vadd.f32 0.4994258, %v2264_v15  ;;  %v2182_v26 = vmul.f32 %v2181_v34, %v4686_v39  ;;  %v2254_v17 = vadd.f32 0.18741608, %v2253_v32  ;;  %v2300_v27 = vmul.f32 %v2299_v6, %v4694_v62  ;;  %3106 = vmatpush.msra.mxu0 %v3033_v37  ;;  %3167 = vmatpush.msra.mxu2 %v3068_v8  ;;  %v3019_v15 = vld [vmem:[%s3740_s11 + $0xf0] sm:$0xff]  ;;  %v3032_v21 = vld [vmem:[%s3740_s11 + $0x158] sm:$0xff] }
 0x7e6   : > { %v2226_v60 = vmul.f32 %v2225_v22, %v4660_v11  ;;  %v2215_v57 = vmul.f32 %v2214_v61, %v4660_v11  ;;  %v2290_v31 = vadd.f32 0.0036580483, %v2289_v44  ;;  %v2172_v18 = vadd.f32 0.05243302, %v2171_v52  ;;  %3138 = vmatpush.msra.mxu1 %v3049_v40  ;;  %3072 = vmatpush.msra.mxu3 %v3019_v15  ;;  %v3048_v22 = vld [vmem:[%s3740_s11 + $0x1d8] sm:$0xff]  ;;  %v3031_v38 = vld [vmem:[%s3740_s11 + $0x150] sm:$0xff] }
 0x7e7   : > { %v2266_v16 = vmul.f32 %v2265_v5, %v4665_v30  ;;  %v2183_v41 = vadd.f32 0.112945676, %v2182_v26  ;;  %v2255_v25 = vmul.f32 %v2254_v17, %v4665_v30  ;;  %v2365_v11 = vmul.f32 %v4721_v19, %v4721_v19  ;;  %3107 = vmatpush.msra.mxu0 %v3032_v21  ;;  %3168 = vmatpush.msra.mxu2 %v3067_v36  ;;  %v3017_v48 = vld [vmem:[%s3740_s11 + $0xe0] sm:$0xff]  ;;  %v3030_v40 = vld [vmem:[%s3740_s11 + $0x148] sm:$0xff] }
 0x7e8   : > { %v4718_v20 = vadd.f32 1.0, %v2226_v60  ;;  %v4742_v42 = vmul.f32 0.70710677, %v4724_v56  ;;  %v2301_v28 = vadd.f32 0.014752088, %v2300_v27  ;;  %v2291_v30 = vmul.f32 %v2290_v31, %v4694_v62  ;;  %3139 = vmatpush.msra.mxu1 %v3048_v22  ;;  %3073 = vmatpush.msra.mxu3 %v3018_v47  ;;  %v3066_v27 = vld [vmem:[%s3740_s11 + $0x268] sm:$0xff] }
 0x7e9   : > { %v4727_v23 = vadd.f32 1.0, %v2266_v16  ;;  %v2184_v1 = vmul.f32 %v2183_v41, %v4686_v39  ;;  %v2216_v7 = vadd.f32 1.1283791, %v2215_v57  ;;  %v2173_v32 = vmul.f32 %v2172_v18, %v4686_v39  ;;  %3108 = vmatpush.msra.mxu0 %v3031_v38  ;;  %v3047_v41 = vld [vmem:[%s3740_s11 + $0x1d0] sm:$0xff]  ;;  %3169 = vmatpush.msra.mxu2 %v3066_v27  ;;  %v3046_v18 = vld [vmem:[%s3740_s11 + $0x1c8] sm:$0xff]  ;;  %v3029_v15 = vld [vmem:[%s3740_s11 + $0x140] sm:$0xff] }
 0x7ea   : > { %3618 = vrcp.f32 %v4718_v20  ;;  %v2302_v61 = vmul.f32 %v2301_v28, %v4694_v62  ;;  %v4752_v5 = vadd.f32 %v2017_v9, %v4649_v55  ;;  %v4759_v26 = vadd.f32 1.1283791, %v2255_v25  ;;  %3140 = vmatpush.msra.mxu1 %v3047_v41  ;;  %3074 = vmatpush.msra.mxu3 %v3017_v48  ;;  %v3016_v9 = vld [vmem:[%s3740_s11 + $0xd8] sm:$0xff]  ;;  %v3045_v21 = vld [vmem:[%s3740_s11 + $0x1c0] sm:$0xff] }
 0x7eb   : > { %3620 = vrcp.f32 %v4727_v23  ;;  %v2185_v34 = vadd.f32 0.4994258, %v2184_v1  ;;  %v4761_v44 = vmin.f32 %v2365_v11, 16.0  ;;  %v4765_v6 = vmul.f32 %v4742_v42, %v4742_v42  ;;  %3109 = vmatpush.msra.mxu0 %v3030_v40  ;;  %v3064_v22 = vld [vmem:[%s3740_s11 + $0x258] sm:$0xff] }
 0x7ec   : > { %v4768_v46 = vadd.f32 %v2113_v35, %v4654_v14  ;;  %v2237_v52 = vand.u32 2147483647, %v4718_v20  ;;  %v2239_v17 = vand.u32 2147483648, %v4718_v20  ;;  %v4781_v57 = vmul.f32 %v2216_v7, %v4647_v4  ;;  %v3065_v4 = vld [vmem:[%s3740_s11 + $0x260] sm:$0xff]  ;;  %3141 = vmatpush.msra.mxu1 %v3046_v18  ;;  %3075 = vmatpush.msra.mxu3 %v3016_v9  ;;  %v3028_v47 = vld [vmem:[%s3740_s11 + $0x138] sm:$0xff]  ;;  %v3062_v9 = vld [vmem:[%s3740_s11 + $0x248] sm:$0xff] }
 0x7ed   : > { %v2186_v58 = vmul.f32 %v2185_v34, %v4686_v39  ;;  %v2292_v3 = vadd.f32 0.05243302, %v2291_v30  ;;  %v2303_v37 = vadd.f32 0.112945676, %v2302_v61  ;;  %v2174_v25 = vadd.f32 0.18741608, %v2173_v32  ;;  %3170 = vmatpush.msra.mxu2 %v3065_v4  ;;  %3110 = vmatpush.msra.mxu0 %v3029_v15 }
 0x7ee   : > { %v2277_v28 = vand.u32 2147483647, %v4727_v23  ;;  %vm2233_vm15 = vweird.f32 %v4718_v20  ;;  %v2279_v30 = vand.u32 2147483648, %v4727_v23  ;;  %v3015_v32 = vld [vmem:[%s3740_s11 + $0xd0] sm:$0xff]  ;;  %vm2273_vm1 = vweird.f32 %v4727_v23  ;;  %3142 = vmatpush.msra.mxu1 %v3045_v21  ;;  %v3044_v27 = vld [vmem:[%s3740_s11 + $0x1b8] sm:$0xff] }
 0x7ef   : > { %v4788_v11 = vadd.f32 1.0, %v2186_v58  ;;  %v2304_v35 = vmul.f32 %v2303_v37, %v4694_v62  ;;  %3171 = vmatpush.msra.mxu2 %v3064_v22  ;;  %vm4814_vm4 = vcmp.eq.f32.partialorder %v2237_v52, 8.507059e+37  ;;  %v2240_v58 = vor.u32 1.1754944e-38, %v2239_v17  ;;  %3076 = vmatpush.msra.mxu3 %v3015_v32  ;;  %v3027_v37 = vld [vmem:[%s3740_s11 + $0x130] sm:$0xff]  ;;  %v3012_v34 = vld [vmem:[%s3740_s11 + $0xb8] sm:$0xff] }
 0x7f0   : > { %v4757_v60 = vpop.eup %3618  ;;  %v2175_v41 = vmul.f32 %v2174_v25, %v4686_v39  ;;  %3111 = vmatpush.msra.mxu0 %v3028_v47  ;;  %vm4827_vm6 = vcmp.eq.f32.partialorder %v2277_v28, 8.507059e+37  ;;  %3143 = vmatpush.msra.mxu1 %v3044_v27  ;;  %v3014_v39 = vld [vmem:[%s3740_s11 + $0xc8] sm:$0xff]  ;;  %v2257_v18 = vmul.f32 %v4759_v26, %v4652_v63  ;;  %v2367_v25 = vmul.f32 2.1237322e-06, %v4761_v44  ;;  %v3043_v4 = vld [vmem:[%s3740_s11 + $0x1b0] sm:$0xff]  ;;  %v3060_v47 = vld [vmem:[%s3740_s11 + $0x238] sm:$0xff] }
 0x7f1   : > { %v4770_v49 = vpop.eup %3620  ;;  %v2229_v16 = vmul.f32 %v4757_v60, %v4718_v20  ;;  %vm2234_vm14 = vweird.f32 %v4757_v60  ;;  %3622 = vrcp.f32 %v4788_v11  ;;  %v2293_v20 = vmul.f32 %v2292_v3, %v4694_v62  ;;  %v3063_v3 = vld [vmem:[%s3740_s11 + $0x250] sm:$0xff]  ;;  %3077 = vmatpush.msra.mxu3 %v3014_v39  ;;  %v3026_v63 = vld [vmem:[%s3740_s11 + $0x128] sm:$0xff] }
 0x7f2   : > { %v2269_v31 = vmul.f32 %v4770_v49, %v4727_v23  ;;  %vm2274_vm2 = vweird.f32 %v4770_v49  ;;  %vm4805_vm0 = vmor %vm2233_vm15, %vm2234_vm14  ;;  %v2305_v36 = vadd.f32 0.4994258, %v2304_v35  ;;  %3172 = vmatpush.msra.mxu2 %v3063_v3  ;;  %3112 = vmatpush.msra.mxu0 %v3027_v37  ;;  %v3042_v26 = vld [vmem:[%s3740_s11 + $0x1a8] sm:$0xff]  ;;  %v2176_v32 = vadd.f32 1.1283791, %v2175_v41  ;;  %v3011_v23 = vld [vmem:[%s3740_s11 + $0xb0] sm:$0xff] }
 0x7f3   : > { %v2230_v8 = vsub.f32 1.0, %v2229_v16  ;;  %vm4820_vm5 = vmor %vm2273_vm1, %vm2274_vm2  ;;  %3144 = vmatpush.msra.mxu1 %v3043_v4  ;;  %v3024_v41 = vld [vmem:[%s3740_s11 + $0x118] sm:$0xff]  ;;  %v2197_v39 = vand.u32 2147483647, %v4788_v11  ;;  %v2199_v37 = vand.u32 2147483648, %v4788_v11  ;;  %v3023_v4 = vld [vmem:[%s3740_s11 + $0x110] sm:$0xff]  ;;  %vm2193_vm8 = vweird.f32 %v4788_v11 }
 0x7f4   : > { %v2270_v1 = vsub.f32 1.0, %v2269_v31  ;;  %v2306_v17 = vmul.f32 %v2305_v36, %v4694_v62  ;;  %v4833_v31 = vmul.f32 0.70710677, %v4752_v5  ;;  %3173 = vmatpush.msra.mxu2 %v3062_v9  ;;  %3113 = vmatpush.msra.mxu0 %v3026_v63  ;;  %v3040_v3 = vld [vmem:[%s3740_s11 + $0x198] sm:$0xff]  ;;  %v3039_v9 = vld [vmem:[%s3740_s11 + $0x190] sm:$0xff]  ;;  %v3058_v63 = vld [vmem:[%s3740_s11 + $0x228] sm:$0xff] }
 0x7f5   : > { %v2231_v7 = vmul.f32 %v4757_v60, %v2230_v8  ;;  %v2280_v8 = vor.u32 1.1754944e-38, %v2279_v30  ;;  %3145 = vmatpush.msra.mxu1 %v3042_v26  ;;  %v3009_v26 = vld [vmem:[%s3740_s11 + $0xa0] sm:$0xff]  ;;  %vm2198_vm10 = vcmp.eq.f32.partialorder %v2197_v39, 8.507059e+37 }
 0x7f6   : > { %v2271_v61 = vmul.f32 %v4770_v49, %v2270_v1  ;;  %v3013_v1 = vld [vmem:[%s3740_s11 + $0xc0] sm:$0xff]  ;;  %v4852_v15 = vadd.f32 1.0, %v2306_v17  ;;  %v2368_v17 = vadd.f32 0.00028619796, %v2367_v25 }
 0x7f7   : > { %v2232_v38 = vadd.f32 %v4757_v60, %v2231_v7  ;;  %v3061_v7 = vld [vmem:[%s3740_s11 + $0x240] sm:$0xff]  ;;  %v4857_v30 = vpop.eup %3622  ;;  %3078 = vmatpush.msra.mxu3 %v3013_v1  ;;  %v2127_v1 = vmul.f32 0.5, %v4644_v59 }
 0x7f8   : > { %v2272_v52 = vadd.f32 %v4770_v49, %v2271_v61  ;;  %v3025_v61 = vld [vmem:[%s3740_s11 + $0x120] sm:$0xff]  ;;  %v2189_v36 = vmul.f32 %v4857_v30, %v4788_v11  ;;  %3624 = vrcp.f32 %v4852_v15  ;;  %3174 = vmatpush.msra.mxu2 %v3061_v7  ;;  %vm2194_vm7 = vweird.f32 %v4857_v30 }
 0x7f9   : > { %v2236_v40 = vsel %vm4805_vm0, %v4757_v60, %v2232_v38  ;;  %v2294_v60 = vadd.f32 0.18741608, %v2293_v20  ;;  %v2126_v38 = vmul.f32 0.5, %v4641_v54  ;;  %3079 = vmatpush.msra.mxu3 %v3012_v34  ;;  %3114 = vmatpush.msra.mxu0 %v3025_v61  ;;  %v3059_v54 = vld [vmem:[%s3740_s11 + $0x230] sm:$0xff]  ;;  %v2052_v34 = vpop.f32.mrf.mxu0  ;;  %vm4908_vm9 = vmor %vm2193_vm8, %vm2194_vm7  ;;  %vm2313_vm12 = vweird.f32 %v4852_v15 }
 0x7fa   : > { %v2241_v28 = vsel %vm4814_vm4, %v2240_v58, %v2236_v40  ;;  %v2276_v35 = vsel %vm4820_vm5, %v4770_v49, %v2272_v52  ;;  %v4863_v49 = vmin.f32 %v4765_v6, 16.0  ;;  %v3041_v6 = vld [vmem:[%s3740_s11 + $0x1a0] sm:$0xff]  ;;  %v4876_v58 = vmul.f32 0.70710677, %v4768_v46  ;;  %3175 = vmatpush.msra.mxu2 %v3060_v47  ;;  %v3008_v47 = vld [vmem:[%s3740_s11 + $0x98] sm:$0xff] }
 0x7fb   : > { %v2242_v21 = vmul.f32 %v2241_v28, %v4781_v57  ;;  %v2281_v22 = vsel %vm4827_vm6, %v2280_v8, %v2276_v35  ;;  %v2325_v57 = vmul.f32 %v4833_v31, %v4833_v31  ;;  %v2190_v52 = vsub.f32 1.0, %v2189_v36  ;;  %3146 = vmatpush.msra.mxu1 %v3041_v6  ;;  %3080 = vmatpush.msra.mxu3 %v3011_v23  ;;  %v3057_v6 = vld [vmem:[%s3740_s11 + $0x220] sm:$0xff] }
 0x7fc   : > { %v2282_v20 = vmul.f32 %v2281_v22, %v2257_v18  ;;  %v2295_v48 = vmul.f32 %v2294_v60, %v4694_v62  ;;  %v2407_v40 = vmul.f32 2.1237322e-06, %v4863_v49  ;;  %v3010_v18 = vld [vmem:[%s3740_s11 + $0xa8] sm:$0xff]  ;;  %3115 = vmatpush.msra.mxu0 %v3024_v41  ;;  %v2177_v35 = vmul.f32 %v2176_v32, %v4675_v2  ;;  %3176 = vmatpush.msra.mxu2 %v3059_v54 }
 0x7fd   : > { %v3404_v16 = vclamps-f32 %v2242_v21, 1.0  ;;  %v2191_v62 = vmul.f32 %v4857_v30, %v2190_v52  ;;  %v4889_v25 = vmin.f32 %v2325_v57, 16.0  ;;  %v2445_v60 = vmul.f32 %v4876_v58, %v4876_v58  ;;  %3147 = vmatpush.msra.mxu1 %v3040_v3  ;;  %3081 = vmatpush.msra.mxu3 %v3010_v18  ;;  %v3022_v2 = vld [vmem:[%s3740_s11 + $0x108] sm:$0xff]  ;;  %v3037_v52 = vld [vmem:[%s3740_s11 + $0x180] sm:$0xff]  ;;  %v2084_v18 = vpop.f32.mrf.mxu1 }
 0x7fe   : > { %v3405_v27 = vclamps-f32 %v2282_v20, 1.0  ;;  %v4899_v7 = vpop.eup %3624  ;;  %v2296_v59 = vadd.f32 1.1283791, %v2295_v48  ;;  %v2369_v22 = vmul.f32 %v2368_v17, %v4761_v44  ;;  %v3038_v32 = vld [vmem:[%s3740_s11 + $0x188] sm:$0xff]  ;;  %v2200_v20 = vor.u32 1.1754944e-38, %v2199_v37  ;;  %3116 = vmatpush.msra.mxu0 %v3023_v4  ;;  %3177 = vmatpush.msra.mxu2 %v3058_v63 }
 0x7ff   : > { %v2966_v8 = vadd.f32 1.0, %v3404_v16  ;;  %v2192_v21 = vadd.f32 %v4857_v30, %v2191_v62  ;;  %v2309_v36 = vmul.f32 %v4899_v7, %v4852_v15  ;;  %v2408_v11 = vadd.f32 0.00028619796, %v2407_v40  ;;  %3148 = vmatpush.msra.mxu1 %v3039_v9  ;;  %3082 = vmatpush.msra.mxu3 %v3009_v26  ;;  %v2020_v26 = vpop.f32.mrf.mxu3 }
 0x800   : > { %v2967_v28 = vadd.f32 1.0, %v3405_v27  ;;  %v4914_v57 = vmin.f32 %v2445_v60, 16.0  ;;  %v2327_v41 = vmul.f32 2.1237322e-06, %v4889_v25  ;;  %v3021_v27 = vld [vmem:[%s3740_s11 + $0x100] sm:$0xff]  ;;  %v4925_v54 = vadd.f32 %v2052_v34, %v4636_v45  ;;  %3117 = vmatpush.msra.mxu0 %v3022_v2  ;;  %3178 = vmatpush.msra.mxu2 %v3057_v6 }
 0x801   : > { %v2986_v16 = vmul.f32 %v2966_v8, %v2126_v38  ;;  %v2196_v23 = vsel %vm4908_vm9, %v4857_v30, %v2192_v21  ;;  %v2310_v3 = vsub.f32 1.0, %v2309_v36  ;;  %3149 = vmatpush.msra.mxu1 %v3038_v32  ;;  %v3056_v38 = vld [vmem:[%s3740_s11 + $0x218] sm:$0xff]  ;;  %v2319_v30 = vand.u32 2147483648, %v4852_v15  ;;  %3083 = vmatpush.msra.mxu3 %v3008_v47  ;;  %v3007_v8 = vld [vmem:[%s3740_s11 + $0x90] sm:$0xff]  ;;  %v3006_v21 = vld [vmem:[%s3740_s11 + $0x88] sm:$0xff] }
 0x802   : > { %v2987_v48 = vmul.f32 %v2967_v28, %v2127_v1  ;;  %v2201_v17 = vsel %vm2198_vm10, %v2200_v20, %v2196_v23  ;;  %v2370_v39 = vadd.f32 0.0036580483, %v2369_v22  ;;  %v2447_v40 = vmul.f32 2.1237322e-06, %v4914_v57  ;;  %3118 = vmatpush.msra.mxu0 %v3021_v27  ;;  %v3055_v1 = vld [vmem:[%s3740_s11 + $0x210] sm:$0xff]  ;;  %3179 = vmatpush.msra.mxu2 %v3056_v38  ;;  %v3053_v6 = vld [vmem:[%s3740_s11 + $0x200] sm:$0xff] }
 0x803   : > { %v2202_v37 = vmul.f32 %v2201_v17, %v2177_v35  ;;  %v2311_v62 = vmul.f32 %v4899_v7, %v2310_v3  ;;  %vm2314_vm11 = vweird.f32 %v4899_v7  ;;  %v2317_v4 = vand.u32 2147483647, %v4852_v15  ;;  %3150 = vmatpush.msra.mxu1 %v3037_v52  ;;  %3119 = vmatmul.f32.vlgmr.msra.gmra.mxu0 %v2986_v16  ;;  %v3005_v15 = vld [vmem:[%s3740_s11 + $0x80] sm:$0xff] }
 0x804   : > { %v2409_v9 = vmul.f32 %v2408_v11, %v4863_v49  ;;  %v2125_v28 = vmul.f32 0.5, %v4663_v29  ;;  %v2297_v60 = vmul.f32 %v2296_v59, %v4680_v43  ;;  %v2328_v63 = vadd.f32 0.00028619796, %v2327_v41  ;;  %3151 = vmatmul.f32.vlgmr.msra.gmra.mxu1 %v2987_v48  ;;  %3084 = vmatpush.msra.mxu3 %v3007_v8  ;;  %v3054_v29 = vld [vmem:[%s3740_s11 + $0x208] sm:$0xff]  ;;  %vm2315_vm13 = vmor %vm2313_vm12, %vm2314_vm11  ;;  %v2116_v41 = vpop.f32.mrf.mxu2 }
 0x805   : > { %v3403_v35 = vclamps-f32 %v2202_v37, 1.0  ;;  %v2312_v22 = vadd.f32 %v4899_v7, %v2311_v62  ;;  %v4942_v34 = vmul.f32 0.70710677, %v4925_v54  ;;  %v4945_v2 = vadd.f32 %v2084_v18, %v4638_v10  ;;  %3180 = vmatpush.msra.mxu2 %v3055_v1  ;;  %v2055_v1 = vpop.f32.mrf.mxu0 }
 0x806   : > { %v2320_v59 = vor.u32 1.1754944e-38, %v2319_v30  ;;  %v2371_v32 = vmul.f32 %v2370_v39, %v4761_v44  ;;  %v2448_v61 = vadd.f32 0.00028619796, %v2447_v40  ;;  %vm2318_vm3 = vcmp.eq.f32.partialorder %v2317_v4, 8.507059e+37  ;;  %3085 = vmatpush.msra.mxu3 %v3006_v21 }
 0x807   : > { %v2965_v43 = vadd.f32 1.0, %v3403_v35  ;;  %v2316_v20 = vsel %vm2315_vm13, %v4899_v7, %v2312_v22  ;;  %v2410_v36 = vadd.f32 0.0036580483, %v2409_v9  ;;  %v4954_v11 = vadd.f32 %v2020_v26, %v4649_v55  ;;  %3181 = vmatpush.msra.mxu2 %v3054_v29 }
 0x808   : > { %v2321_v16 = vsel %vm2318_vm3, %v2320_v59, %v2316_v20  ;;  %v2329_v23 = vmul.f32 %v2328_v63, %v4889_v25  ;;  %v2525_v52 = vmul.f32 %v4942_v34, %v4942_v34  ;;  %v4961_v48 = vmul.f32 0.70710677, %v4945_v2  ;;  %3086 = vmatpush.msra.mxu3 %v3005_v15  ;;  %v2087_v20 = vpop.f32.mrf.mxu1 }
 0x809   : > { %v2985_v47 = vmul.f32 %v2965_v43, %v2125_v28  ;;  %v2322_v27 = vmul.f32 %v2321_v16, %v2297_v60  ;;  %v2372_v7 = vadd.f32 0.05243302, %v2371_v32  ;;  %v2449_v17 = vmul.f32 %v2448_v61, %v4914_v57  ;;  %3182 = vmatpush.msra.mxu2 %v3053_v6 }
 0x80a   : > { %v2411_v38 = vmul.f32 %v2410_v36, %v4863_v49  ;;  %v4966_v37 = vmul.f32 0.70710677, %v4954_v11  ;;  %v4969_v30 = vadd.f32 %v2116_v41, %v4654_v14  ;;  %v2330_v39 = vadd.f32 0.0036580483, %v2329_v23 }
 0x80b   : > { %3087 = vmatmul.f32.vlgmr.msra.gmra.mxu3 %v2985_v47  ;;  %v3406_v3 = vclamps-f32 %v2322_v27, 1.0  ;;  %v2128_v40 = vmul.f32 0.5, %v4668_v50  ;;  %v4972_v8 = vmin.f32 %v2525_v52, 16.0  ;;  %v2565_v62 = vmul.f32 %v4961_v48, %v4961_v48 }
 0x80c   : > { %v2373_v4 = vmul.f32 %v2372_v7, %v4761_v44  ;;  %v2450_v9 = vadd.f32 0.0036580483, %v2449_v17  ;;  %v2412_v35 = vadd.f32 0.05243302, %v2411_v38  ;;  %v2485_v60 = vmul.f32 %v4966_v37, %v4966_v37 }
 0x80d   : > { %v2968_v18 = vadd.f32 1.0, %v3406_v3  ;;  %v4980_v63 = vmul.f32 0.70710677, %v4969_v30  ;;  %v2331_v50 = vmul.f32 %v2330_v39, %v4889_v25  ;;  %v2527_v26 = vmul.f32 2.1237322e-06, %v4972_v8 }
 0x80e   : > { %v4984_v21 = vmin.f32 %v2565_v62, 16.0  ;;  %v4987_v22 = vadd.f32 %v2055_v1, %v4636_v45  ;;  %v2374_v29 = vadd.f32 0.18741608, %v2373_v4  ;;  %v2451_v43 = vmul.f32 %v2450_v9, %v4914_v57 }
 0x80f   : > { %v2988_v28 = vmul.f32 %v2968_v18, %v2128_v40  ;;  %v2413_v59 = vmul.f32 %v2412_v35, %v4863_v49  ;;  %v4991_v32 = vmin.f32 %v2485_v60, 16.0  ;;  %v2605_v61 = vmul.f32 %v4980_v63, %v4980_v63  ;;  %v2023_v40 = vpop.f32.mrf.mxu3 }
 0x810   : > { %v2332_v15 = vadd.f32 0.05243302, %v2331_v50  ;;  %v2528_v36 = vadd.f32 0.00028619796, %v2527_v26  ;;  %v2567_v6 = vmul.f32 2.1237322e-06, %v4984_v21  ;;  %v2375_v16 = vmul.f32 %v2374_v29, %v4761_v44 }
 0x811   : > { %3183 = vmatmul.f32.vlgmr.msra.gmra.mxu2 %v2988_v28  ;;  %v4997_v47 = vmul.f32 0.70710677, %v4987_v22  ;;  %v2452_v23 = vadd.f32 0.05243302, %v2451_v43  ;;  %v2414_v41 = vadd.f32 0.18741608, %v2413_v59  ;;  %v2088_v7 = vadd.f32 %v2087_v20, %v4638_v10 }
 0x812   : > { %v2487_v27 = vmul.f32 2.1237322e-06, %v4991_v32  ;;  %v5001_v52 = vmin.f32 %v2605_v61, 16.0  ;;  %v2333_v17 = vmul.f32 %v2332_v15, %v4889_v25  ;;  %v2529_v3 = vmul.f32 %v2528_v36, %v4972_v8 }
 0x813   : > { %v2568_v38 = vadd.f32 0.00028619796, %v2567_v6  ;;  %v2685_v39 = vmul.f32 %v4997_v47, %v4997_v47  ;;  %v5009_v18 = vmul.f32 0.5, %v4707_v51  ;;  %v2376_v62 = vadd.f32 1.1283791, %v2375_v16 }
 0x814   : > { %v2453_v4 = vmul.f32 %v2452_v23, %v4914_v57  ;;  %v2415_v9 = vmul.f32 %v2414_v41, %v4863_v49  ;;  %v2488_v1 = vadd.f32 0.00028619796, %v2487_v27  ;;  %v2607_v28 = vmul.f32 2.1237322e-06, %v5001_v52  ;;  %v2119_v23 = vpop.f32.mrf.mxu2 }
 0x815   : > { %v5014_v35 = vmul.f32 0.70710677, %v2088_v7  ;;  %v5017_v60 = vmul.f32 0.5, %v4724_v56  ;;  %v5020_v50 = vmul.f32 0.5, %v4752_v5  ;;  %v2334_v26 = vadd.f32 0.18741608, %v2333_v17 }
 0x816   : > { %v5023_v51 = vadd.f32 %v2023_v40, %v4649_v55  ;;  %v5026_v29 = vmul.f32 0.5, %v4768_v46  ;;  %v2530_v43 = vadd.f32 0.0036580483, %v2529_v3  ;;  %v2569_v59 = vmul.f32 %v2568_v38, %v4984_v21 }
 0x817   : > { %v5029_v61 = vmin.f32 %v2685_v39, 16.0  ;;  %v5032_v15 = vmul.f32 %v2376_v62, %v4721_v19  ;;  %v2454_v56 = vadd.f32 0.18741608, %v2453_v4  ;;  %v5035_v20 = vmul.f32 0.5, %v4925_v54 }
 0x818   : > { %v2378_v5 = vmul.f32 3.8918573e-05, %v4761_v44  ;;  %v2416_v36 = vadd.f32 1.1283791, %v2415_v9  ;;  %v2489_v6 = vmul.f32 %v2488_v1, %v4991_v32  ;;  %v2608_v16 = vadd.f32 0.00028619796, %v2607_v28 }
 0x819   : > { %5694 = vst [vmem:[#allocation9_spill] sm:$0xff] %v5035_v20  ;;  %v2725_v46 = vmul.f32 %v5014_v35, %v5014_v35  ;;  %v2335_v41 = vmul.f32 %v2334_v26, %v4889_v25  ;;  %v5043_v27 = vmul.f32 0.5, %v4945_v2  ;;  %v5046_v19 = vmul.f32 0.70710677, %v5023_v51 }
 0x81a   : > { %v2379_v54 = vadd.f32 0.001143296, %v2378_v5  ;;  %v2531_v17 = vmul.f32 %v2530_v43, %v4972_v8  ;;  %v2570_v3 = vadd.f32 0.0036580483, %v2569_v59  ;;  %v5050_v38 = vmul.f32 0.5, %v4954_v11 }
 0x81b   : > { %5695 = vst [vmem:[#allocation10_spill] sm:$0xff] %v5043_v27  ;;  %v2687_v39 = vmul.f32 2.1237322e-06, %v5029_v61  ;;  %v2455_v40 = vmul.f32 %v2454_v56, %v4914_v57  ;;  %v5055_v62 = vadd.f32 %v2119_v23, %v4654_v14  ;;  %v2418_v4 = vmul.f32 3.8918573e-05, %v4863_v49 }
 0x81c   : > { %5696 = vst [vmem:[#allocation11_spill] sm:$0xff] %v5050_v38  ;;  %v2380_v2 = vmul.f32 %v2379_v54, %v4761_v44  ;;  %v2490_v9 = vadd.f32 0.0036580483, %v2489_v6  ;;  %v5060_v1 = vmul.f32 0.5, %v4969_v30  ;;  %v2609_v28 = vmul.f32 %v2608_v16, %v5001_v52 }
 0x81d   : > { %5697 = vst [vmem:[#allocation12_spill] sm:$0xff] %v5055_v62  ;;  %v5063_v26 = vmin.f32 %v2725_v46, 16.0  ;;  %v2336_v11 = vadd.f32 1.1283791, %v2335_v41  ;;  %v5066_v43 = vmul.f32 0.5, %v4987_v22  ;;  %v2645_v59 = vmul.f32 %v5046_v19, %v5046_v19 }
 0x81e   : > { %5698 = vst [vmem:[#allocation13_spill] sm:$0xff] %v5060_v1  ;;  %v2381_v56 = vadd.f32 0.014752088, %v2380_v2  ;;  %v2532_v5 = vadd.f32 0.05243302, %v2531_v17  ;;  %v2571_v23 = vmul.f32 %v2570_v3, %v4984_v21  ;;  %v2491_v22 = vmul.f32 %v2490_v9, %v4991_v32 }
 0x81f   : > { %5699 = vst [vmem:[#allocation14_spill] sm:$0xff] %v5066_v43  ;;  %v2688_v54 = vadd.f32 0.00028619796, %v2687_v39  ;;  %v2419_v6 = vadd.f32 0.001143296, %v2418_v4  ;;  %v5081_v2 = vmul.f32 0.5, %v2088_v7  ;;  %v5099_v53 = vmul.f32 %v2336_v11, %v4833_v31 }
 0x820   : > { %v5071_v12 = vadd.f32 1.1283791, %v2455_v40  ;;  %v5074_v30 = vmul.f32 0.70710677, %v5055_v62  ;;  %v2382_v16 = vmul.f32 %v2381_v56, %v4761_v44  ;;  %v2338_v46 = vmul.f32 3.8918573e-05, %v4889_v25 }
 0x821   : > { %v2610_v41 = vadd.f32 0.0036580483, %v2609_v28  ;;  %v2727_v33 = vmul.f32 2.1237322e-06, %v5063_v26  ;;  %v2420_v17 = vmul.f32 %v2419_v6, %v4863_v49  ;;  %5701 = vst [vmem:[#allocation16_spill] sm:$0xff] %v5081_v2  ;;  %v5083_v3 = vmin.f32 %v2645_v59, 16.0 }
 0x822   : > { %5700 = vst [vmem:[#allocation15_spill] sm:$0xff] %v5074_v30  ;;  %v2383_v39 = vadd.f32 0.112945676, %v2382_v16  ;;  %v2339_v40 = vadd.f32 0.001143296, %v2338_v46  ;;  %v2533_v4 = vmul.f32 %v2532_v5, %v4972_v8  ;;  %v2689_v56 = vmul.f32 %v2688_v54, %v5029_v61 }
 0x823   : > { %v2572_v13 = vadd.f32 0.05243302, %v2571_v23  ;;  %v2421_v24 = vadd.f32 0.014752088, %v2420_v17  ;;  %v2765_v9 = vmul.f32 %v5074_v30, %v5074_v30  ;;  %v2458_v7 = vmul.f32 3.8918573e-05, %v4914_v57 }
 0x824   : > { %v2384_v28 = vmul.f32 %v2383_v39, %v4761_v44  ;;  %v2340_v0 = vmul.f32 %v2339_v40, %v4889_v25  ;;  %v2492_v6 = vadd.f32 0.05243302, %v2491_v22  ;;  %v2611_v59 = vmul.f32 %v2610_v41, %v5001_v52 }
 0x825   : > { %v2728_v16 = vadd.f32 0.00028619796, %v2727_v33  ;;  %v2422_v46 = vmul.f32 %v2421_v24, %v4863_v49  ;;  %v5095_v5 = vmul.f32 %v2416_v36, %v4742_v42  ;;  %v2647_v23 = vmul.f32 2.1237322e-06, %v5083_v3 }
 0x826   : > { %v2385_v54 = vadd.f32 0.4994258, %v2384_v28  ;;  %v2341_v17 = vadd.f32 0.014752088, %v2340_v0  ;;  %v2534_v39 = vadd.f32 0.18741608, %v2533_v4  ;;  %v2573_v42 = vmul.f32 %v2572_v13, %v4984_v21  ;;  %v2058_v28 = vpop.f32.mrf.mxu0 }
 0x827   : > { %v2423_v40 = vadd.f32 0.112945676, %v2422_v46  ;;  %v2459_v62 = vadd.f32 0.001143296, %v2458_v7  ;;  %v2690_v30 = vadd.f32 0.0036580483, %v2689_v56  ;;  %v2729_v41 = vmul.f32 %v2728_v16, %v5063_v26 }
 0x828   : > { %v5101_v22 = vmin.f32 %v2765_v9, 16.0  ;;  %v2386_v33 = vmul.f32 %v2385_v54, %v4761_v44  ;;  %v2342_v24 = vmul.f32 %v2341_v17, %v4889_v25  ;;  %v2612_v36 = vadd.f32 0.05243302, %v2611_v59 }
 0x829   : > { %v2424_v0 = vmul.f32 %v2423_v40, %v4863_v49  ;;  %v2493_v31 = vmul.f32 %v2492_v6, %v4991_v32  ;;  %v2648_v11 = vadd.f32 0.00028619796, %v2647_v23  ;;  %v5112_v9 = vmul.f32 0.5, %v5023_v51  ;;  %v2090_v40 = vpop.f32.mrf.mxu1 }
 0x82a   : > { %v5109_v4 = vadd.f32 1.0, %v2386_v33  ;;  %v2343_v56 = vadd.f32 0.112945676, %v2342_v24  ;;  %v5115_v7 = vadd.f32 %v2058_v28, %v4636_v45  ;;  %v2460_v13 = vmul.f32 %v2459_v62, %v4914_v57 }
 0x82b   : > { %5702 = vst [vmem:[#allocation17_spill] sm:$0xff] %v5112_v9  ;;  %v2425_v44 = vadd.f32 0.4994258, %v2424_v0  ;;  %v2535_v59 = vmul.f32 %v2534_v39, %v4972_v8  ;;  %v2691_v16 = vmul.f32 %v2690_v30, %v5029_v61  ;;  %v2767_v6 = vmul.f32 2.1237322e-06, %v5101_v22 }
 0x82c   : > { %3626 = vrcp.f32 %v5109_v4  ;;  %v2574_v46 = vadd.f32 0.18741608, %v2573_v42  ;;  %v2730_v23 = vadd.f32 0.0036580483, %v2729_v41  ;;  %v5124_v51 = vmul.f32 0.70710677, %v5115_v7 }
 0x82d   : > { %v2426_v54 = vmul.f32 %v2425_v44, %v4863_v49  ;;  %v2494_v17 = vadd.f32 0.18741608, %v2493_v31  ;;  %v2613_v45 = vmul.f32 %v2612_v36, %v5001_v52  ;;  %v2649_v62 = vmul.f32 %v2648_v11, %v5083_v3 }
 0x82e   : > { %v2344_v39 = vmul.f32 %v2343_v56, %v4889_v25  ;;  %v2845_v33 = vmul.f32 %v5124_v51, %v5124_v51  ;;  %v5134_v24 = vadd.f32 %v2090_v40, %v4638_v10  ;;  %v2461_v49 = vadd.f32 0.014752088, %v2460_v13 }
 0x82f   : > { %v5129_v30 = vadd.f32 1.0, %v2426_v54  ;;  %v5138_v42 = vmul.f32 %v5071_v12, %v4876_v58  ;;  %v2692_v41 = vadd.f32 0.05243302, %v2691_v16  ;;  %v2768_v36 = vadd.f32 0.00028619796, %v2767_v6 }
 0x830   : > { %5703 = vst [vmem:[#allocation18_spill] sm:$0xff] %v5134_v24  ;;  %v2345_v0 = vadd.f32 0.4994258, %v2344_v39  ;;  %v5140_v31 = vadd.f32 1.1283791, %v2535_v59  ;;  %v5143_v11 = vmul.f32 %v2574_v46, %v4984_v21  ;;  %v2731_v28 = vmul.f32 %v2730_v23, %v5063_v26 }
 0x831   : > { %3628 = vrcp.f32 %v5129_v30  ;;  %v5148_v10 = vmul.f32 %v2494_v17, %v4991_v32  ;;  %v2650_v44 = vadd.f32 0.0036580483, %v2649_v62  ;;  %v5150_v13 = vmin.f32 %v2845_v33, 16.0 }
 0x832   : > { %v3627_v56 = vpop.eup %3626  ;;  %v5153_v12 = vmul.f32 0.70710677, %v5134_v24  ;;  %v5155_v58 = vadd.f32 0.18741608, %v2613_v45  ;;  %v2346_v16 = vmul.f32 %v2345_v0, %v4889_v25  ;;  %v2462_v6 = vmul.f32 %v2461_v49, %v4914_v57 }
 0x833   : > { %v2389_v59 = vmul.f32 %v3627_v56, %v5109_v4  ;;  %v5161_v46 = vmul.f32 %v2692_v41, %v5029_v61  ;;  %v2769_v23 = vmul.f32 %v2768_v36, %v5101_v22  ;;  %v2858_v54 = vmul.f32 3.8918573e-05, %v5150_v13 }
 0x834   : > { %v2885_v17 = vmul.f32 %v5153_v12, %v5153_v12  ;;  %v5167_v62 = vadd.f32 0.05243302, %v2731_v28  ;;  %v2397_v40 = vand.u32 2147483647, %v5109_v4  ;;  %v5170_v39 = vadd.f32 1.0, %v2346_v16 }
 0x835   : > { %v2390_v45 = vsub.f32 1.0, %v2389_v59  ;;  %v5173_v25 = vmul.f32 %v2650_v44, %v5083_v3  ;;  %v2399_v33 = vand.u32 2147483648, %v5109_v4  ;;  %v2859_v49 = vadd.f32 0.001143296, %v2858_v54 }
 0x836   : > { %v5176_v41 = vmin.f32 %v2885_v17, 16.0  ;;  %vm2394_vm14 = vweird.f32 %v3627_v56  ;;  %3630 = vrcp.f32 %v5170_v39  ;;  %v2463_v28 = vadd.f32 0.112945676, %v2462_v6 }
 0x837   : > { %v3629_v36 = vpop.eup %3628  ;;  %v2391_v0 = vmul.f32 %v3627_v56, %v2390_v45  ;;  %v2770_v9 = vadd.f32 0.0036580483, %v2769_v23  ;;  %vm2393_vm2 = vweird.f32 %v5109_v4  ;;  %v2860_v16 = vmul.f32 %v2859_v49, %v5150_v13 }
 0x838   : > { %v2429_v59 = vmul.f32 %v3629_v36, %v5129_v30  ;;  %vm2398_vm15 = vcmp.eq.f32.partialorder %v2397_v40, 8.507059e+37  ;;  %v2847_v24 = vmul.f32 2.1237322e-06, %v5150_v13  ;;  %v2898_v54 = vmul.f32 3.8918573e-05, %v5176_v41  ;;  %vm2395_vm0 = vmor %vm2393_vm2, %vm2394_vm14 }
 0x839   : > { %v2392_v44 = vadd.f32 %v3627_v56, %v2391_v0  ;;  %v2400_v17 = vor.u32 1.1754944e-38, %v2399_v33  ;;  %v2437_v2 = vand.u32 2147483647, %v5129_v30  ;;  %v2861_v43 = vadd.f32 0.014752088, %v2860_v16 }
 0x83a   : > { %v2430_v45 = vsub.f32 1.0, %v2429_v59  ;;  %v2439_v23 = vand.u32 2147483648, %v5129_v30  ;;  %v2899_v4 = vadd.f32 0.001143296, %v2898_v54  ;;  %v2464_v1 = vmul.f32 %v2463_v28, %v4914_v57 }
 0x83b   : > { %v2396_v6 = vsel %vm2395_vm0, %v3627_v56, %v2392_v44  ;;  %vm2434_vm1 = vweird.f32 %v3629_v36  ;;  %v2862_v40 = vmul.f32 %v2861_v43, %v5150_v13  ;;  %vm2433_vm4 = vweird.f32 %v5129_v30 }
 0x83c   : > { %v2401_v38 = vsel %vm2398_vm15, %v2400_v17, %v2396_v6  ;;  %v2431_v49 = vmul.f32 %v3629_v36, %v2430_v45  ;;  %v3631_v0 = vpop.eup %3630  ;;  %v2848_v33 = vadd.f32 0.00028619796, %v2847_v24  ;;  %v2900_v59 = vmul.f32 %v2899_v4, %v5176_v41  ;;  %vm2435_vm5 = vmor %vm2433_vm4, %vm2434_vm1 }
 0x83d   : > { %v2402_v27 = vmul.f32 %v2401_v38, %v5032_v15  ;;  %v2863_v56 = vadd.f32 0.112945676, %v2862_v40  ;;  %v2887_v44 = vmul.f32 2.1237322e-06, %v5176_v41  ;;  %v2349_v54 = vmul.f32 %v3631_v0, %v5170_v39 }
 0x83e   : > { %v2432_v16 = vadd.f32 %v3629_v36, %v2431_v49  ;;  %v2440_v17 = vor.u32 1.1754944e-38, %v2439_v23  ;;  %v2901_v45 = vadd.f32 0.014752088, %v2900_v59  ;;  %v2465_v6 = vadd.f32 0.4994258, %v2464_v1 }
 0x83f   : > { %v3408_v28 = vclamps-f32 %v2402_v27, 1.0  ;;  %vm2438_vm6 = vcmp.eq.f32.partialorder %v2437_v2, 8.507059e+37  ;;  %v2864_v15 = vmul.f32 %v2863_v56, %v5150_v13  ;;  %v2350_v38 = vsub.f32 1.0, %v2349_v54 }
 0x840   : > { %v2436_v43 = vsel %vm2435_vm5, %v3629_v36, %v2432_v16  ;;  %v2902_v4 = vmul.f32 %v2901_v45, %v5176_v41  ;;  %v2359_v49 = vand.u32 2147483648, %v5170_v39  ;;  %vm2354_vm7 = vweird.f32 %v3631_v0 }
 0x841   : > { %v2970_v30 = vadd.f32 1.0, %v3408_v28  ;;  %v2441_v24 = vsel %vm2438_vm6, %v2440_v17, %v2436_v43  ;;  %v2351_v20 = vmul.f32 %v3631_v0, %v2350_v38  ;;  %v2357_v27 = vand.u32 2147483647, %v5170_v39 }
 0x842   : > { %v2442_v40 = vmul.f32 %v2441_v24, %v5095_v5  ;;  %v2849_v1 = vmul.f32 %v2848_v33, %v5150_v13  ;;  %v2888_v2 = vadd.f32 0.00028619796, %v2887_v44  ;;  %v2466_v36 = vmul.f32 %v2465_v6, %v4914_v57 }
 0x843   : > { %v2990_v23 = vmul.f32 %v2970_v30, %v5009_v18  ;;  %v2865_v16 = vadd.f32 0.4994258, %v2864_v15  ;;  %v2352_v56 = vadd.f32 %v3631_v0, %v2351_v20  ;;  %vm2353_vm8 = vweird.f32 %v5170_v39  ;;  %v2026_v15 = vpop.f32.mrf.mxu3 }
 0x844   : > { %v3409_v59 = vclamps-f32 %v2442_v40, 1.0  ;;  %v2652_v54 = vadd.f32 0.05243302, %v5173_v25  ;;  %v2903_v5 = vadd.f32 0.112945676, %v2902_v4  ;;  %vm2355_vm9 = vmor %vm2353_vm8, %vm2354_vm7  ;;  %v2360_v28 = vor.u32 1.1754944e-38, %v2359_v49 }
 0x845   : > { %3122 = vmatmul.f32.gmra.mxu0 %v2990_v23  ;;  %v5203_v17 = vadd.f32 1.0, %v2466_v36  ;;  %v2771_v18 = vmul.f32 %v2770_v9, %v5101_v22  ;;  %v2356_v33 = vsel %vm2355_vm9, %v3631_v0, %v2352_v56  ;;  %vm2358_vm10 = vcmp.eq.f32.partialorder %v2357_v27, 8.507059e+37 }
 0x846   : > { %v2971_v45 = vadd.f32 1.0, %v3409_v59  ;;  %v2850_v44 = vadd.f32 0.0036580483, %v2849_v1  ;;  %v2889_v57 = vmul.f32 %v2888_v2, %v5176_v41  ;;  %v2361_v6 = vsel %vm2358_vm10, %v2360_v28, %v2356_v33  ;;  %v2122_v2 = vpop.f32.mrf.mxu2 }
 0x847   : > { %3632 = vrcp.f32 %v5203_v17  ;;  %v2576_v20 = vadd.f32 1.1283791, %v5143_v11  ;;  %v2496_v39 = vadd.f32 1.1283791, %v5148_v10  ;;  %v2866_v43 = vmul.f32 %v2865_v16, %v5150_v13 }
 0x848   : > { %v2991_v25 = vmul.f32 %v2971_v45, %v5017_v60  ;;  %v2615_v9 = vmul.f32 %v5155_v58, %v5001_v52  ;;  %v2694_v0 = vadd.f32 0.18741608, %v5161_v46  ;;  %v2904_v38 = vmul.f32 %v2903_v5, %v5176_v41 }
 0x849   : > { %v2538_v30 = vmul.f32 3.8918573e-05, %v4972_v8  ;;  %v5219_v24 = vmul.f32 %v5140_v31, %v4942_v34  ;;  %v2733_v11 = vmul.f32 %v5167_v62, %v5063_v26  ;;  %v2653_v60 = vmul.f32 %v2652_v54, %v5083_v3 }
 0x84a   : > { %3154 = vmatmul.f32.gmra.mxu1 %v2991_v25  ;;  %v2362_v10 = vmul.f32 %v2361_v6, %v5099_v53  ;;  %v2772_v4 = vadd.f32 0.05243302, %v2771_v18  ;;  %v2851_v58 = vmul.f32 %v2850_v44, %v5150_v13  ;;  %v2890_v46 = vadd.f32 0.0036580483, %v2889_v57 }
 0x84b   : > { %v5227_v49 = vadd.f32 %v2026_v15, %v4649_v55  ;;  %v5230_v40 = vmul.f32 %v2576_v20, %v4961_v48  ;;  %v5233_v34 = vmul.f32 %v2496_v39, %v4966_v37  ;;  %v5235_v31 = vadd.f32 1.0, %v2866_v43 }
 0x84c   : > { %v3407_v62 = vclamps-f32 %v2362_v10, 1.0  ;;  %v2616_v23 = vadd.f32 1.1283791, %v2615_v9  ;;  %v2695_v53 = vmul.f32 %v2694_v0, %v5029_v61  ;;  %v2905_v1 = vadd.f32 0.4994258, %v2904_v38 }
 0x84d   : > { %v3633_v27 = vpop.eup %3632  ;;  %v2539_v36 = vadd.f32 0.001143296, %v2538_v30  ;;  %v2734_v59 = vadd.f32 0.18741608, %v2733_v11  ;;  %v2654_v16 = vadd.f32 0.18741608, %v2653_v60  ;;  %v2773_v48 = vmul.f32 %v2772_v4, %v5101_v22 }
 0x84e   : > { %v2969_v55 = vadd.f32 1.0, %v3407_v62  ;;  %v2469_v56 = vmul.f32 %v3633_v27, %v5203_v17  ;;  %v2852_v54 = vadd.f32 0.05243302, %v2851_v58  ;;  %v2891_v37 = vmul.f32 %v2890_v46, %v5176_v41 }
 0x84f   : > { %v5242_v5 = vmul.f32 0.70710677, %v5227_v49  ;;  %3634 = vrcp.f32 %v5235_v31  ;;  %v5247_v45 = vadd.f32 %v2122_v2, %v4654_v14  ;;  %v2906_v33 = vmul.f32 %v2905_v1, %v5176_v41 }
 0x850   : > { %v2989_v28 = vmul.f32 %v2969_v55, %v5020_v50  ;;  %v2470_v18 = vsub.f32 1.0, %v2469_v56  ;;  %v2479_v44 = vand.u32 2147483648, %v5203_v17  ;;  %v2540_v6 = vmul.f32 %v2539_v36, %v4972_v8 }
 0x851   : > { %v2805_v57 = vmul.f32 %v5242_v5, %v5242_v5  ;;  %vm2474_vm11 = vweird.f32 %v3633_v27  ;;  %v2477_v39 = vand.u32 2147483647, %v5203_v17  ;;  %v5256_v50 = vmul.f32 0.70710677, %v5247_v45 }
 0x852   : > { %3090 = vmatmul.f32.gmra.mxu3 %v2989_v28  ;;  %v2471_v20 = vmul.f32 %v3633_v27, %v2470_v18  ;;  %v2853_v14 = vmul.f32 %v2852_v54, %v5150_v13  ;;  %v2892_v25 = vadd.f32 0.05243302, %v2891_v37  ;;  %v2541_v15 = vadd.f32 0.014752088, %v2540_v6 }
 0x853   : > { %v5259_v43 = vmin.f32 %v2805_v57, 16.0  ;;  %vm2473_vm12 = vweird.f32 %v5203_v17  ;;  %v2925_v0 = vmul.f32 %v5256_v50, %v5256_v50  ;;  %v2578_v38 = vmul.f32 3.8918573e-05, %v4984_v21 }
 0x854   : > { %v2472_v9 = vadd.f32 %v3633_v27, %v2471_v20  ;;  %v5265_v30 = vadd.f32 1.0, %v2906_v33  ;;  %vm2475_vm13 = vmor %vm2473_vm12, %vm2474_vm11  ;;  %v2480_v11 = vor.u32 1.1754944e-38, %v2479_v44  ;;  %vm2478_vm3 = vcmp.eq.f32.partialorder %v2477_v39, 8.507059e+37 }
 0x855   : > { %v2807_v60 = vmul.f32 2.1237322e-06, %v5259_v43  ;;  %v2818_v10 = vmul.f32 3.8918573e-05, %v5259_v43  ;;  %v5269_v4 = vpop.eup %3634  ;;  %v5271_v46 = vmin.f32 %v2925_v0, 16.0  ;;  %v2542_v17 = vmul.f32 %v2541_v15, %v4972_v8 }
 0x856   : > { %v2476_v58 = vsel %vm2475_vm13, %v3633_v27, %v2472_v9  ;;  %v5275_v62 = vmul.f32 %v2616_v23, %v4980_v63  ;;  %v2696_v1 = vadd.f32 1.1283791, %v2695_v53  ;;  %v2735_v55 = vmul.f32 %v2734_v59, %v5063_v26 }
 0x857   : > { %v2481_v2 = vsel %vm2478_vm3, %v2480_v11, %v2476_v58  ;;  %v2808_v36 = vadd.f32 0.00028619796, %v2807_v60  ;;  %v2819_v54 = vadd.f32 0.001143296, %v2818_v10  ;;  %v2579_v37 = vadd.f32 0.001143296, %v2578_v38 }
 0x858   : > { %v2482_v56 = vmul.f32 %v2481_v2, %v5138_v42  ;;  %v2655_v28 = vmul.f32 %v2654_v16, %v5083_v3  ;;  %v2774_v27 = vadd.f32 0.18741608, %v2773_v48  ;;  %v2854_v18 = vadd.f32 0.18741608, %v2853_v14 }
 0x859   : > { %v2938_v33 = vmul.f32 3.8918573e-05, %v5271_v46  ;;  %v2893_v44 = vmul.f32 %v2892_v25, %v5176_v41  ;;  %3636 = vrcp.f32 %v5265_v30  ;;  %v2543_v23 = vadd.f32 0.112945676, %v2542_v17 }
 0x85a   : > { %v3410_v63 = vclamps-f32 %v2482_v56, 1.0  ;;  %v2869_v53 = vmul.f32 %v5269_v4, %v5235_v31  ;;  %v2809_v59 = vmul.f32 %v2808_v36, %v5259_v43  ;;  %v2927_v42 = vmul.f32 2.1237322e-06, %v5271_v46 }
 0x85b   : > { %v2498_v57 = vmul.f32 3.8918573e-05, %v4991_v32  ;;  %v2820_v48 = vmul.f32 %v2819_v54, %v5259_v43  ;;  %v2544_v6 = vmul.f32 %v2543_v23, %v4972_v8  ;;  %v2580_v20 = vmul.f32 %v2579_v37, %v4984_v21 }
 0x85c   : > { %v2972_v16 = vadd.f32 1.0, %v3410_v63  ;;  %v2736_v39 = vadd.f32 1.1283791, %v2735_v55  ;;  %v2656_v14 = vadd.f32 1.1283791, %v2655_v28  ;;  %v2775_v25 = vmul.f32 %v2774_v27, %v5101_v22 }
 0x85d   : > { %v2939_v15 = vadd.f32 0.001143296, %v2938_v33  ;;  %v2855_v9 = vmul.f32 %v2854_v18, %v5150_v13  ;;  %v2894_v0 = vadd.f32 0.18741608, %v2893_v44  ;;  %v2545_v11 = vadd.f32 0.4994258, %v2544_v6 }
 0x85e   : > { %v2992_v38 = vmul.f32 %v2972_v16, %v5026_v29  ;;  %v5295_v60 = vmul.f32 %v2696_v1, %v4997_v47  ;;  %v2870_v10 = vsub.f32 1.0, %v2869_v53  ;;  %v2810_v58 = vadd.f32 0.0036580483, %v2809_v59 }
 0x85f   : > { %v2928_v17 = vadd.f32 0.00028619796, %v2927_v42  ;;  %v5297_v2 = vpop.eup %3636  ;;  %v2821_v36 = vadd.f32 0.014752088, %v2820_v48  ;;  %v2546_v55 = vmul.f32 %v2545_v11, %v4972_v8  ;;  %v2581_v56 = vadd.f32 0.014752088, %v2580_v20 }
 0x860   : > { %3186 = vmatmul.f32.gmra.mxu2 %v2992_v38  ;;  %v2499_v54 = vadd.f32 0.001143296, %v2498_v57  ;;  %v5301_v13 = vmul.f32 %v2736_v39, %v5014_v35  ;;  %v5304_v29 = vmul.f32 %v2656_v14, %v5046_v19  ;;  %v5306_v37 = vadd.f32 1.1283791, %v2775_v25 }
 0x861   : > { %v2940_v47 = vmul.f32 %v2939_v15, %v5271_v46  ;;  %v2856_v1 = vadd.f32 1.1283791, %v2855_v9  ;;  %v2895_v28 = vmul.f32 %v2894_v0, %v5176_v41  ;;  %v5310_v27 = vadd.f32 1.0, %v2546_v55 }
 0x862   : > { %v2582_v18 = vmul.f32 %v2581_v56, %v4984_v21  ;;  %v2871_v8 = vmul.f32 %v5269_v4, %v2870_v10  ;;  %v2877_v33 = vand.u32 2147483647, %v5235_v31  ;;  %v2909_v35 = vmul.f32 %v5297_v2, %v5265_v30 }
 0x863   : > { %v2929_v19 = vmul.f32 %v2928_v17, %v5271_v46  ;;  %v2811_v44 = vmul.f32 %v2810_v58, %v5259_v43  ;;  %v2822_v63 = vmul.f32 %v2821_v36, %v5259_v43  ;;  %3638 = vrcp.f32 %v5310_v27 }
 0x864   : > { %v2500_v41 = vmul.f32 %v2499_v54, %v4991_v32  ;;  %v5323_v23 = vmul.f32 0.5, %v5115_v7  ;;  %v2879_v53 = vand.u32 2147483648, %v5235_v31  ;;  %v2941_v59 = vadd.f32 0.014752088, %v2940_v47 }
 0x865   : > { %v2618_v42 = vmul.f32 3.8918573e-05, %v5001_v52  ;;  %v5328_v57 = vmul.f32 %v2856_v1, %v5124_v51  ;;  %vm2873_vm14 = vweird.f32 %v5235_v31  ;;  %v2896_v16 = vadd.f32 1.1283791, %v2895_v28 }
 0x866   : > { %v2583_v48 = vadd.f32 0.112945676, %v2582_v18  ;;  %v2872_v6 = vadd.f32 %v5269_v4, %v2871_v8  ;;  %vm2874_vm2 = vweird.f32 %v5269_v4  ;;  %v2910_v20 = vsub.f32 1.0, %v2909_v35 }
 0x867   : > { %v2930_v39 = vadd.f32 0.0036580483, %v2929_v19  ;;  %v2812_v7 = vadd.f32 0.05243302, %v2811_v44  ;;  %v2823_v14 = vadd.f32 0.112945676, %v2822_v63  ;;  %v2942_v0 = vmul.f32 %v2941_v59, %v5271_v46  ;;  %vm5341_vm0 = vmor %vm2873_vm14, %vm2874_vm2 }
 0x868   : > { %v2584_v25 = vmul.f32 %v2583_v48, %v4984_v21  ;;  %v2501_v15 = vadd.f32 0.014752088, %v2500_v41  ;;  %vm5334_vm15 = vcmp.eq.f32.partialorder %v2877_v33, 8.507059e+37  ;;  %v2880_v51 = vor.u32 1.1754944e-38, %v2879_v53 }
 0x869   : > { %v2619_v38 = vadd.f32 0.001143296, %v2618_v42  ;;  %v3639_v11 = vpop.eup %3638  ;;  %v5346_v58 = vmul.f32 %v2896_v16, %v5153_v12  ;;  %v2917_v17 = vand.u32 2147483647, %v5265_v30  ;;  %v2919_v36 = vand.u32 2147483648, %v5265_v30 }
 0x86a   : > { %v2585_v55 = vadd.f32 0.4994258, %v2584_v25  ;;  %v2876_v56 = vsel %vm5341_vm0, %v5269_v4, %v2872_v6  ;;  %v2911_v54 = vmul.f32 %v5297_v2, %v2910_v20  ;;  %v2549_v31 = vmul.f32 %v3639_v11, %v5310_v27 }
 0x86b   : > { %v2502_v47 = vmul.f32 %v2501_v15, %v4991_v32  ;;  %v2813_v1 = vmul.f32 %v2812_v7, %v5259_v43  ;;  %v2824_v12 = vmul.f32 %v2823_v14, %v5259_v43  ;;  %v2931_v28 = vmul.f32 %v2930_v39, %v5271_v46 }
 0x86c   : > { %v2586_v18 = vmul.f32 %v2585_v55, %v4984_v21  ;;  %vm2913_vm1 = vweird.f32 %v5265_v30  ;;  %v2943_v8 = vadd.f32 0.112945676, %v2942_v0  ;;  %v2550_v33 = vsub.f32 1.0, %v2549_v31 }
 0x86d   : > { %v2503_v35 = vadd.f32 0.112945676, %v2502_v47  ;;  %v2620_v4 = vmul.f32 %v2619_v38, %v5001_v52  ;;  %vm2554_vm4 = vweird.f32 %v3639_v11  ;;  %v2557_v19 = vand.u32 2147483647, %v5310_v27 }
 0x86e   : > { %v2559_v44 = vand.u32 2147483648, %v5310_v27  ;;  %v2698_v63 = vmul.f32 3.8918573e-05, %v5029_v61  ;;  %v2551_v41 = vmul.f32 %v3639_v11, %v2550_v33  ;;  %v5365_v53 = vadd.f32 1.0, %v2586_v18 }
 0x86f   : > { %v2504_v59 = vmul.f32 %v2503_v35, %v4991_v32  ;;  %v2621_v21 = vadd.f32 0.014752088, %v2620_v4  ;;  %v2881_v42 = vsel %vm5334_vm15, %v2880_v51, %v2876_v56  ;;  %vm2914_vm5 = vweird.f32 %v5297_v2 }
 0x870   : > { %v2825_v16 = vadd.f32 0.4994258, %v2824_v12  ;;  %v2932_v48 = vadd.f32 0.05243302, %v2931_v28  ;;  %vm5371_vm6 = vcmp.eq.f32.partialorder %v2917_v17, 8.507059e+37  ;;  %v2944_v20 = vmul.f32 %v2943_v8, %v5271_v46  ;;  %vm5393_vm10 = vmor %vm2913_vm1, %vm2914_vm5 }
 0x871   : > { %v2552_v39 = vadd.f32 %v3639_v11, %v2551_v41  ;;  %vm2553_vm7 = vweird.f32 %v5310_v27  ;;  %3640 = vrcp.f32 %v5365_v53  ;;  %v2814_v7 = vadd.f32 0.18741608, %v2813_v1 }
 0x872   : > { %vm2555_vm8 = vmor %vm2553_vm7, %vm2554_vm4  ;;  %v2560_v14 = vor.u32 1.1754944e-38, %v2559_v44  ;;  %v2505_v25 = vadd.f32 0.4994258, %v2504_v59  ;;  %v2622_v15 = vmul.f32 %v2621_v21, %v5001_v52  ;;  %v2912_v9 = vadd.f32 %v5297_v2, %v2911_v54  ;;  %v5712_v59 = vld [vmem:[#allocation9_spill] sm:$0xff] }
 0x873   : > { %v2556_v51 = vsel %vm2555_vm8, %v3639_v11, %v2552_v39  ;;  %vm2558_vm9 = vcmp.eq.f32.partialorder %v2557_v19, 8.507059e+37  ;;  %v2699_v0 = vadd.f32 0.001143296, %v2698_v63  ;;  %v2826_v38 = vmul.f32 %v2825_v16, %v5259_v43 }
 0x874   : > { %v2561_v10 = vsel %vm2558_vm9, %v2560_v14, %v2556_v51  ;;  %v2506_v17 = vmul.f32 %v2505_v25, %v4991_v32  ;;  %v2738_v27 = vmul.f32 3.8918573e-05, %v5063_v26  ;;  %v2933_v55 = vmul.f32 %v2932_v48, %v5271_v46 }
 0x875   : > { %v2945_v56 = vadd.f32 0.4994258, %v2944_v20  ;;  %v2562_v31 = vmul.f32 %v2561_v10, %v5219_v24  ;;  %v2623_v47 = vadd.f32 0.112945676, %v2622_v15  ;;  %v5387_v1 = vmul.f32 %v2881_v42, %v5328_v57 }
 0x876   : > { %v2920_v32 = vor.u32 1.1754944e-38, %v2919_v36  ;;  %v2815_v54 = vmul.f32 %v2814_v7, %v5259_v43  ;;  %v5398_v12 = vadd.f32 1.0, %v2506_v17  ;;  %v2916_v24 = vsel %vm5393_vm10, %v5297_v2, %v2912_v9 }
 0x877   : > { %v3641_v28 = vpop.eup %3640  ;;  %v3412_v57 = vclamps-f32 %v2562_v31, 1.0  ;;  %v2624_v18 = vmul.f32 %v2623_v47, %v5001_v52  ;;  %v2700_v8 = vmul.f32 %v2699_v0, %v5029_v61  ;;  %v5405_v30 = vadd.f32 1.0, %v2826_v38 }
 0x878   : > { %v2589_v33 = vmul.f32 %v3641_v28, %v5365_v53  ;;  %3642 = vrcp.f32 %v5398_v12  ;;  %v2739_v36 = vadd.f32 0.001143296, %v2738_v27  ;;  %v5409_v43 = vadd.f32 0.18741608, %v2933_v55 }
 0x879   : > { %v2946_v35 = vmul.f32 %v2945_v56, %v5271_v46  ;;  %v2974_v4 = vadd.f32 1.0, %v3412_v57  ;;  %v2658_v19 = vmul.f32 3.8918573e-05, %v5083_v3  ;;  %v5415_v2 = vsel %vm5371_vm6, %v2920_v32, %v2916_v24 }
 0x87a   : > { %v5417_v44 = vadd.f32 1.1283791, %v2815_v54  ;;  %v2590_v63 = vsub.f32 1.0, %v2589_v33  ;;  %v2597_v41 = vand.u32 2147483647, %v5365_v53  ;;  %v2599_v42 = vand.u32 2147483648, %v5365_v53 }
 0x87b   : > { %v2994_v21 = vmul.f32 %v2974_v4, %v5712_v59  ;;  %v2625_v16 = vadd.f32 0.4994258, %v2624_v18  ;;  %v2701_v48 = vadd.f32 0.014752088, %v2700_v8  ;;  %3644 = vrcp.f32 %v5405_v30 }
 0x87c   : > { %v2591_v20 = vmul.f32 %v3641_v28, %v2590_v63  ;;  %vm2594_vm11 = vweird.f32 %v3641_v28  ;;  %v2740_v39 = vmul.f32 %v2739_v36, %v5063_v26  ;;  %v5424_v6 = vadd.f32 1.0, %v2946_v35 }
 0x87d   : > { %3125 = vmatmul.f32.gmra.mxu0 %v2994_v21  ;;  %v2626_v7 = vmul.f32 %v2625_v16, %v5001_v52  ;;  %v2702_v14 = vmul.f32 %v2701_v48, %v5029_v61  ;;  %v2659_v25 = vadd.f32 0.001143296, %v2658_v19  ;;  %vm2593_vm12 = vweird.f32 %v5365_v53 }
 0x87e   : > { %v3643_v15 = vpop.eup %3642  ;;  %v2592_v9 = vadd.f32 %v3641_v28, %v2591_v20  ;;  %vm2598_vm13 = vcmp.eq.f32.partialorder %v2597_v41, 8.507059e+37  ;;  %v2741_v51 = vadd.f32 0.014752088, %v2740_v39  ;;  %vm2595_vm3 = vmor %vm2593_vm12, %vm2594_vm11  ;;  %v2600_v0 = vor.u32 1.1754944e-38, %v2599_v42  ;;  %v5713_v39 = vld [vmem:[#allocation10_spill] sm:$0xff] }
 0x87f   : > { %v2509_v38 = vmul.f32 %v3643_v15, %v5398_v12  ;;  %v5430_v10 = vadd.f32 1.0, %v2626_v7  ;;  %v2778_v17 = vmul.f32 3.8918573e-05, %v5101_v22  ;;  %v2703_v55 = vadd.f32 0.112945676, %v2702_v14 }
 0x880   : > { %v2596_v27 = vsel %vm2595_vm3, %v3641_v28, %v2592_v9  ;;  %v2742_v52 = vmul.f32 %v2741_v51, %v5063_v26  ;;  %v2660_v56 = vmul.f32 %v2659_v25, %v5083_v3  ;;  %v2517_v53 = vand.u32 2147483647, %v5398_v12 }
 0x881   : > { %v2601_v31 = vsel %vm2598_vm13, %v2600_v0, %v2596_v27  ;;  %v2510_v47 = vsub.f32 1.0, %v2509_v38  ;;  %3646 = vrcp.f32 %v5430_v10  ;;  %v5437_v11 = vpop.eup %3644  ;;  %vm2514_vm14 = vweird.f32 %v3643_v15 }
 0x882   : > { %v2602_v32 = vmul.f32 %v2601_v31, %v5230_v40  ;;  %v2519_v54 = vand.u32 2147483648, %v5398_v12  ;;  %v2704_v28 = vmul.f32 %v2703_v55, %v5029_v61  ;;  %v2743_v57 = vadd.f32 0.112945676, %v2742_v52 }
 0x883   : > { %v2511_v24 = vmul.f32 %v3643_v15, %v2510_v47  ;;  %v2661_v18 = vadd.f32 0.014752088, %v2660_v56  ;;  %v2779_v8 = vadd.f32 0.001143296, %v2778_v17  ;;  %3648 = vrcp.f32 %v5424_v6 }
 0x884   : > { %v3413_v33 = vclamps-f32 %v2602_v32, 1.0  ;;  %vm2513_vm2 = vweird.f32 %v5398_v12  ;;  %v2705_v36 = vadd.f32 0.4994258, %v2704_v28  ;;  %v2744_v4 = vmul.f32 %v2743_v57, %v5063_v26  ;;  %v5714_v28 = vld [vmem:[#allocation11_spill] sm:$0xff] }
 0x885   : > { %v2512_v35 = vadd.f32 %v3643_v15, %v2511_v24  ;;  %v2662_v40 = vmul.f32 %v2661_v18, %v5083_v3  ;;  %v2780_v19 = vmul.f32 %v2779_v8, %v5101_v22  ;;  %vm2515_vm15 = vmor %vm2513_vm2, %vm2514_vm14  ;;  %vm2518_vm0 = vcmp.eq.f32.partialorder %v2517_v53, 8.507059e+37 }
 0x886   : > { %v2975_v63 = vadd.f32 1.0, %v3413_v33  ;;  %v2520_v41 = vor.u32 1.1754944e-38, %v2519_v54  ;;  %v2706_v59 = vmul.f32 %v2705_v36, %v5029_v61  ;;  %v2745_v16 = vadd.f32 0.4994258, %v2744_v4 }
 0x887   : > { %v3647_v21 = vpop.eup %3646  ;;  %v2516_v42 = vsel %vm2515_vm15, %v3643_v15, %v2512_v35  ;;  %v2663_v48 = vadd.f32 0.112945676, %v2662_v40  ;;  %v2781_v12 = vadd.f32 0.014752088, %v2780_v19  ;;  %v2829_v20 = vmul.f32 %v5437_v11, %v5405_v30 }
 0x888   : > { %v2995_v7 = vmul.f32 %v2975_v63, %v5713_v39  ;;  %v2521_v14 = vsel %vm2518_vm0, %v2520_v41, %v2516_v42  ;;  %v2629_v25 = vmul.f32 %v3647_v21, %v5430_v10  ;;  %v5454_v51 = vadd.f32 1.0, %v2706_v59 }
 0x889   : > { %v2522_v9 = vmul.f32 %v2521_v14, %v5233_v34  ;;  %v2746_v0 = vmul.f32 %v2745_v16, %v5063_v26  ;;  %v2664_v61 = vmul.f32 %v2663_v48, %v5083_v3  ;;  %v5458_v15 = vpop.eup %3648  ;;  %v5462_v38 = vmul.f32 %v5415_v2, %v5346_v58 }
 0x88a   : > { %v2935_v17 = vmul.f32 %v5409_v43, %v5271_v46  ;;  %3157 = vmatmul.f32.gmra.mxu1 %v2995_v7  ;;  %v2630_v27 = vsub.f32 1.0, %v2629_v25  ;;  %v2782_v55 = vmul.f32 %v2781_v12, %v5101_v22  ;;  %v2637_v52 = vand.u32 2147483647, %v5430_v10 }
 0x88b   : > { %v3411_v34 = vclamps-f32 %v2522_v9, 1.0  ;;  %v2639_v26 = vand.u32 2147483648, %v5430_v10  ;;  %3650 = vrcp.f32 %v5454_v51  ;;  %vm2634_vm1 = vweird.f32 %v3647_v21 }
 0x88c   : > { %v2631_v56 = vmul.f32 %v3647_v21, %v2630_v27  ;;  %v5470_v31 = vadd.f32 1.0, %v2746_v0  ;;  %v2665_v58 = vadd.f32 0.4994258, %v2664_v61  ;;  %v5474_v2 = vmul.f32 %v5417_v44, %v5242_v5  ;;  %v5719_v27 = vld [vmem:[#allocation13_spill] sm:$0xff] }
 0x88d   : > { %v2830_v46 = vsub.f32 1.0, %v2829_v20  ;;  %v2973_v43 = vadd.f32 1.0, %v3411_v34  ;;  %v2783_v47 = vadd.f32 0.112945676, %v2782_v55  ;;  %v2839_v53 = vand.u32 2147483648, %v5405_v30 }
 0x88e   : > { %v2632_v32 = vadd.f32 %v3647_v21, %v2631_v56  ;;  %vm2633_vm4 = vweird.f32 %v5430_v10  ;;  %3652 = vrcp.f32 %v5470_v31  ;;  %vm2833_vm5 = vweird.f32 %v5405_v30 }
 0x88f   : > { %v2949_v54 = vmul.f32 %v5458_v15, %v5424_v6  ;;  %v2993_v24 = vmul.f32 %v2973_v43, %v5714_v28  ;;  %vm2635_vm6 = vmor %vm2633_vm4, %vm2634_vm1  ;;  %v2640_v5 = vor.u32 1.1754944e-38, %v2639_v26  ;;  %v2666_v44 = vmul.f32 %v2665_v58, %v5083_v3 }
 0x890   : > { %v2837_v57 = vand.u32 2147483647, %v5405_v30  ;;  %v2636_v18 = vsel %vm2635_vm6, %v3647_v21, %v2632_v32  ;;  %vm2638_vm7 = vcmp.eq.f32.partialorder %v2637_v52, 8.507059e+37  ;;  %v2784_v8 = vmul.f32 %v2783_v47, %v5101_v22 }
 0x891   : > { %v3651_v10 = vpop.eup %3650  ;;  %v2831_v33 = vmul.f32 %v5437_v11, %v2830_v46  ;;  %v5487_v36 = vadd.f32 1.1283791, %v2935_v17  ;;  %3093 = vmatmul.f32.gmra.mxu3 %v2993_v24  ;;  %v2641_v35 = vsel %vm2638_vm7, %v2640_v5, %v2636_v18  ;;  %v5489_v4 = vadd.f32 1.0, %v2666_v44  ;;  %v5724_v17 = vld [vmem:[#allocation15_spill] sm:$0xff] }
 0x892   : > { %v2840_v40 = vor.u32 1.1754944e-38, %v2839_v53  ;;  %v2642_v19 = vmul.f32 %v2641_v35, %v5275_v62  ;;  %v2709_v3 = vmul.f32 %v3651_v10, %v5454_v51  ;;  %v2785_v63 = vadd.f32 0.4994258, %v2784_v8 }
 0x893   : > { %v2950_v41 = vsub.f32 1.0, %v2949_v54  ;;  %v2957_v59 = vand.u32 2147483647, %v5424_v6  ;;  %v2959_v21 = vand.u32 2147483648, %v5424_v6  ;;  %3654 = vrcp.f32 %v5489_v4 }
 0x894   : > { %v3653_v42 = vpop.eup %3652  ;;  %vm2834_vm8 = vweird.f32 %v5437_v11  ;;  %vm5497_vm9 = vcmp.eq.f32.partialorder %v2837_v57, 8.507059e+37  ;;  %v3414_v48 = vclamps-f32 %v2642_v19, 1.0  ;;  %v2710_v12 = vsub.f32 1.0, %v2709_v3 }
 0x895   : > { %v2786_v62 = vmul.f32 %v2785_v63, %v5101_v22  ;;  %v2832_v20 = vadd.f32 %v5437_v11, %v2831_v33  ;;  %vm2953_vm10 = vweird.f32 %v5424_v6  ;;  %v2717_v39 = vand.u32 2147483647, %v5454_v51  ;;  %vm5516_vm3 = vmor %vm2833_vm5, %vm2834_vm8 }
 0x896   : > { %v2719_v7 = vand.u32 2147483648, %v5454_v51  ;;  %v2749_v14 = vmul.f32 %v3653_v42, %v5470_v31  ;;  %v2976_v25 = vadd.f32 1.0, %v3414_v48  ;;  %v2711_v9 = vmul.f32 %v3651_v10, %v2710_v12  ;;  %v5722_v12 = vld [vmem:[#allocation14_spill] sm:$0xff] }
 0x897   : > { %vm2714_vm11 = vweird.f32 %v3651_v10  ;;  %v5507_v0 = vadd.f32 1.0, %v2786_v62  ;;  %v2951_v61 = vmul.f32 %v5458_v15, %v2950_v41  ;;  %vm2954_vm12 = vweird.f32 %v5458_v15 }
 0x898   : > { %vm2713_vm13 = vweird.f32 %v5454_v51  ;;  %v2750_v22 = vsub.f32 1.0, %v2749_v14  ;;  %v2996_v55 = vmul.f32 %v2976_v25, %v5719_v27  ;;  %v2712_v34 = vadd.f32 %v3651_v10, %v2711_v9  ;;  %vm5539_vm5 = vmor %vm2953_vm10, %vm2954_vm12  ;;  %v5723_v9 = vld [vmem:[#allocation16_spill] sm:$0xff] }
 0x899   : > { %v2759_v52 = vand.u32 2147483648, %v5470_v31  ;;  %3656 = vrcp.f32 %v5507_v0  ;;  %v3655_v26 = vpop.eup %3654  ;;  %vm2715_vm14 = vmor %vm2713_vm13, %vm2714_vm11  ;;  %v2720_v56 = vor.u32 1.1754944e-38, %v2719_v7  ;;  %vm2754_vm2 = vweird.f32 %v3653_v42 }
 0x89a   : > { %v2751_v51 = vmul.f32 %v3653_v42, %v2750_v22  ;;  %v2757_v58 = vand.u32 2147483647, %v5470_v31  ;;  %v2836_v30 = vsel %vm5516_vm3, %v5437_v11, %v2832_v20  ;;  %3189 = vmatmul.f32.gmra.mxu2 %v2996_v55  ;;  %v2716_v46 = vsel %vm2715_vm14, %v3651_v10, %v2712_v34 }
 0x89b   : > { %vm2718_vm15 = vcmp.eq.f32.partialorder %v2717_v39, 8.507059e+37  ;;  %v2669_v43 = vmul.f32 %v3655_v26, %v5489_v4  ;;  %v2952_v47 = vadd.f32 %v5458_v15, %v2951_v61  ;;  %vm2753_vm0 = vweird.f32 %v5470_v31  ;;  %v3184_v31 = vpop.f32.mrf.mxu2 }
 0x89c   : > { %v2721_v53 = vsel %vm2718_vm15, %v2720_v56, %v2716_v46  ;;  %v2752_v32 = vadd.f32 %v3653_v42, %v2751_v51  ;;  %vm2755_vm1 = vmor %vm2753_vm0, %vm2754_vm2  ;;  %v2760_v28 = vor.u32 1.1754944e-38, %v2759_v52  ;;  %v2677_v5 = vand.u32 2147483647, %v5489_v4  ;;  %v3088_v52 = vpop.f32.mrf.mxu3 }
 0x89d   : > { %v2722_v54 = vmul.f32 %v2721_v53, %v5295_v60  ;;  %v2670_v24 = vsub.f32 1.0, %v2669_v43  ;;  %v2841_v11 = vsel %vm5497_vm9, %v2840_v40, %v2836_v30  ;;  %vm2758_vm4 = vcmp.eq.f32.partialorder %v2757_v58, 8.507059e+37 }
 0x89e   : > { %v2756_v44 = vsel %vm2755_vm1, %v3653_v42, %v2752_v32  ;;  %v2679_v57 = vand.u32 2147483648, %v5489_v4  ;;  %vm2674_vm6 = vweird.f32 %v3655_v26  ;;  %v2956_v33 = vsel %vm5539_vm5, %v5458_v15, %v2952_v47  ;;  %v5726_v47 = vld [vmem:[#allocation17_spill] sm:$0xff] }
 0x89f   : > { %v3657_v18 = vpop.eup %3656  ;;  %v3416_v60 = vclamps-f32 %v2722_v54, 1.0  ;;  %v2761_v8 = vsel %vm2758_vm4, %v2760_v28, %v2756_v44  ;;  %v2671_v10 = vmul.f32 %v3655_v26, %v2670_v24  ;;  %vm2673_vm7 = vweird.f32 %v5489_v4  ;;  %v3152_v24 = vpop.f32.mrf.mxu1 }
 0x8a0   : > { %v2762_v35 = vmul.f32 %v2761_v8, %v5301_v13  ;;  %v2789_v40 = vmul.f32 %v3657_v18, %v5507_v0  ;;  %vm2678_vm8 = vcmp.eq.f32.partialorder %v2677_v5, 8.507059e+37  ;;  %v3420_v63 = vclamps-f32 %v5387_v1, 1.0  ;;  %vm2675_vm9 = vmor %vm2673_vm7, %vm2674_vm6  ;;  %v5727_v5 = vld [vmem:[#allocation12_spill] sm:$0xff] }
 0x8a1   : > { %v2978_v19 = vadd.f32 1.0, %v3416_v60  ;;  %v2672_v3 = vadd.f32 %v3655_v26, %v2671_v10  ;;  %v2680_v42 = vor.u32 1.1754944e-38, %v2679_v57  ;;  %v3421_v48 = vclamps-f32 %v5462_v38, 1.0 }
 0x8a2   : > { %v3417_v41 = vclamps-f32 %v2762_v35, 1.0  ;;  %v2790_v16 = vsub.f32 1.0, %v2789_v40  ;;  %v2797_v13 = vand.u32 2147483647, %v5507_v0  ;;  %v2799_v4 = vand.u32 2147483648, %v5507_v0  ;;  %v5728_v35 = vld [vmem:[#allocation4_spill] sm:$0xff] }
 0x8a3   : > { %v2998_v62 = vmul.f32 %v2978_v19, %v5722_v12  ;;  %v2676_v15 = vsel %vm2675_vm9, %v3655_v26, %v2672_v3  ;;  %vm2794_vm10 = vweird.f32 %v3657_v18  ;;  %v2842_v14 = vmul.f32 %v2841_v11, %v5474_v2 }
 0x8a4   : > { %v2979_v20 = vadd.f32 1.0, %v3417_v41  ;;  %v2681_v39 = vsel %vm2678_vm8, %v2680_v42, %v2676_v15  ;;  %v2791_v7 = vmul.f32 %v3657_v18, %v2790_v16  ;;  %v2960_v1 = vor.u32 1.1754944e-38, %v2959_v21  ;;  %v5729_v15 = vld [vmem:[#allocation5_spill] sm:$0xff] }
 0x8a5   : > { %3128 = vmatmul.f32.gmra.mxu0 %v2998_v62  ;;  %v2682_v25 = vmul.f32 %v2681_v39, %v5304_v29  ;;  %v2982_v38 = vadd.f32 1.0, %v3420_v63  ;;  %vm2958_vm11 = vcmp.eq.f32.partialorder %v2957_v59, 8.507059e+37  ;;  %vm2793_vm12 = vweird.f32 %v5507_v0  ;;  %v5567_v59 = vld [vmem:[%s3740_s11 + $0x285] ss:$0 sm:$0xff] }
 0x8a6   : > { %v2999_v61 = vmul.f32 %v2979_v20, %v5723_v9  ;;  %v2792_v22 = vadd.f32 %v3657_v18, %v2791_v7  ;;  %v2777_v27 = vmul.f32 %v5306_v37, %v5724_v17  ;;  %v2961_v2 = vsel %vm2958_vm11, %v2960_v1, %v2956_v33  ;;  %vm2795_vm13 = vmor %vm2793_vm12, %vm2794_vm10  ;;  %v5725_v37 = vld [vmem:[#allocation18_spill] sm:$0xff] }
 0x8a7   : > { %v3415_v55 = vclamps-f32 %v2682_v25, 1.0  ;;  %v2800_v21 = vor.u32 1.1754944e-38, %v2799_v4  ;;  %v2937_v29 = vmul.f32 %v5487_v36, %v5256_v50  ;;  %vm2798_vm3 = vcmp.eq.f32.partialorder %v2797_v13, 8.507059e+37  ;;  %v3120_v36 = vpop.f32.mrf.mxu0 }
 0x8a8   : > { %3160 = vmatmul.f32.gmra.mxu1 %v2999_v61  ;;  %v2796_v34 = vsel %vm2795_vm13, %v3657_v18, %v2792_v22  ;;  %v2983_v6 = vadd.f32 1.0, %v3421_v48  ;;  %v3002_v0 = vmul.f32 %v2982_v38, %v5323_v23  ;;  %v3419_v51 = vclamps-f32 %v2842_v14, 1.0  ;;  %v5730_v38 = vld [vmem:[#allocation6_spill] sm:$0xff] }
 0x8a9   : > { %v2977_v26 = vadd.f32 1.0, %v3415_v55  ;;  %v2801_v56 = vsel %vm2798_vm3, %v2800_v21, %v2796_v34  ;;  %v2143_v58 = vmul.f32 0.5, %v5725_v37  ;;  %v2962_v30 = vmul.f32 %v2961_v2, %v2937_v29 }
 0x8aa   : > { %v2802_v46 = vmul.f32 %v2801_v56, %v2777_v27  ;;  %v3089_v43 = vadd.f32 %v5567_v59, %v3088_v52  ;;  %v2981_v28 = vadd.f32 1.0, %v3419_v51  ;;  %v2140_v11 = vmul.f32 0.5, %v5727_v5 }
 0x8ab   : > { %v2997_v50 = vmul.f32 %v2977_v26, %v5726_v47  ;;  %v3003_v32 = vmul.f32 %v2983_v6, %v2143_v58  ;;  %v3422_v44 = vclamps-f32 %v2962_v30, 1.0  ;;  %v2141_v18 = vmul.f32 0.5, %v5227_v49  ;;  %v5731_v6 = vld [vmem:[#allocation7_spill] sm:$0xff] }
 0x8ac   : > { %v3418_v53 = vclamps-f32 %v2802_v46, 1.0  ;;  %v3121_v54 = vadd.f32 %v3120_v36, %v3089_v43  ;;  %v2144_v19 = vmul.f32 0.5, %v5247_v45  ;;  %v5732_v46 = vld [vmem:[#allocation8_spill] sm:$0xff] }
 0x8ad   : > { %3096 = vmatmul.f32.gmra.mxu3 %v2997_v50  ;;  %3131 = vmatmul.f32.gmra.mxu0 %v3002_v0  ;;  %v3001_v10 = vmul.f32 %v2981_v28, %v2141_v18  ;;  %v2984_v33 = vadd.f32 1.0, %v3422_v44 }
 0x8ae   : > { %v2980_v23 = vadd.f32 1.0, %v3418_v53  ;;  %v3153_v57 = vadd.f32 %v3152_v24, %v3121_v54 }
 0x8af   : > { %v3004_v3 = vmul.f32 %v2984_v33, %v2144_v19 }
 0x8b0   : > { %v3000_v60 = vmul.f32 %v2980_v23, %v2140_v11  ;;  %3163 = vmatmul.f32.gmra.mxu1 %v3003_v32  ;;  %v3185_v8 = vadd.f32 %v3184_v31, %v3153_v57 }
 0x8b2   : > { %3192 = vmatmul.f32.gmra.mxu2 %v3000_v60  ;;  %v3199_v40 = vadd.f32 %v3185_v8, %v5728_v35 }
 0x8b4   : > { %3204 = vst [vmem:[#allocation2 + $0x8] sm:$0xff] %v3199_v40 }
 0x8b5   : > { %3099 = vmatmul.f32.gmra.mxu3 %v3001_v10 }
 0x8ba   : > { %3195 = vmatmul.f32.gmra.mxu2 %v3004_v3 }
 0x8c2   : > { %v3123_v42 = vpop.f32.mrf.mxu0 }
 0x8c7   : > { %v3155_v16 = vpop.f32.mrf.mxu1 }
 0x8d5   : > { %v3091_v63 = vpop.f32.mrf.mxu3 }
 0x8d6   : > { %v3092_v41 = vadd.f32 %v5567_v59, %v3091_v63 }
 0x8d8   : > { %v3124_v49 = vadd.f32 %v3123_v42, %v3092_v41 }
 0x8da   : > { %v3156_v48 = vadd.f32 %v3155_v16, %v3124_v49 }
 0x8e3   : > { %v3187_v12 = vpop.f32.mrf.mxu2 }
 0x8e4   : > { %v3188_v62 = vadd.f32 %v3187_v12, %v3156_v48 }
 0x8e6   : > { %v3200_v13 = vadd.f32 %v3188_v62, %v5729_v15 }
 0x8e8   : > { %3205 = vst [vmem:[#allocation2] sm:$0xff] %v3200_v13 }
 0x8fa   : > { %v3126_v45 = vpop.f32.mrf.mxu0 }
 0x907   : > { %v3158_v7 = vpop.f32.mrf.mxu1 }
 0x914   : > { %v3094_v4 = vpop.f32.mrf.mxu3 }
 0x915   : > { %v3095_v20 = vadd.f32 %v5567_v59, %v3094_v4 }
 0x917   : > { %v3127_v39 = vadd.f32 %v3126_v45, %v3095_v20 }
 0x919   : > { %v3159_v14 = vadd.f32 %v3158_v7, %v3127_v39 }
 0x91d   : > { %v3190_v1 = vpop.f32.mrf.mxu2 }
 0x91e   : > { %v3191_v25 = vadd.f32 %v3190_v1, %v3159_v14 }
 0x920   : > { %v3201_v9 = vadd.f32 %v3191_v25, %v5730_v38 }
 0x922   : > { %3206 = vst [vmem:[#allocation2 + $0x20] sm:$0xff] %v3201_v9  ;;  %v3129_v17 = vpop.f32.mrf.mxu0 }
 0x925   : > { %v3161_v2 = vpop.f32.mrf.mxu1 }
 0x92a   : > { %v3132_v56 = vpop.f32.mrf.mxu0 }
 0x92d   : > { %v3164_v51 = vpop.f32.mrf.mxu1 }
 0x930   : > { %v3097_v61 = vpop.f32.mrf.mxu3 }
 0x931   : > { %v3098_v22 = vadd.f32 %v5567_v59, %v3097_v61 }
 0x933   : > { %v3130_v27 = vadd.f32 %v3129_v17, %v3098_v22 }
 0x935   : > { %v3162_v55 = vadd.f32 %v3161_v2, %v3130_v27  ;;  %v3193_v21 = vpop.f32.mrf.mxu2 }
 0x937   : > { %v3194_v29 = vadd.f32 %v3193_v21, %v3162_v55 }
 0x938   : > { %v3100_v34 = vpop.f32.mrf.mxu3 }
 0x939   : > { %v3202_v52 = vadd.f32 %v3194_v29, %v5731_v6  ;;  %v3101_v26 = vadd.f32 %v5567_v59, %v3100_v34 }
 0x93b   : > { %3207 = vst [vmem:[#allocation2 + $0x10] sm:$0xff] %v3202_v52  ;;  %v3133_v0 = vadd.f32 %v3132_v56, %v3101_v26 }
 0x93d   : > { %v3165_v37 = vadd.f32 %v3164_v51, %v3133_v0  ;;  %v3196_v58 = vpop.f32.mrf.mxu2 }
 0x93f   : > { %v3197_v30 = vadd.f32 %v3196_v58, %v3165_v37  ;;  %3212 = sbr.rel (%p3423_p5) target bundleno = 2767 (0xacf), region = 52 }
 0x941   : > { %v3203_v43 = vadd.f32 %v3197_v30, %v5732_v46 }
 0x943   : > { %3208 = vst [vmem:[#allocation2 + $0x18] sm:$0xff] %v3203_v43 }
 0x944   : > { %3215 = vadd.xlane.f32.xlu0 %v3199_v40  ;;  %v3254_v47 = vld [vmem:[%s5652_s1 + $0x150] sm:$0xff]  ;;  %v5733_v50 = vld [vmem:[#allocation3_spill] sm:$0xff]  ;;  %v3252_v28 = vld [vmem:[%s5652_s1 + $0x140] sm:$0xff] }
 0x945   : > { %3257 = vmatpush.msra.mxu0 %v3254_v47  ;;  %v3253_v54 = vld [vmem:[%s5652_s1 + $0x148] sm:$0xff]  ;;  %v3251_v24 = vld [vmem:[%s5652_s1 + $0x138] sm:$0xff]  ;;  %v3250_v5 = vld [vmem:[%s5652_s1 + $0x130] sm:$0xff] }
 0x946   : > { %v3249_v11 = vld [vmem:[%s5652_s1 + $0x128] sm:$0xff]  ;;  %v3248_v23 = vld [vmem:[%s5652_s1 + $0x120] sm:$0xff]  ;;  %v3247_v44 = vld [vmem:[%s5652_s1 + $0x118] sm:$0xff] }
 0x947   : > { %3258 = vmatpush.msra.mxu0 %v3253_v54  ;;  %v3246_v57 = vld [vmem:[%s5652_s1 + $0x110] sm:$0xff]  ;;  %v3245_v18 = vld [vmem:[%s5652_s1 + $0x108] sm:$0xff]  ;;  %v3244_v31 = vld [vmem:[%s5652_s1 + $0x100] sm:$0xff] }
 0x948   : > { %v3243_v60 = vld [vmem:[%s5652_s1 + $0xf8] sm:$0xff]  ;;  %v3242_v8 = vld [vmem:[%s5652_s1 + $0xf0] sm:$0xff]  ;;  %v3241_v10 = vld [vmem:[%s5652_s1 + $0xe8] sm:$0xff] }
 0x949   : > { %3259 = vmatpush.msra.mxu0 %v3252_v28  ;;  %v3240_v33 = vld [vmem:[%s5652_s1 + $0xe0] sm:$0xff]  ;;  %v3239_v35 = vld [vmem:[%s5652_s1 + $0xd8] sm:$0xff]  ;;  %v3663_v12 = vld [vmem:[%s5652_s1 + $0xd2] ss:$0 sm:$0xff] }
 0x94a   : > { %v3664_v13 = vld [vmem:[%s5652_s1 + $0xd3] ss:$0 sm:$0xff]  ;;  %v3665_v45 = vld [vmem:[%s5652_s1 + $0xd4] ss:$0 sm:$0xff] }
 0x94b   : > { %3260 = vmatpush.msra.mxu0 %v3251_v24 }
 0x94d   : > { %3261 = vmatpush.msra.mxu0 %v3250_v5 }
 0x94f   : > { %3262 = vmatpush.msra.mxu0 %v3249_v11 }
 0x951   : > { %3263 = vmatpush.msra.mxu0 %v3248_v23 }
 0x953   : > { %3264 = vmatpush.msra.mxu0 %v3247_v44 }
 0x955   : > { %3265 = vmatpush.msra.mxu0 %v3246_v57 }
 0x957   : > { %3266 = vmatpush.msra.mxu0 %v3245_v18 }
 0x959   : > { %3267 = vmatpush.msra.mxu0 %v3244_v31 }
 0x95b   : > { %3268 = vmatpush.msra.mxu0 %v3243_v60 }
 0x95d   : > { %3269 = vmatpush.msra.mxu0 %v3242_v8 }
 0x95f   : > { %3270 = vmatpush.msra.mxu0 %v3241_v10 }
 0x961   : > { %3271 = vmatpush.msra.mxu0 %v3240_v33 }
 0x963   : > { %3272 = vmatpush.msra.mxu0 %v3239_v35 }
 0x9b7   : > { %v3216_v59 = vpop.xlane.xlu0 %3215 }
 0x9b8   : > { %v3217_v36 = vmul.f32 %v3216_v59, %v5733_v50 }
 0x9ba   : > { %v3218_v53 = vsub.f32 %v3199_v40, %v3217_v36 }
 0x9bc   : > { %v3219_v32 = vmul.f32 %v3218_v53, %v3218_v53 }
 0x9be   : > { %3220 = vadd.xlane.f32.xlu0 %v3219_v32 }
 0xa31   : > { %v3221_v40 = vpop.xlane.xlu0 %3220 }
 0xa32   : > { %v3222_v19 = vmul.f32 %v3221_v40, %v5733_v50 }
 0xa34   : > { %v3223_v3 = vadd.f32 1e-05, %v3222_v19 }
 0xa36   : > { %3666 = vrsqrt.f32 %v3223_v3  ;;  %vm3230_vm2 = vweird.f32 %v3223_v3 }
 0xa3c   : > { %v3667_v63 = vpop.eup %3666 }
 0xa3d   : > { %v3225_v41 = vmul.f32 %v3667_v63, %v3223_v3  ;;  %vm3231_vm14 = vweird.f32 %v3667_v63 }
 0xa3e   : > { %vm3232_vm15 = vmor %vm3230_vm2, %vm3231_vm14 }
 0xa3f   : > { %v3226_v42 = vmul.f32 %v3667_v63, %v3225_v41 }
 0xa41   : > { %v3227_v49 = vmul.f32 0.5, %v3226_v42 }
 0xa43   : > { %v3228_v16 = vsub.f32 1.5, %v3227_v49 }
 0xa45   : > { %v3229_v48 = vmul.f32 %v3667_v63, %v3228_v16 }
 0xa47   : > { %v3233_v62 = vsel %vm3232_vm15, %v3667_v63, %v3229_v48 }
 0xa48   : > { %v3234_v15 = vmul.f32 %v3233_v62, %v3218_v53 }
 0xa4a   : > { %v3236_v4 = vmul.f32 %v3663_v12, %v3234_v15 }
 0xa4c   : > { %v3238_v20 = vadd.f32 %v3664_v13, %v3236_v4 }
 0xa4e   : > { %3273 = vmatmul.f32.vlgmr.msra.gmra.mxu0 %v3238_v20 }
 0xacb   : > { %v3274_v39 = vpop.f32.mrf.mxu0 }
 0xacc   : > { %v3275_v7 = vadd.f32 %v3665_v45, %v3274_v39 }
 0xace   : > { %3277 = vst [vmem:[%s5657_s6] sm:$0xff] %v3275_v7 }
 0xacf PF: > { %s16_s21 = sadd.s32 1, %s3674_s21  }
 0xad0   : > { %p13_p6 = scmp.ge.s32.totalorder %s16_s21, 4  }
 0xad2   :  { %15 = sbr.rel (!%p13_p6) target bundleno = 1 (0x1), region = 85 }

</bundles_post_ra>
